<compile_context>
chip_gen: v7x
topology: tpu7x:2x2x1
jax: 0.10.0
libtpu: 0.0.40
codegen_flags: <defaults>
</compile_context>

<pallas_src>
import functools
import math

import jax
import jax.numpy as jnp
from jax.experimental import pallas as pl
from jax.experimental.pallas import tpu as pltpu

VMEM = pltpu.MemorySpace.VMEM
# 64 MiB scoped-VMEM budget; drop to ~48 MiB on v7x / raise towards 100 MiB on v5e/v6e.
VMEM_LIMIT_BYTES = 64 * 1024 * 1024


def _round_up(x, m):
    return (x + m - 1) // m * m


def _pick_row_tile(m):
    """Largest row tile (multiple of 8) dividing m; falls back to the full dim."""
    for t in (256, 128, 64, 32, 16, 8):
        if m % t == 0:
            return t
    return m


def _pick_col_tile(n):
    for t in (512, 256, 128):
        if n % t == 0:
            return t
    return n


# ------------------------------ kernel helpers ------------------------------- #

def _layernorm(y, gamma, beta, eps):
    mu = jnp.mean(y, axis=-1, keepdims=True)
    var = jnp.mean(jnp.square(y - mu), axis=-1, keepdims=True)
    return (y - mu) * jax.lax.rsqrt(var + eps) * gamma + beta


def _mha_core(q, k, v, wo, *, nhead, kv_len):
    """Multi-head attention core + output projection (bias added by caller).

    q: (S, D) f32; k, v: (M, D) f32; wo: (D, D) pre-transposed (in, out).
    kv_len: static count of valid key rows (None => all M rows valid).
    Returns (S, D) f32.
    """
    S, D = q.shape
    M = k.shape[0]
    dh = D // nhead
    scale = 1.0 / math.sqrt(dh)
    wo = wo.astype(jnp.bfloat16)

    neg = None
    if kv_len is not None and kv_len < M:
        # Mask the sublane-padding rows of the cache window (positions >= start_pos+S).
        col = jax.lax.broadcasted_iota(jnp.int32, (S, M), 1)
        neg = jnp.where(col < kv_len, 0.0, -1e30).astype(jnp.float32)

    out = jnp.zeros((S, D), jnp.float32)
    # TODO(synk): dh = D/nhead (= 32 here) keeps the MXU contraction narrow; at real
    # model sizes batch the heads through the MXU (head-major batched dot_general).
    for h in range(nhead):
        sl = slice(h * dh, (h + 1) * dh)
        qh = (q[:, sl] * scale).astype(jnp.bfloat16)        # (S, dh)
        kh = k[:, sl].astype(jnp.bfloat16)                  # (M, dh)
        vh = v[:, sl].astype(jnp.bfloat16)                  # (M, dh)
        s = jax.lax.dot_general(qh, kh, (((1,), (1,)), ((), ())),
                                preferred_element_type=jnp.float32)   # (S, M)
        if neg is not None:
            s = s + neg
        s = s - jnp.max(s, axis=-1, keepdims=True)
        p = jnp.exp(s)
        p = p * pl.reciprocal(jnp.sum(p, axis=-1, keepdims=True), approx=True)  # EUP
        pv = jnp.dot(p.astype(jnp.bfloat16), vh,
                     preferred_element_type=jnp.float32)     # (S, dh)
        # Fold the output projection into the head loop: no concatenate, lane-dense
        # (S, D) MXU output, only one f32 accumulator live.
        out = out + jnp.dot(pv.astype(jnp.bfloat16), wo[sl, :],
                            preferred_element_type=jnp.float32)
    return out


# ------------------------- fused decoder-layer kernel ------------------------ #

def _decoder_layer_kernel(x_ref, mem_ref,
                          sa_wqkv_ref, sa_bqkv_ref, sa_wo_ref, sa_bo_ref,
                          n1g_ref, n1b_ref,
                          ca_wq_ref, ca_bq_ref, ca_wkv_ref, ca_bkv_ref,
                          ca_wo_ref, ca_bo_ref,
                          n2g_ref, n2b_ref,
                          w1_ref, b1_ref, w2_ref, b2_ref,
                          n3g_ref, n3b_ref,
                          o_ref, *, nhead, kv_len, eps):
    """One full nn.TransformerDecoderLayer (post-LN, ReLU) for one batch element."""
    x = x_ref[0].astype(jnp.float32)                        # (S, D)
    D = x.shape[-1]

    # ---- self-attention: fused Q|K|V projection, one (S,D)x(D,3D) MXU pass ----
    qkv = jnp.dot(x.astype(jnp.bfloat16), sa_wqkv_ref[...].astype(jnp.bfloat16),
                  preferred_element_type=jnp.float32) + sa_bqkv_ref[...].astype(jnp.float32)
    attn = _mha_core(qkv[:, :D], qkv[:, D:2 * D], qkv[:, 2 * D:],
                     sa_wo_ref[...], nhead=nhead, kv_len=None)
    attn = attn + sa_bo_ref[...].astype(jnp.float32)
    y = _layernorm(x + attn, n1g_ref[...].astype(jnp.float32),
                   n1b_ref[...].astype(jnp.float32), eps)

    # ---- cross-attention over the KV-cache window (read in place, no slice copy) ----
    mem = mem_ref[0].astype(jnp.float32)                    # (M_pad, D)
    q2 = jnp.dot(y.astype(jnp.bfloat16), ca_wq_ref[...].astype(jnp.bfloat16),
                 preferred_element_type=jnp.float32) + ca_bq_ref[...].astype(jnp.float32)
    kv2 = jnp.dot(mem.astype(jnp.bfloat16), ca_wkv_ref[...].astype(jnp.bfloat16),
                  preferred_element_type=jnp.float32) + ca_bkv_ref[...].astype(jnp.float32)
    attn2 = _mha_core(q2, kv2[:, :D], kv2[:, D:], ca_wo_ref[...],
                      nhead=nhead, kv_len=kv_len)
    attn2 = attn2 + ca_bo_ref[...].astype(jnp.float32)
    y2 = _layernorm(y + attn2, n2g_ref[...].astype(jnp.float32),
                    n2b_ref[...].astype(jnp.float32), eps)

    # ---- FFN: linear1 + ReLU + linear2 + residual + LN ----
    h = jnp.dot(y2.astype(jnp.bfloat16), w1_ref[...].astype(jnp.bfloat16),
                preferred_element_type=jnp.float32)
    h = jnp.maximum(h + b1_ref[...].astype(jnp.float32), 0.0)
    f = jnp.dot(h.astype(jnp.bfloat16), w2_ref[...].astype(jnp.bfloat16),
                preferred_element_type=jnp.float32)
    y3 = _layernorm(y2 + f + b2_ref[...].astype(jnp.float32),
                    n3g_ref[...].astype(jnp.float32),
                    n3b_ref[...].astype(jnp.float32), eps)
    o_ref[0] = y3.astype(o_ref.dtype)


def decoder_layer(x, cache, p, *, nhead, kv_len, eps=1e-5):
    """x: (B, S, D); cache: (MAX_B, MAX_S, D). Returns the layer output (B, S, D)."""
    B, S, D = x.shape
    max_seq = cache.shape[1]
    F = p["linear1_w"].shape[1]
    m_pad = min(_round_up(kv_len, 8), max_seq)      # sublane-aligned cache window

    kernel = functools.partial(_decoder_layer_kernel, nhead=nhead,
                               kv_len=kv_len, eps=eps)

    def wspec(shape):
        # Constant block index: Pallas skips the re-DMA across grid steps.
        # TODO(synk): single-buffer these (pipeline_mode=pl.Buffered(1)) for VMEM headroom.
        return pl.BlockSpec(shape, lambda b: (0, 0))

    in_specs = [
        pl.BlockSpec((1, S, D), lambda b: (b, 0, 0)),        # x
        pl.BlockSpec((1, m_pad, D), lambda b: (b, 0, 0)),    # cache window (memory)
        wspec((D, 3 * D)), wspec((1, 3 * D)),                # self-attn fused QKV
        wspec((D, D)), wspec((1, D)),                        # self-attn out proj
        wspec((1, D)), wspec((1, D)),                        # norm1
        wspec((D, D)), wspec((1, D)),                        # cross-attn Q
        wspec((D, 2 * D)), wspec((1, 2 * D)),                # cross-attn fused KV
        wspec((D, D)), wspec((1, D)),                        # cross-attn out proj
        wspec((1, D)), wspec((1, D)),                        # norm2
        wspec((D, F)), wspec((1, F)),                        # linear1
        wspec((F, D)), wspec((1, D)),                        # linear2
        wspec((1, D)), wspec((1, D)),                        # norm3
    ]
    return pl.pallas_call(
        kernel,
        out_shape=jax.ShapeDtypeStruct((B, S, D), x.dtype),
        grid=(B,),
        in_specs=in_specs,
        out_specs=pl.BlockSpec((1, S, D), lambda b: (b, 0, 0)),
        compiler_params=pltpu.CompilerParams(
            dimension_semantics=("parallel",),
            vmem_limit_bytes=VMEM_LIMIT_BYTES),
    )(x, cache,
      p["sa_wqkv"], p["sa_bqkv"], p["sa_wo"], p["sa_bo"],
      p["norm1_w"], p["norm1_b"],
      p["ca_wq"], p["ca_bq"], p["ca_wkv"], p["ca_bkv"],
      p["ca_wo"], p["ca_bo"],
      p["norm2_w"], p["norm2_b"],
      p["linear1_w"], p["linear1_b"], p["linear2_w"], p["linear2_b"],
      p["norm3_w"], p["norm3_b"])


# ------------------------------ output linear ------------------------------- #

def _linear_kernel(x_ref, w_ref, b_ref, o_ref):
    acc = jnp.dot(x_ref[...].astype(jnp.bfloat16), w_ref[...].astype(jnp.bfloat16),
                  preferred_element_type=jnp.float32)
    o_ref[...] = (acc + b_ref[...].astype(jnp.float32)).astype(o_ref.dtype)


def linear(x2d, w, b):
    """x2d: (M, D); w: (D, N) pre-transposed bf16; b: (1, N).

    Rows are the innermost grid axis, so the (D, TN) weight block index is constant
    across inner steps and the full (D, N) weight streams from HBM exactly once.
    TODO(synk): K-tile D with an f32 accumulator scratch ("arbitrary" axis) when D is
    large enough that a (D, TN) weight block pressures v7x's 64 MiB VMEM.
    """
    M, D = x2d.shape
    N = w.shape[1]
    TM = _pick_row_tile(M)
    TN = _pick_col_tile(N)
    return pl.pallas_call(
        _linear_kernel,
        out_shape=jax.ShapeDtypeStruct((M, N), x2d.dtype),
        grid=(N // TN, M // TM),                              # rows innermost
        in_specs=[
            pl.BlockSpec((TM, D), lambda j, i: (i, 0)),
            pl.BlockSpec((D, TN), lambda j, i: (0, j)),
            pl.BlockSpec((1, TN), lambda j, i: (0, j)),
        ],
        out_specs=pl.BlockSpec((TM, TN), lambda j, i: (i, j)),
        compiler_params=pltpu.CompilerParams(
            dimension_semantics=("parallel", "parallel"),
            vmem_limit_bytes=VMEM_LIMIT_BYTES),
    )(x2d, w, b)


# --------------------------- in-place cache write --------------------------- #

def _cache_write_kernel(cache_in_ref, x_ref, cache_out_ref, sem, *, start_pos):
    del cache_in_ref  # aliased with cache_out_ref; only the new slab is written
    b, s, _ = x_ref.shape
    cp = pltpu.make_async_copy(
        x_ref, cache_out_ref.at[pl.ds(0, b), pl.ds(start_pos, s), :], sem)
    cp.start()
    cp.wait()


def cache_write(cache, x, start_pos):
    """In-place write of x into cache[:B, start_pos:start_pos+S] (aliased output)."""
    return pl.pallas_call(
        functools.partial(_cache_write_kernel, start_pos=start_pos),
        out_shape=jax.ShapeDtypeStruct(cache.shape, cache.dtype),
        in_specs=[pl.BlockSpec(memory_space=pl.ANY),
                  pl.BlockSpec(memory_space=VMEM)],
        out_specs=pl.BlockSpec(memory_space=pl.ANY),
        scratch_shapes=[pltpu.SemaphoreType.DMA],
        input_output_aliases={0: 0},
    )(cache, x)


# ------------------------------- model glue --------------------------------- #

def transformer_lm_forward(params, tokens, start_pos, *, nhead):
    """tokens: (B, S) int32; start_pos: static int. Returns (logits, updated_cache)."""
    B, S = tokens.shape
    D = params["embedding"].shape[1]
    V = params["embedding"].shape[0]

    # TODO(synk): embedding gather could become a scalar-prefetch row-gather fused into
    # the first decoder-layer kernel; kept as jnp.take glue (tiny table).
    x = jnp.take(params["embedding"], tokens, axis=0)          # (B, S, D)

    # In-place cache update (aliased write); thread the new cache for decode reuse.
    # TODO(synk): donate the cache buffer under jit in a real decode loop.
    cache = cache_write(params["cache"], x, start_pos)
    kv_len = start_pos + S

    for lp in params["layers"]:
        x = decoder_layer(x, cache, lp, nhead=nhead, kv_len=kv_len)

    logits = linear(x.reshape(B * S, D), params["out_w"], params["out_b"])
    return logits[:, :V].reshape(B, S, V), cache


# ------------------------------- param init --------------------------------- #

def init_params(key, num_tokens, d_model, nhead, num_layers, dim_ff,
                max_batch, max_seq, param_dtype=jnp.bfloat16, dtype=jnp.float32):
    keys = iter(jax.random.split(key, 2 + 8 * num_layers))

    def w(shape, scale=0.02):
        # Weights stored bf16 and pre-transposed to (in, out): MXU-native operands,
        # half the HBM weight traffic; accumulation stays f32 inside the kernels.
        return (scale * jax.random.normal(next(keys), shape)).astype(param_dtype)

    def zeros(shape):
        return jnp.zeros(shape, dtype)

    def ones(shape):
        return jnp.ones(shape, dtype)

    layers = []
    for _ in range(num_layers):
        layers.append(dict(
            sa_wqkv=w((d_model, 3 * d_model)), sa_bqkv=zeros((1, 3 * d_model)),
            sa_wo=w((d_model, d_model)), sa_bo=zeros((1, d_model)),
            norm1_w=ones((1, d_model)), norm1_b=zeros((1, d_model)),
            ca_wq=w((d_model, d_model)), ca_bq=zeros((1, d_model)),
            ca_wkv=w((d_model, 2 * d_model)), ca_bkv=zeros((1, 2 * d_model)),
            ca_wo=w((d_model, d_model)), ca_bo=zeros((1, d_model)),
            norm2_w=ones((1, d_model)), norm2_b=zeros((1, d_model)),
            linear1_w=w((d_model, dim_ff)), linear1_b=zeros((1, dim_ff)),
            linear2_w=w((dim_ff, d_model)), linear2_b=zeros((1, d_model)),
            norm3_w=ones((1, d_model)), norm3_b=zeros((1, d_model)),
        ))

    v_pad = _round_up(num_tokens, 128)   # lane-dense, tileable vocab projection
    return dict(
        embedding=jax.random.normal(next(keys), (num_tokens, d_model)).astype(dtype),
        layers=layers,
        out_w=w((d_model, v_pad)),                        # pre-transposed (in, out)
        out_b=zeros((1, v_pad)),
        cache=jnp.zeros((max_batch, max_seq, d_model), dtype),
    )


# ---------------------------------- main ------------------------------------ #

if __name__ == "__main__":
    # Small but lane-dense configuration (d_model / dim_ff / vocab multiples of 128).
    NUM_TOKENS = 128
    D_MODEL = 128
    NHEAD = 4
    NUM_LAYERS = 2
    DIM_FF = 256
    MAX_BATCH = 4
    MAX_SEQ = 64
    BATCH = 2
    SEQ = 8
    START_POS = 4

    root = jax.random.PRNGKey(0)
    pkey, tkey = jax.random.split(root)

    params = init_params(pkey, NUM_TOKENS, D_MODEL, NHEAD, NUM_LAYERS,
                         DIM_FF, MAX_BATCH, MAX_SEQ)
    tokens = jax.random.randint(tkey, (BATCH, SEQ), 0, NUM_TOKENS, dtype=jnp.int32)

    fwd = jax.jit(functools.partial(transformer_lm_forward, nhead=NHEAD),
                  static_argnums=(2,))
    logits, new_cache = fwd(params, tokens, START_POS)
    logits = jax.block_until_ready(logits)
    new_cache = jax.block_until_ready(new_cache)

    assert logits.shape == (BATCH, SEQ, NUM_TOKENS)
    assert bool(jnp.all(jnp.isfinite(logits)))
    # The aliased cache write must have placed the embeddings at [:, start_pos:start_pos+S].
    emb = jnp.take(params["embedding"], tokens, axis=0)
    assert bool(jnp.allclose(new_cache[:BATCH, START_POS:START_POS + SEQ], emb))
    print("KERNEL_OK")
</pallas_src>

<mosaic_0001>
module attributes {stable_mosaic.version = 11 : i64} {
  func.func @_cache_write_kernel(%arg0: memref<4x64x128xf32, #tpu.memory_space<any>>, %arg1: memref<2x8x128xf32, #tpu.memory_space<vmem>>, %arg2: memref<4x64x128xf32, #tpu.memory_space<any>>, %arg3: memref<!tpu.dma_semaphore, #tpu.memory_space<semaphore_mem>>) attributes {dimension_semantics = [], scalar_prefetch = 0 : i64, scratch_operands = 1 : i64, tpu.core_type = #tpu.core_type<tc>} {
    %c0_i32 = arith.constant 0 : i32
    %c4_i32 = arith.constant 4 : i32
    %c0_i32_0 = arith.constant 0 : i32
    %0 = tpu.memref_slice %arg2[%c0_i32, %c4_i32, %c0_i32_0] : memref<4x64x128xf32, #tpu.memory_space<any>> -> memref<2x8x128xf32, #tpu.memory_space<any>>
    tpu.enqueue_dma source(%arg1 : memref<2x8x128xf32, #tpu.memory_space<vmem>>) target(%0 : memref<2x8x128xf32, #tpu.memory_space<any>>) target_semaphore(%arg3 : memref<!tpu.dma_semaphore, #tpu.memory_space<semaphore_mem>>)
    %c0_i32_1 = arith.constant 0 : i32
    %c4_i32_2 = arith.constant 4 : i32
    %c0_i32_3 = arith.constant 0 : i32
    %1 = tpu.memref_slice %arg2[%c0_i32_1, %c4_i32_2, %c0_i32_3] : memref<4x64x128xf32, #tpu.memory_space<any>> -> memref<2x8x128xf32, #tpu.memory_space<any>>
    tpu.wait_dma2 semaphore(%arg3 : memref<!tpu.dma_semaphore, #tpu.memory_space<semaphore_mem>>) src(%arg1 : memref<2x8x128xf32, #tpu.memory_space<vmem>>) dst(%1 : memref<2x8x128xf32, #tpu.memory_space<any>>)
    return
  }
}

module attributes {stable_mosaic.version = 11 : i64} {
  func.func @_linear_kernel(%arg0: i32, %arg1: i32, %arg2: memref<16x128xf32, #tpu.memory_space<vmem>>, %arg3: memref<128x128xbf16, #tpu.memory_space<vmem>>, %arg4: memref<1x128xf32, #tpu.memory_space<vmem>>, %arg5: memref<16x128xf32, #tpu.memory_space<vmem>>) attributes {dimension_semantics = [#tpu.dimension_semantics<parallel>, #tpu.dimension_semantics<parallel>], iteration_bounds = array<i64: 1, 1>, scalar_prefetch = 0 : i64, scratch_operands = 0 : i64, tpu.core_type = #tpu.core_type<tc>, window_params = [{transform_indices = @transform_0, window_bounds = array<i64: 16, 128>}, {transform_indices = @transform_1, window_bounds = array<i64: 128, 128>}, {transform_indices = @transform_2, window_bounds = array<i64: 1, 128>}, {transform_indices = @transform_3, window_bounds = array<i64: 16, 128>}]} {
    %c0 = arith.constant 0 : index
    %c0_0 = arith.constant 0 : index
    %0 = vector.load %arg2[%c0, %c0_0] : memref<16x128xf32, #tpu.memory_space<vmem>>, vector<16x128xf32>
    %1 = arith.truncf %0 : vector<16x128xf32> to vector<16x128xbf16>
    %c0_1 = arith.constant 0 : index
    %c0_2 = arith.constant 0 : index
    %2 = vector.load %arg3[%c0_1, %c0_2] : memref<128x128xbf16, #tpu.memory_space<vmem>>, vector<128x128xbf16>
    %cst = arith.constant dense<0.000000e+00> : vector<16x128xf32>
    %3 = tpu.matmul %1, %2, %cst {dimension_numbers = #tpu.dot_dimension_numbers<[1], [0], [0], [1], [0, 0, 1, 1], [], []>} : vector<16x128xbf16>, vector<128x128xbf16>, vector<16x128xf32> -> vector<16x128xf32>
    %c0_3 = arith.constant 0 : index
    %c0_4 = arith.constant 0 : index
    %4 = vector.load %arg4[%c0_3, %c0_4] : memref<1x128xf32, #tpu.memory_space<vmem>>, vector<1x128xf32>
    %5 = vector.broadcast %4 : vector<1x128xf32> to vector<16x128xf32>
    %6 = arith.addf %3, %5 : vector<16x128xf32>
    %c0_5 = arith.constant 0 : index
    %c0_6 = arith.constant 0 : index
    %7 = vector.load %arg5[%c0_5, %c0_6] : memref<16x128xf32, #tpu.memory_space<vmem>>, vector<16x128xf32>
    tpu.vector_store %arg5[%c0_5, %c0_6], %6 {strides = array<i32>} : memref<16x128xf32, #tpu.memory_space<vmem>>, vector<16x128xf32>,
    return
  }
  func.func @transform_0(%arg0: i32, %arg1: i32) -> (i32, i32) {
    %c0_i32 = arith.constant 0 : i32
    %c0_i32_0 = arith.constant 0 : i32
    return %arg1, %c0_i32 : i32, i32
  }
  func.func @transform_1(%arg0: i32, %arg1: i32) -> (i32, i32) {
    %c0_i32 = arith.constant 0 : i32
    %c0_i32_0 = arith.constant 0 : i32
    return %c0_i32, %arg0 : i32, i32
  }
  func.func @transform_2(%arg0: i32, %arg1: i32) -> (i32, i32) {
    %c0_i32 = arith.constant 0 : i32
    %c0_i32_0 = arith.constant 0 : i32
    return %c0_i32, %arg0 : i32, i32
  }
  func.func @transform_3(%arg0: i32, %arg1: i32) -> (i32, i32) {
    %c0_i32 = arith.constant 0 : i32
    return %arg1, %arg0 : i32, i32
  }
}

module attributes {stable_mosaic.version = 11 : i64} {
  func.func @_decoder_layer_kernel(%arg0: i32, %arg1: memref<1x8x128xf32, #tpu.memory_space<vmem>>, %arg2: memref<1x16x128xf32, #tpu.memory_space<vmem>>, %arg3: memref<128x384xbf16, #tpu.memory_space<vmem>>, %arg4: memref<1x384xf32, #tpu.memory_space<vmem>>, %arg5: memref<128x128xbf16, #tpu.memory_space<vmem>>, %arg6: memref<1x128xf32, #tpu.memory_space<vmem>>, %arg7: memref<1x128xf32, #tpu.memory_space<vmem>>, %arg8: memref<1x128xf32, #tpu.memory_space<vmem>>, %arg9: memref<128x128xbf16, #tpu.memory_space<vmem>>, %arg10: memref<1x128xf32, #tpu.memory_space<vmem>>, %arg11: memref<128x256xbf16, #tpu.memory_space<vmem>>, %arg12: memref<1x256xf32, #tpu.memory_space<vmem>>, %arg13: memref<128x128xbf16, #tpu.memory_space<vmem>>, %arg14: memref<1x128xf32, #tpu.memory_space<vmem>>, %arg15: memref<1x128xf32, #tpu.memory_space<vmem>>, %arg16: memref<1x128xf32, #tpu.memory_space<vmem>>, %arg17: memref<128x256xbf16, #tpu.memory_space<vmem>>, %arg18: memref<1x256xf32, #tpu.memory_space<vmem>>, %arg19: memref<256x128xbf16, #tpu.memory_space<vmem>>, %arg20: memref<1x128xf32, #tpu.memory_space<vmem>>, %arg21: memref<1x128xf32, #tpu.memory_space<vmem>>, %arg22: memref<1x128xf32, #tpu.memory_space<vmem>>, %arg23: memref<1x8x128xf32, #tpu.memory_space<vmem>>) attributes {dimension_semantics = [#tpu.dimension_semantics<parallel>], iteration_bounds = array<i64: 2>, scalar_prefetch = 0 : i64, scratch_operands = 0 : i64, tpu.core_type = #tpu.core_type<tc>, window_params = [{transform_indices = @transform_0, window_bounds = array<i64: 1, 8, 128>}, {transform_indices = @transform_1, window_bounds = array<i64: 1, 16, 128>}, {pipeline_mode = #tpu.pipeline_mode<synchronous>, transform_indices = @transform_2, window_bounds = array<i64: 128, 384>}, {pipeline_mode = #tpu.pipeline_mode<synchronous>, transform_indices = @transform_3, window_bounds = array<i64: 1, 384>}, {pipeline_mode = #tpu.pipeline_mode<synchronous>, transform_indices = @transform_4, window_bounds = array<i64: 128, 128>}, {pipeline_mode = #tpu.pipeline_mode<synchronous>, transform_indices = @transform_5, window_bounds = array<i64: 1, 128>}, {pipeline_mode = #tpu.pipeline_mode<synchronous>, transform_indices = @transform_6, window_bounds = array<i64: 1, 128>}, {pipeline_mode = #tpu.pipeline_mode<synchronous>, transform_indices = @transform_7, window_bounds = array<i64: 1, 128>}, {pipeline_mode = #tpu.pipeline_mode<synchronous>, transform_indices = @transform_8, window_bounds = array<i64: 128, 128>}, {pipeline_mode = #tpu.pipeline_mode<synchronous>, transform_indices = @transform_9, window_bounds = array<i64: 1, 128>}, {pipeline_mode = #tpu.pipeline_mode<synchronous>, transform_indices = @transform_10, window_bounds = array<i64: 128, 256>}, {pipeline_mode = #tpu.pipeline_mode<synchronous>, transform_indices = @transform_11, window_bounds = array<i64: 1, 256>}, {pipeline_mode = #tpu.pipeline_mode<synchronous>, transform_indices = @transform_12, window_bounds = array<i64: 128, 128>}, {pipeline_mode = #tpu.pipeline_mode<synchronous>, transform_indices = @transform_13, window_bounds = array<i64: 1, 128>}, {pipeline_mode = #tpu.pipeline_mode<synchronous>, transform_indices = @transform_14, window_bounds = array<i64: 1, 128>}, {pipeline_mode = #tpu.pipeline_mode<synchronous>, transform_indices = @transform_15, window_bounds = array<i64: 1, 128>}, {pipeline_mode = #tpu.pipeline_mode<synchronous>, transform_indices = @transform_16, window_bounds = array<i64: 128, 256>}, {pipeline_mode = #tpu.pipeline_mode<synchronous>, transform_indices = @transform_17, window_bounds = array<i64: 1, 256>}, {pipeline_mode = #tpu.pipeline_mode<synchronous>, transform_indices = @transform_18, window_bounds = array<i64: 256, 128>}, {pipeline_mode = #tpu.pipeline_mode<synchronous>, transform_indices = @transform_19, window_bounds = array<i64: 1, 128>}, {pipeline_mode = #tpu.pipeline_mode<synchronous>, transform_indices = @transform_20, window_bounds = array<i64: 1, 128>}, {pipeline_mode = #tpu.pipeline_mode<synchronous>, transform_indices = @transform_21, window_bounds = array<i64: 1, 128>}, {transform_indices = @transform_22, window_bounds = array<i64: 1, 8, 128>}]} {
    %c0 = arith.constant 0 : index
    %c0_0 = arith.constant 0 : index
    %c0_1 = arith.constant 0 : index
    %0 = vector.load %arg1[%c0, %c0_0, %c0_1] : memref<1x8x128xf32, #tpu.memory_space<vmem>>, vector<1x8x128xf32>
    %1 = vector.shape_cast %0 : vector<1x8x128xf32> to vector<8x128xf32>
    %2 = arith.truncf %1 : vector<8x128xf32> to vector<8x128xbf16>
    %c0_2 = arith.constant 0 : index
    %c0_3 = arith.constant 0 : index
    %3 = vector.load %arg3[%c0_2, %c0_3] : memref<128x384xbf16, #tpu.memory_space<vmem>>, vector<128x384xbf16>
    %cst = arith.constant dense<0.000000e+00> : vector<8x384xf32>
    %4 = tpu.matmul %2, %3, %cst {dimension_numbers = #tpu.dot_dimension_numbers<[1], [0], [0], [1], [0, 0, 1, 1], [], []>} : vector<8x128xbf16>, vector<128x384xbf16>, vector<8x384xf32> -> vector<8x384xf32>
    %c0_4 = arith.constant 0 : index
    %c0_5 = arith.constant 0 : index
    %5 = vector.load %arg4[%c0_4, %c0_5] : memref<1x384xf32, #tpu.memory_space<vmem>>, vector<1x384xf32>
    %6 = vector.broadcast %5 : vector<1x384xf32> to vector<8x384xf32>
    %7 = arith.addf %4, %6 : vector<8x384xf32>
    %8 = vector.extract_strided_slice %7 {offsets = [0, 0], sizes = [8, 128], strides = [1, 1]} : vector<8x384xf32> to vector<8x128xf32>
    %9 = vector.extract_strided_slice %7 {offsets = [0, 128], sizes = [8, 128], strides = [1, 1]} : vector<8x384xf32> to vector<8x128xf32>
    %10 = vector.extract_strided_slice %7 {offsets = [0, 256], sizes = [8, 128], strides = [1, 1]} : vector<8x384xf32> to vector<8x128xf32>
    %c0_6 = arith.constant 0 : index
    %c0_7 = arith.constant 0 : index
    %11 = vector.load %arg5[%c0_6, %c0_7] : memref<128x128xbf16, #tpu.memory_space<vmem>>, vector<128x128xbf16>
    %cst_8 = arith.constant 0.000000e+00 : f32
    %12 = vector.broadcast %cst_8 : f32 to vector<8x128xf32>
    %13 = vector.extract_strided_slice %8 {offsets = [0, 0], sizes = [8, 32], strides = [1, 1]} : vector<8x128xf32> to vector<8x32xf32>
    %cst_9 = arith.constant 0.176776692 : f32
    %14 = vector.broadcast %cst_9 : f32 to vector<8x32xf32>
    %15 = arith.mulf %13, %14 : vector<8x32xf32>
    %16 = arith.truncf %15 : vector<8x32xf32> to vector<8x32xbf16>
    %17 = vector.extract_strided_slice %9 {offsets = [0, 0], sizes = [8, 32], strides = [1, 1]} : vector<8x128xf32> to vector<8x32xf32>
    %18 = arith.truncf %17 : vector<8x32xf32> to vector<8x32xbf16>
    %19 = vector.extract_strided_slice %10 {offsets = [0, 0], sizes = [8, 32], strides = [1, 1]} : vector<8x128xf32> to vector<8x32xf32>
    %20 = arith.truncf %19 : vector<8x32xf32> to vector<8x32xbf16>
    %cst_10 = arith.constant dense<0.000000e+00> : vector<8x8xf32>
    %21 = tpu.matmul %16, %18, %cst_10 {dimension_numbers = #tpu.dot_dimension_numbers<[1], [1], [0], [0], [0, 0, 1, 0], [], []>} : vector<8x32xbf16>, vector<8x32xbf16>, vector<8x8xf32> -> vector<8x8xf32>
    %cst_11 = arith.constant dense<0xFF800000> : vector<8xf32>
    %22 = vector.multi_reduction <maximumf>, %21, %cst_11 [1] : vector<8x8xf32> to vector<8xf32>
    %23 = vector.shape_cast %22 : vector<8xf32> to vector<8x1xf32>
    %24 = vector.broadcast %23 : vector<8x1xf32> to vector<8x8xf32>
    %25 = arith.subf %21, %24 : vector<8x8xf32>
    %26 = math.exp %25 : vector<8x8xf32>
    %cst_12 = arith.constant dense<0.000000e+00> : vector<8xf32>
    %27 = vector.multi_reduction <add>, %26, %cst_12 [1] : vector<8x8xf32> to vector<8xf32>
    %28 = vector.shape_cast %27 : vector<8xf32> to vector<8x1xf32>
    %29 = tpu.reciprocal %28 {approx = true} : vector<8x1xf32> -> vector<8x1xf32>
    %30 = vector.broadcast %29 : vector<8x1xf32> to vector<8x8xf32>
    %31 = arith.mulf %26, %30 : vector<8x8xf32>
    %32 = arith.truncf %31 : vector<8x8xf32> to vector<8x8xbf16>
    %cst_13 = arith.constant dense<0.000000e+00> : vector<8x32xf32>
    %33 = tpu.matmul %32, %20, %cst_13 {dimension_numbers = #tpu.dot_dimension_numbers<[1], [0], [0], [1], [0, 0, 1, 1], [], []>} : vector<8x8xbf16>, vector<8x32xbf16>, vector<8x32xf32> -> vector<8x32xf32>
    %34 = arith.truncf %33 : vector<8x32xf32> to vector<8x32xbf16>
    %35 = vector.extract_strided_slice %11 {offsets = [0, 0], sizes = [32, 128], strides = [1, 1]} : vector<128x128xbf16> to vector<32x128xbf16>
    %cst_14 = arith.constant dense<0.000000e+00> : vector<8x128xf32>
    %36 = tpu.matmul %34, %35, %cst_14 {dimension_numbers = #tpu.dot_dimension_numbers<[1], [0], [0], [1], [0, 0, 1, 1], [], []>} : vector<8x32xbf16>, vector<32x128xbf16>, vector<8x128xf32> -> vector<8x128xf32>
    %37 = arith.addf %12, %36 : vector<8x128xf32>
    %38 = vector.extract_strided_slice %8 {offsets = [0, 32], sizes = [8, 32], strides = [1, 1]} : vector<8x128xf32> to vector<8x32xf32>
    %cst_15 = arith.constant 0.176776692 : f32
    %39 = vector.broadcast %cst_15 : f32 to vector<8x32xf32>
    %40 = arith.mulf %38, %39 : vector<8x32xf32>
    %41 = arith.truncf %40 : vector<8x32xf32> to vector<8x32xbf16>
    %42 = vector.extract_strided_slice %9 {offsets = [0, 32], sizes = [8, 32], strides = [1, 1]} : vector<8x128xf32> to vector<8x32xf32>
    %43 = arith.truncf %42 : vector<8x32xf32> to vector<8x32xbf16>
    %44 = vector.extract_strided_slice %10 {offsets = [0, 32], sizes = [8, 32], strides = [1, 1]} : vector<8x128xf32> to vector<8x32xf32>
    %45 = arith.truncf %44 : vector<8x32xf32> to vector<8x32xbf16>
    %cst_16 = arith.constant dense<0.000000e+00> : vector<8x8xf32>
    %46 = tpu.matmul %41, %43, %cst_16 {dimension_numbers = #tpu.dot_dimension_numbers<[1], [1], [0], [0], [0, 0, 1, 0], [], []>} : vector<8x32xbf16>, vector<8x32xbf16>, vector<8x8xf32> -> vector<8x8xf32>
    %cst_17 = arith.constant dense<0xFF800000> : vector<8xf32>
    %47 = vector.multi_reduction <maximumf>, %46, %cst_17 [1] : vector<8x8xf32> to vector<8xf32>
    %48 = vector.shape_cast %47 : vector<8xf32> to vector<8x1xf32>
    %49 = vector.broadcast %48 : vector<8x1xf32> to vector<8x8xf32>
    %50 = arith.subf %46, %49 : vector<8x8xf32>
    %51 = math.exp %50 : vector<8x8xf32>
    %cst_18 = arith.constant dense<0.000000e+00> : vector<8xf32>
    %52 = vector.multi_reduction <add>, %51, %cst_18 [1] : vector<8x8xf32> to vector<8xf32>
    %53 = vector.shape_cast %52 : vector<8xf32> to vector<8x1xf32>
    %54 = tpu.reciprocal %53 {approx = true} : vector<8x1xf32> -> vector<8x1xf32>
    %55 = vector.broadcast %54 : vector<8x1xf32> to vector<8x8xf32>
    %56 = arith.mulf %51, %55 : vector<8x8xf32>
    %57 = arith.truncf %56 : vector<8x8xf32> to vector<8x8xbf16>
    %cst_19 = arith.constant dense<0.000000e+00> : vector<8x32xf32>
    %58 = tpu.matmul %57, %45, %cst_19 {dimension_numbers = #tpu.dot_dimension_numbers<[1], [0], [0], [1], [0, 0, 1, 1], [], []>} : vector<8x8xbf16>, vector<8x32xbf16>, vector<8x32xf32> -> vector<8x32xf32>
    %59 = arith.truncf %58 : vector<8x32xf32> to vector<8x32xbf16>
    %60 = vector.extract_strided_slice %11 {offsets = [32, 0], sizes = [32, 128], strides = [1, 1]} : vector<128x128xbf16> to vector<32x128xbf16>
    %cst_20 = arith.constant dense<0.000000e+00> : vector<8x128xf32>
    %61 = tpu.matmul %59, %60, %cst_20 {dimension_numbers = #tpu.dot_dimension_numbers<[1], [0], [0], [1], [0, 0, 1, 1], [], []>} : vector<8x32xbf16>, vector<32x128xbf16>, vector<8x128xf32> -> vector<8x128xf32>
    %62 = arith.addf %37, %61 : vector<8x128xf32>
    %63 = vector.extract_strided_slice %8 {offsets = [0, 64], sizes = [8, 32], strides = [1, 1]} : vector<8x128xf32> to vector<8x32xf32>
    %cst_21 = arith.constant 0.176776692 : f32
    %64 = vector.broadcast %cst_21 : f32 to vector<8x32xf32>
    %65 = arith.mulf %63, %64 : vector<8x32xf32>
    %66 = arith.truncf %65 : vector<8x32xf32> to vector<8x32xbf16>
    %67 = vector.extract_strided_slice %9 {offsets = [0, 64], sizes = [8, 32], strides = [1, 1]} : vector<8x128xf32> to vector<8x32xf32>
    %68 = arith.truncf %67 : vector<8x32xf32> to vector<8x32xbf16>
    %69 = vector.extract_strided_slice %10 {offsets = [0, 64], sizes = [8, 32], strides = [1, 1]} : vector<8x128xf32> to vector<8x32xf32>
    %70 = arith.truncf %69 : vector<8x32xf32> to vector<8x32xbf16>
    %cst_22 = arith.constant dense<0.000000e+00> : vector<8x8xf32>
    %71 = tpu.matmul %66, %68, %cst_22 {dimension_numbers = #tpu.dot_dimension_numbers<[1], [1], [0], [0], [0, 0, 1, 0], [], []>} : vector<8x32xbf16>, vector<8x32xbf16>, vector<8x8xf32> -> vector<8x8xf32>
    %cst_23 = arith.constant dense<0xFF800000> : vector<8xf32>
    %72 = vector.multi_reduction <maximumf>, %71, %cst_23 [1] : vector<8x8xf32> to vector<8xf32>
    %73 = vector.shape_cast %72 : vector<8xf32> to vector<8x1xf32>
    %74 = vector.broadcast %73 : vector<8x1xf32> to vector<8x8xf32>
    %75 = arith.subf %71, %74 : vector<8x8xf32>
    %76 = math.exp %75 : vector<8x8xf32>
    %cst_24 = arith.constant dense<0.000000e+00> : vector<8xf32>
    %77 = vector.multi_reduction <add>, %76, %cst_24 [1] : vector<8x8xf32> to vector<8xf32>
    %78 = vector.shape_cast %77 : vector<8xf32> to vector<8x1xf32>
    %79 = tpu.reciprocal %78 {approx = true} : vector<8x1xf32> -> vector<8x1xf32>
    %80 = vector.broadcast %79 : vector<8x1xf32> to vector<8x8xf32>
    %81 = arith.mulf %76, %80 : vector<8x8xf32>
    %82 = arith.truncf %81 : vector<8x8xf32> to vector<8x8xbf16>
    %cst_25 = arith.constant dense<0.000000e+00> : vector<8x32xf32>
    %83 = tpu.matmul %82, %70, %cst_25 {dimension_numbers = #tpu.dot_dimension_numbers<[1], [0], [0], [1], [0, 0, 1, 1], [], []>} : vector<8x8xbf16>, vector<8x32xbf16>, vector<8x32xf32> -> vector<8x32xf32>
    %84 = arith.truncf %83 : vector<8x32xf32> to vector<8x32xbf16>
    %85 = vector.extract_strided_slice %11 {offsets = [64, 0], sizes = [32, 128], strides = [1, 1]} : vector<128x128xbf16> to vector<32x128xbf16>
    %cst_26 = arith.constant dense<0.000000e+00> : vector<8x128xf32>
    %86 = tpu.matmul %84, %85, %cst_26 {dimension_numbers = #tpu.dot_dimension_numbers<[1], [0], [0], [1], [0, 0, 1, 1], [], []>} : vector<8x32xbf16>, vector<32x128xbf16>, vector<8x128xf32> -> vector<8x128xf32>
    %87 = arith.addf %62, %86 : vector<8x128xf32>
    %88 = vector.extract_strided_slice %8 {offsets = [0, 96], sizes = [8, 32], strides = [1, 1]} : vector<8x128xf32> to vector<8x32xf32>
    %cst_27 = arith.constant 0.176776692 : f32
    %89 = vector.broadcast %cst_27 : f32 to vector<8x32xf32>
    %90 = arith.mulf %88, %89 : vector<8x32xf32>
    %91 = arith.truncf %90 : vector<8x32xf32> to vector<8x32xbf16>
    %92 = vector.extract_strided_slice %9 {offsets = [0, 96], sizes = [8, 32], strides = [1, 1]} : vector<8x128xf32> to vector<8x32xf32>
    %93 = arith.truncf %92 : vector<8x32xf32> to vector<8x32xbf16>
    %94 = vector.extract_strided_slice %10 {offsets = [0, 96], sizes = [8, 32], strides = [1, 1]} : vector<8x128xf32> to vector<8x32xf32>
    %95 = arith.truncf %94 : vector<8x32xf32> to vector<8x32xbf16>
    %cst_28 = arith.constant dense<0.000000e+00> : vector<8x8xf32>
    %96 = tpu.matmul %91, %93, %cst_28 {dimension_numbers = #tpu.dot_dimension_numbers<[1], [1], [0], [0], [0, 0, 1, 0], [], []>} : vector<8x32xbf16>, vector<8x32xbf16>, vector<8x8xf32> -> vector<8x8xf32>
    %cst_29 = arith.constant dense<0xFF800000> : vector<8xf32>
    %97 = vector.multi_reduction <maximumf>, %96, %cst_29 [1] : vector<8x8xf32> to vector<8xf32>
    %98 = vector.shape_cast %97 : vector<8xf32> to vector<8x1xf32>
    %99 = vector.broadcast %98 : vector<8x1xf32> to vector<8x8xf32>
    %100 = arith.subf %96, %99 : vector<8x8xf32>
    %101 = math.exp %100 : vector<8x8xf32>
    %cst_30 = arith.constant dense<0.000000e+00> : vector<8xf32>
    %102 = vector.multi_reduction <add>, %101, %cst_30 [1] : vector<8x8xf32> to vector<8xf32>
    %103 = vector.shape_cast %102 : vector<8xf32> to vector<8x1xf32>
    %104 = tpu.reciprocal %103 {approx = true} : vector<8x1xf32> -> vector<8x1xf32>
    %105 = vector.broadcast %104 : vector<8x1xf32> to vector<8x8xf32>
    %106 = arith.mulf %101, %105 : vector<8x8xf32>
    %107 = arith.truncf %106 : vector<8x8xf32> to vector<8x8xbf16>
    %cst_31 = arith.constant dense<0.000000e+00> : vector<8x32xf32>
    %108 = tpu.matmul %107, %95, %cst_31 {dimension_numbers = #tpu.dot_dimension_numbers<[1], [0], [0], [1], [0, 0, 1, 1], [], []>} : vector<8x8xbf16>, vector<8x32xbf16>, vector<8x32xf32> -> vector<8x32xf32>
    %109 = arith.truncf %108 : vector<8x32xf32> to vector<8x32xbf16>
    %110 = vector.extract_strided_slice %11 {offsets = [96, 0], sizes = [32, 128], strides = [1, 1]} : vector<128x128xbf16> to vector<32x128xbf16>
    %cst_32 = arith.constant dense<0.000000e+00> : vector<8x128xf32>
    %111 = tpu.matmul %109, %110, %cst_32 {dimension_numbers = #tpu.dot_dimension_numbers<[1], [0], [0], [1], [0, 0, 1, 1], [], []>} : vector<8x32xbf16>, vector<32x128xbf16>, vector<8x128xf32> -> vector<8x128xf32>
    %112 = arith.addf %87, %111 : vector<8x128xf32>
    %c0_33 = arith.constant 0 : index
    %c0_34 = arith.constant 0 : index
    %113 = vector.load %arg6[%c0_33, %c0_34] : memref<1x128xf32, #tpu.memory_space<vmem>>, vector<1x128xf32>
    %114 = vector.broadcast %113 : vector<1x128xf32> to vector<8x128xf32>
    %115 = arith.addf %112, %114 : vector<8x128xf32>
    %116 = arith.addf %1, %115 : vector<8x128xf32>
    %c0_35 = arith.constant 0 : index
    %c0_36 = arith.constant 0 : index
    %117 = vector.load %arg7[%c0_35, %c0_36] : memref<1x128xf32, #tpu.memory_space<vmem>>, vector<1x128xf32>
    %c0_37 = arith.constant 0 : index
    %c0_38 = arith.constant 0 : index
    %118 = vector.load %arg8[%c0_37, %c0_38] : memref<1x128xf32, #tpu.memory_space<vmem>>, vector<1x128xf32>
    %cst_39 = arith.constant dense<0.000000e+00> : vector<8xf32>
    %119 = vector.multi_reduction <add>, %116, %cst_39 [1] : vector<8x128xf32> to vector<8xf32>
    %120 = vector.shape_cast %119 : vector<8xf32> to vector<8x1xf32>
    %cst_40 = arith.constant 1.280000e+02 : f32
    %121 = vector.broadcast %cst_40 : f32 to vector<8x1xf32>
    %122 = arith.divf %120, %121 : vector<8x1xf32>
    %123 = vector.broadcast %122 : vector<8x1xf32> to vector<8x128xf32>
    %124 = arith.subf %116, %123 : vector<8x128xf32>
    %125 = arith.mulf %124, %124 : vector<8x128xf32>
    %cst_41 = arith.constant dense<0.000000e+00> : vector<8xf32>
    %126 = vector.multi_reduction <add>, %125, %cst_41 [1] : vector<8x128xf32> to vector<8xf32>
    %127 = vector.shape_cast %126 : vector<8xf32> to vector<8x1xf32>
    %cst_42 = arith.constant 1.280000e+02 : f32
    %128 = vector.broadcast %cst_42 : f32 to vector<8x1xf32>
    %129 = arith.divf %127, %128 : vector<8x1xf32>
    %130 = vector.broadcast %122 : vector<8x1xf32> to vector<8x128xf32>
    %131 = arith.subf %116, %130 : vector<8x128xf32>
    %cst_43 = arith.constant 9.99999974E-6 : f32
    %132 = vector.broadcast %cst_43 : f32 to vector<8x1xf32>
    %133 = arith.addf %129, %132 : vector<8x1xf32>
    %134 = math.rsqrt %133 : vector<8x1xf32>
    %135 = vector.broadcast %134 : vector<8x1xf32> to vector<8x128xf32>
    %136 = arith.mulf %131, %135 : vector<8x128xf32>
    %137 = vector.broadcast %117 : vector<1x128xf32> to vector<8x128xf32>
    %138 = arith.mulf %136, %137 : vector<8x128xf32>
    %139 = vector.broadcast %118 : vector<1x128xf32> to vector<8x128xf32>
    %140 = arith.addf %138, %139 : vector<8x128xf32>
    %c0_44 = arith.constant 0 : index
    %c0_45 = arith.constant 0 : index
    %c0_46 = arith.constant 0 : index
    %141 = vector.load %arg2[%c0_44, %c0_45, %c0_46] : memref<1x16x128xf32, #tpu.memory_space<vmem>>, vector<1x16x128xf32>
    %142 = vector.shape_cast %141 : vector<1x16x128xf32> to vector<16x128xf32>
    %143 = arith.truncf %140 : vector<8x128xf32> to vector<8x128xbf16>
    %c0_47 = arith.constant 0 : index
    %c0_48 = arith.constant 0 : index
    %144 = vector.load %arg9[%c0_47, %c0_48] : memref<128x128xbf16, #tpu.memory_space<vmem>>, vector<128x128xbf16>
    %cst_49 = arith.constant dense<0.000000e+00> : vector<8x128xf32>
    %145 = tpu.matmul %143, %144, %cst_49 {dimension_numbers = #tpu.dot_dimension_numbers<[1], [0], [0], [1], [0, 0, 1, 1], [], []>} : vector<8x128xbf16>, vector<128x128xbf16>, vector<8x128xf32> -> vector<8x128xf32>
    %c0_50 = arith.constant 0 : index
    %c0_51 = arith.constant 0 : index
    %146 = vector.load %arg10[%c0_50, %c0_51] : memref<1x128xf32, #tpu.memory_space<vmem>>, vector<1x128xf32>
    %147 = vector.broadcast %146 : vector<1x128xf32> to vector<8x128xf32>
    %148 = arith.addf %145, %147 : vector<8x128xf32>
    %149 = arith.truncf %142 : vector<16x128xf32> to vector<16x128xbf16>
    %c0_52 = arith.constant 0 : index
    %c0_53 = arith.constant 0 : index
    %150 = vector.load %arg11[%c0_52, %c0_53] : memref<128x256xbf16, #tpu.memory_space<vmem>>, vector<128x256xbf16>
    %cst_54 = arith.constant dense<0.000000e+00> : vector<16x256xf32>
    %151 = tpu.matmul %149, %150, %cst_54 {dimension_numbers = #tpu.dot_dimension_numbers<[1], [0], [0], [1], [0, 0, 1, 1], [], []>} : vector<16x128xbf16>, vector<128x256xbf16>, vector<16x256xf32> -> vector<16x256xf32>
    %c0_55 = arith.constant 0 : index
    %c0_56 = arith.constant 0 : index
    %152 = vector.load %arg12[%c0_55, %c0_56] : memref<1x256xf32, #tpu.memory_space<vmem>>, vector<1x256xf32>
    %153 = vector.broadcast %152 : vector<1x256xf32> to vector<16x256xf32>
    %154 = arith.addf %151, %153 : vector<16x256xf32>
    %155 = vector.extract_strided_slice %154 {offsets = [0, 0], sizes = [16, 128], strides = [1, 1]} : vector<16x256xf32> to vector<16x128xf32>
    %156 = vector.extract_strided_slice %154 {offsets = [0, 128], sizes = [16, 128], strides = [1, 1]} : vector<16x256xf32> to vector<16x128xf32>
    %c0_57 = arith.constant 0 : index
    %c0_58 = arith.constant 0 : index
    %157 = vector.load %arg13[%c0_57, %c0_58] : memref<128x128xbf16, #tpu.memory_space<vmem>>, vector<128x128xbf16>
    %158 = tpu.iota {dimensions = array<i32: 1>} : vector<8x16xi32>
    %c12_i32 = arith.constant 12 : i32
    %159 = vector.broadcast %c12_i32 : i32 to vector<8x16xi32>
    %160 = arith.cmpi slt, %158, %159 : vector<8x16xi32>
    %cst_59 = arith.constant 0.000000e+00 : f32
    %cst_60 = arith.constant -1.000000e+30 : f32
    %161 = vector.broadcast %cst_59 : f32 to vector<8x16xf32>
    %162 = vector.broadcast %cst_60 : f32 to vector<8x16xf32>
    %163 = arith.select %160, %161, %162 : vector<8x16xi1>, vector<8x16xf32>
    %cst_61 = arith.constant 0.000000e+00 : f32
    %164 = vector.broadcast %cst_61 : f32 to vector<8x128xf32>
    %165 = vector.extract_strided_slice %148 {offsets = [0, 0], sizes = [8, 32], strides = [1, 1]} : vector<8x128xf32> to vector<8x32xf32>
    %cst_62 = arith.constant 0.176776692 : f32
    %166 = vector.broadcast %cst_62 : f32 to vector<8x32xf32>
    %167 = arith.mulf %165, %166 : vector<8x32xf32>
    %168 = arith.truncf %167 : vector<8x32xf32> to vector<8x32xbf16>
    %169 = vector.extract_strided_slice %155 {offsets = [0, 0], sizes = [16, 32], strides = [1, 1]} : vector<16x128xf32> to vector<16x32xf32>
    %170 = arith.truncf %169 : vector<16x32xf32> to vector<16x32xbf16>
    %171 = vector.extract_strided_slice %156 {offsets = [0, 0], sizes = [16, 32], strides = [1, 1]} : vector<16x128xf32> to vector<16x32xf32>
    %172 = arith.truncf %171 : vector<16x32xf32> to vector<16x32xbf16>
    %cst_63 = arith.constant dense<0.000000e+00> : vector<8x16xf32>
    %173 = tpu.matmul %168, %170, %cst_63 {dimension_numbers = #tpu.dot_dimension_numbers<[1], [1], [0], [0], [0, 0, 1, 0], [], []>} : vector<8x32xbf16>, vector<16x32xbf16>, vector<8x16xf32> -> vector<8x16xf32>
    %174 = arith.addf %173, %163 : vector<8x16xf32>
    %cst_64 = arith.constant dense<0xFF800000> : vector<8xf32>
    %175 = vector.multi_reduction <maximumf>, %174, %cst_64 [1] : vector<8x16xf32> to vector<8xf32>
    %176 = vector.shape_cast %175 : vector<8xf32> to vector<8x1xf32>
    %177 = vector.broadcast %176 : vector<8x1xf32> to vector<8x16xf32>
    %178 = arith.subf %174, %177 : vector<8x16xf32>
    %179 = math.exp %178 : vector<8x16xf32>
    %cst_65 = arith.constant dense<0.000000e+00> : vector<8xf32>
    %180 = vector.multi_reduction <add>, %179, %cst_65 [1] : vector<8x16xf32> to vector<8xf32>
    %181 = vector.shape_cast %180 : vector<8xf32> to vector<8x1xf32>
    %182 = tpu.reciprocal %181 {approx = true} : vector<8x1xf32> -> vector<8x1xf32>
    %183 = vector.broadcast %182 : vector<8x1xf32> to vector<8x16xf32>
    %184 = arith.mulf %179, %183 : vector<8x16xf32>
    %185 = arith.truncf %184 : vector<8x16xf32> to vector<8x16xbf16>
    %cst_66 = arith.constant dense<0.000000e+00> : vector<8x32xf32>
    %186 = tpu.matmul %185, %172, %cst_66 {dimension_numbers = #tpu.dot_dimension_numbers<[1], [0], [0], [1], [0, 0, 1, 1], [], []>} : vector<8x16xbf16>, vector<16x32xbf16>, vector<8x32xf32> -> vector<8x32xf32>
    %187 = arith.truncf %186 : vector<8x32xf32> to vector<8x32xbf16>
    %188 = vector.extract_strided_slice %157 {offsets = [0, 0], sizes = [32, 128], strides = [1, 1]} : vector<128x128xbf16> to vector<32x128xbf16>
    %cst_67 = arith.constant dense<0.000000e+00> : vector<8x128xf32>
    %189 = tpu.matmul %187, %188, %cst_67 {dimension_numbers = #tpu.dot_dimension_numbers<[1], [0], [0], [1], [0, 0, 1, 1], [], []>} : vector<8x32xbf16>, vector<32x128xbf16>, vector<8x128xf32> -> vector<8x128xf32>
    %190 = arith.addf %164, %189 : vector<8x128xf32>
    %191 = vector.extract_strided_slice %148 {offsets = [0, 32], sizes = [8, 32], strides = [1, 1]} : vector<8x128xf32> to vector<8x32xf32>
    %cst_68 = arith.constant 0.176776692 : f32
    %192 = vector.broadcast %cst_68 : f32 to vector<8x32xf32>
    %193 = arith.mulf %191, %192 : vector<8x32xf32>
    %194 = arith.truncf %193 : vector<8x32xf32> to vector<8x32xbf16>
    %195 = vector.extract_strided_slice %155 {offsets = [0, 32], sizes = [16, 32], strides = [1, 1]} : vector<16x128xf32> to vector<16x32xf32>
    %196 = arith.truncf %195 : vector<16x32xf32> to vector<16x32xbf16>
    %197 = vector.extract_strided_slice %156 {offsets = [0, 32], sizes = [16, 32], strides = [1, 1]} : vector<16x128xf32> to vector<16x32xf32>
    %198 = arith.truncf %197 : vector<16x32xf32> to vector<16x32xbf16>
    %cst_69 = arith.constant dense<0.000000e+00> : vector<8x16xf32>
    %199 = tpu.matmul %194, %196, %cst_69 {dimension_numbers = #tpu.dot_dimension_numbers<[1], [1], [0], [0], [0, 0, 1, 0], [], []>} : vector<8x32xbf16>, vector<16x32xbf16>, vector<8x16xf32> -> vector<8x16xf32>
    %200 = arith.addf %199, %163 : vector<8x16xf32>
    %cst_70 = arith.constant dense<0xFF800000> : vector<8xf32>
    %201 = vector.multi_reduction <maximumf>, %200, %cst_70 [1] : vector<8x16xf32> to vector<8xf32>
    %202 = vector.shape_cast %201 : vector<8xf32> to vector<8x1xf32>
    %203 = vector.broadcast %202 : vector<8x1xf32> to vector<8x16xf32>
    %204 = arith.subf %200, %203 : vector<8x16xf32>
    %205 = math.exp %204 : vector<8x16xf32>
    %cst_71 = arith.constant dense<0.000000e+00> : vector<8xf32>
    %206 = vector.multi_reduction <add>, %205, %cst_71 [1] : vector<8x16xf32> to vector<8xf32>
    %207 = vector.shape_cast %206 : vector<8xf32> to vector<8x1xf32>
    %208 = tpu.reciprocal %207 {approx = true} : vector<8x1xf32> -> vector<8x1xf32>
    %209 = vector.broadcast %208 : vector<8x1xf32> to vector<8x16xf32>
    %210 = arith.mulf %205, %209 : vector<8x16xf32>
    %211 = arith.truncf %210 : vector<8x16xf32> to vector<8x16xbf16>
    %cst_72 = arith.constant dense<0.000000e+00> : vector<8x32xf32>
    %212 = tpu.matmul %211, %198, %cst_72 {dimension_numbers = #tpu.dot_dimension_numbers<[1], [0], [0], [1], [0, 0, 1, 1], [], []>} : vector<8x16xbf16>, vector<16x32xbf16>, vector<8x32xf32> -> vector<8x32xf32>
    %213 = arith.truncf %212 : vector<8x32xf32> to vector<8x32xbf16>
    %214 = vector.extract_strided_slice %157 {offsets = [32, 0], sizes = [32, 128], strides = [1, 1]} : vector<128x128xbf16> to vector<32x128xbf16>
    %cst_73 = arith.constant dense<0.000000e+00> : vector<8x128xf32>
    %215 = tpu.matmul %213, %214, %cst_73 {dimension_numbers = #tpu.dot_dimension_numbers<[1], [0], [0], [1], [0, 0, 1, 1], [], []>} : vector<8x32xbf16>, vector<32x128xbf16>, vector<8x128xf32> -> vector<8x128xf32>
    %216 = arith.addf %190, %215 : vector<8x128xf32>
    %217 = vector.extract_strided_slice %148 {offsets = [0, 64], sizes = [8, 32], strides = [1, 1]} : vector<8x128xf32> to vector<8x32xf32>
    %cst_74 = arith.constant 0.176776692 : f32
    %218 = vector.broadcast %cst_74 : f32 to vector<8x32xf32>
    %219 = arith.mulf %217, %218 : vector<8x32xf32>
    %220 = arith.truncf %219 : vector<8x32xf32> to vector<8x32xbf16>
    %221 = vector.extract_strided_slice %155 {offsets = [0, 64], sizes = [16, 32], strides = [1, 1]} : vector<16x128xf32> to vector<16x32xf32>
    %222 = arith.truncf %221 : vector<16x32xf32> to vector<16x32xbf16>
    %223 = vector.extract_strided_slice %156 {offsets = [0, 64], sizes = [16, 32], strides = [1, 1]} : vector<16x128xf32> to vector<16x32xf32>
    %224 = arith.truncf %223 : vector<16x32xf32> to vector<16x32xbf16>
    %cst_75 = arith.constant dense<0.000000e+00> : vector<8x16xf32>
    %225 = tpu.matmul %220, %222, %cst_75 {dimension_numbers = #tpu.dot_dimension_numbers<[1], [1], [0], [0], [0, 0, 1, 0], [], []>} : vector<8x32xbf16>, vector<16x32xbf16>, vector<8x16xf32> -> vector<8x16xf32>
    %226 = arith.addf %225, %163 : vector<8x16xf32>
    %cst_76 = arith.constant dense<0xFF800000> : vector<8xf32>
    %227 = vector.multi_reduction <maximumf>, %226, %cst_76 [1] : vector<8x16xf32> to vector<8xf32>
    %228 = vector.shape_cast %227 : vector<8xf32> to vector<8x1xf32>
    %229 = vector.broadcast %228 : vector<8x1xf32> to vector<8x16xf32>
    %230 = arith.subf %226, %229 : vector<8x16xf32>
    %231 = math.exp %230 : vector<8x16xf32>
    %cst_77 = arith.constant dense<0.000000e+00> : vector<8xf32>
    %232 = vector.multi_reduction <add>, %231, %cst_77 [1] : vector<8x16xf32> to vector<8xf32>
    %233 = vector.shape_cast %232 : vector<8xf32> to vector<8x1xf32>
    %234 = tpu.reciprocal %233 {approx = true} : vector<8x1xf32> -> vector<8x1xf32>
    %235 = vector.broadcast %234 : vector<8x1xf32> to vector<8x16xf32>
    %236 = arith.mulf %231, %235 : vector<8x16xf32>
    %237 = arith.truncf %236 : vector<8x16xf32> to vector<8x16xbf16>
    %cst_78 = arith.constant dense<0.000000e+00> : vector<8x32xf32>
    %238 = tpu.matmul %237, %224, %cst_78 {dimension_numbers = #tpu.dot_dimension_numbers<[1], [0], [0], [1], [0, 0, 1, 1], [], []>} : vector<8x16xbf16>, vector<16x32xbf16>, vector<8x32xf32> -> vector<8x32xf32>
    %239 = arith.truncf %238 : vector<8x32xf32> to vector<8x32xbf16>
    %240 = vector.extract_strided_slice %157 {offsets = [64, 0], sizes = [32, 128], strides = [1, 1]} : vector<128x128xbf16> to vector<32x128xbf16>
    %cst_79 = arith.constant dense<0.000000e+00> : vector<8x128xf32>
    %241 = tpu.matmul %239, %240, %cst_79 {dimension_numbers = #tpu.dot_dimension_numbers<[1], [0], [0], [1], [0, 0, 1, 1], [], []>} : vector<8x32xbf16>, vector<32x128xbf16>, vector<8x128xf32> -> vector<8x128xf32>
    %242 = arith.addf %216, %241 : vector<8x128xf32>
    %243 = vector.extract_strided_slice %148 {offsets = [0, 96], sizes = [8, 32], strides = [1, 1]} : vector<8x128xf32> to vector<8x32xf32>
    %cst_80 = arith.constant 0.176776692 : f32
    %244 = vector.broadcast %cst_80 : f32 to vector<8x32xf32>
    %245 = arith.mulf %243, %244 : vector<8x32xf32>
    %246 = arith.truncf %245 : vector<8x32xf32> to vector<8x32xbf16>
    %247 = vector.extract_strided_slice %155 {offsets = [0, 96], sizes = [16, 32], strides = [1, 1]} : vector<16x128xf32> to vector<16x32xf32>
    %248 = arith.truncf %247 : vector<16x32xf32> to vector<16x32xbf16>
    %249 = vector.extract_strided_slice %156 {offsets = [0, 96], sizes = [16, 32], strides = [1, 1]} : vector<16x128xf32> to vector<16x32xf32>
    %250 = arith.truncf %249 : vector<16x32xf32> to vector<16x32xbf16>
    %cst_81 = arith.constant dense<0.000000e+00> : vector<8x16xf32>
    %251 = tpu.matmul %246, %248, %cst_81 {dimension_numbers = #tpu.dot_dimension_numbers<[1], [1], [0], [0], [0, 0, 1, 0], [], []>} : vector<8x32xbf16>, vector<16x32xbf16>, vector<8x16xf32> -> vector<8x16xf32>
    %252 = arith.addf %251, %163 : vector<8x16xf32>
    %cst_82 = arith.constant dense<0xFF800000> : vector<8xf32>
    %253 = vector.multi_reduction <maximumf>, %252, %cst_82 [1] : vector<8x16xf32> to vector<8xf32>
    %254 = vector.shape_cast %253 : vector<8xf32> to vector<8x1xf32>
    %255 = vector.broadcast %254 : vector<8x1xf32> to vector<8x16xf32>
    %256 = arith.subf %252, %255 : vector<8x16xf32>
    %257 = math.exp %256 : vector<8x16xf32>
    %cst_83 = arith.constant dense<0.000000e+00> : vector<8xf32>
    %258 = vector.multi_reduction <add>, %257, %cst_83 [1] : vector<8x16xf32> to vector<8xf32>
    %259 = vector.shape_cast %258 : vector<8xf32> to vector<8x1xf32>
    %260 = tpu.reciprocal %259 {approx = true} : vector<8x1xf32> -> vector<8x1xf32>
    %261 = vector.broadcast %260 : vector<8x1xf32> to vector<8x16xf32>
    %262 = arith.mulf %257, %261 : vector<8x16xf32>
    %263 = arith.truncf %262 : vector<8x16xf32> to vector<8x16xbf16>
    %cst_84 = arith.constant dense<0.000000e+00> : vector<8x32xf32>
    %264 = tpu.matmul %263, %250, %cst_84 {dimension_numbers = #tpu.dot_dimension_numbers<[1], [0], [0], [1], [0, 0, 1, 1], [], []>} : vector<8x16xbf16>, vector<16x32xbf16>, vector<8x32xf32> -> vector<8x32xf32>
    %265 = arith.truncf %264 : vector<8x32xf32> to vector<8x32xbf16>
    %266 = vector.extract_strided_slice %157 {offsets = [96, 0], sizes = [32, 128], strides = [1, 1]} : vector<128x128xbf16> to vector<32x128xbf16>
    %cst_85 = arith.constant dense<0.000000e+00> : vector<8x128xf32>
    %267 = tpu.matmul %265, %266, %cst_85 {dimension_numbers = #tpu.dot_dimension_numbers<[1], [0], [0], [1], [0, 0, 1, 1], [], []>} : vector<8x32xbf16>, vector<32x128xbf16>, vector<8x128xf32> -> vector<8x128xf32>
    %268 = arith.addf %242, %267 : vector<8x128xf32>
    %c0_86 = arith.constant 0 : index
    %c0_87 = arith.constant 0 : index
    %269 = vector.load %arg14[%c0_86, %c0_87] : memref<1x128xf32, #tpu.memory_space<vmem>>, vector<1x128xf32>
    %270 = vector.broadcast %269 : vector<1x128xf32> to vector<8x128xf32>
    %271 = arith.addf %268, %270 : vector<8x128xf32>
    %272 = arith.addf %140, %271 : vector<8x128xf32>
    %c0_88 = arith.constant 0 : index
    %c0_89 = arith.constant 0 : index
    %273 = vector.load %arg15[%c0_88, %c0_89] : memref<1x128xf32, #tpu.memory_space<vmem>>, vector<1x128xf32>
    %c0_90 = arith.constant 0 : index
    %c0_91 = arith.constant 0 : index
    %274 = vector.load %arg16[%c0_90, %c0_91] : memref<1x128xf32, #tpu.memory_space<vmem>>, vector<1x128xf32>
    %cst_92 = arith.constant dense<0.000000e+00> : vector<8xf32>
    %275 = vector.multi_reduction <add>, %272, %cst_92 [1] : vector<8x128xf32> to vector<8xf32>
    %276 = vector.shape_cast %275 : vector<8xf32> to vector<8x1xf32>
    %cst_93 = arith.constant 1.280000e+02 : f32
    %277 = vector.broadcast %cst_93 : f32 to vector<8x1xf32>
    %278 = arith.divf %276, %277 : vector<8x1xf32>
    %279 = vector.broadcast %278 : vector<8x1xf32> to vector<8x128xf32>
    %280 = arith.subf %272, %279 : vector<8x128xf32>
    %281 = arith.mulf %280, %280 : vector<8x128xf32>
    %cst_94 = arith.constant dense<0.000000e+00> : vector<8xf32>
    %282 = vector.multi_reduction <add>, %281, %cst_94 [1] : vector<8x128xf32> to vector<8xf32>
    %283 = vector.shape_cast %282 : vector<8xf32> to vector<8x1xf32>
    %cst_95 = arith.constant 1.280000e+02 : f32
    %284 = vector.broadcast %cst_95 : f32 to vector<8x1xf32>
    %285 = arith.divf %283, %284 : vector<8x1xf32>
    %286 = vector.broadcast %278 : vector<8x1xf32> to vector<8x128xf32>
    %287 = arith.subf %272, %286 : vector<8x128xf32>
    %cst_96 = arith.constant 9.99999974E-6 : f32
    %288 = vector.broadcast %cst_96 : f32 to vector<8x1xf32>
    %289 = arith.addf %285, %288 : vector<8x1xf32>
    %290 = math.rsqrt %289 : vector<8x1xf32>
    %291 = vector.broadcast %290 : vector<8x1xf32> to vector<8x128xf32>
    %292 = arith.mulf %287, %291 : vector<8x128xf32>
    %293 = vector.broadcast %273 : vector<1x128xf32> to vector<8x128xf32>
    %294 = arith.mulf %292, %293 : vector<8x128xf32>
    %295 = vector.broadcast %274 : vector<1x128xf32> to vector<8x128xf32>
    %296 = arith.addf %294, %295 : vector<8x128xf32>
    %297 = arith.truncf %296 : vector<8x128xf32> to vector<8x128xbf16>
    %c0_97 = arith.constant 0 : index
    %c0_98 = arith.constant 0 : index
    %298 = vector.load %arg17[%c0_97, %c0_98] : memref<128x256xbf16, #tpu.memory_space<vmem>>, vector<128x256xbf16>
    %cst_99 = arith.constant dense<0.000000e+00> : vector<8x256xf32>
    %299 = tpu.matmul %297, %298, %cst_99 {dimension_numbers = #tpu.dot_dimension_numbers<[1], [0], [0], [1], [0, 0, 1, 1], [], []>} : vector<8x128xbf16>, vector<128x256xbf16>, vector<8x256xf32> -> vector<8x256xf32>
    %c0_100 = arith.constant 0 : index
    %c0_101 = arith.constant 0 : index
    %300 = vector.load %arg18[%c0_100, %c0_101] : memref<1x256xf32, #tpu.memory_space<vmem>>, vector<1x256xf32>
    %301 = vector.broadcast %300 : vector<1x256xf32> to vector<8x256xf32>
    %302 = arith.addf %299, %301 : vector<8x256xf32>
    %cst_102 = arith.constant 0.000000e+00 : f32
    %303 = vector.broadcast %cst_102 : f32 to vector<8x256xf32>
    %304 = arith.maximumf %302, %303 : vector<8x256xf32>
    %305 = arith.truncf %304 : vector<8x256xf32> to vector<8x256xbf16>
    %c0_103 = arith.constant 0 : index
    %c0_104 = arith.constant 0 : index
    %306 = vector.load %arg19[%c0_103, %c0_104] : memref<256x128xbf16, #tpu.memory_space<vmem>>, vector<256x128xbf16>
    %cst_105 = arith.constant dense<0.000000e+00> : vector<8x128xf32>
    %307 = tpu.matmul %305, %306, %cst_105 {dimension_numbers = #tpu.dot_dimension_numbers<[1], [0], [0], [1], [0, 0, 1, 1], [], []>} : vector<8x256xbf16>, vector<256x128xbf16>, vector<8x128xf32> -> vector<8x128xf32>
    %308 = arith.addf %296, %307 : vector<8x128xf32>
    %c0_106 = arith.constant 0 : index
    %c0_107 = arith.constant 0 : index
    %309 = vector.load %arg20[%c0_106, %c0_107] : memref<1x128xf32, #tpu.memory_space<vmem>>, vector<1x128xf32>
    %310 = vector.broadcast %309 : vector<1x128xf32> to vector<8x128xf32>
    %311 = arith.addf %308, %310 : vector<8x128xf32>
    %c0_108 = arith.constant 0 : index
    %c0_109 = arith.constant 0 : index
    %312 = vector.load %arg21[%c0_108, %c0_109] : memref<1x128xf32, #tpu.memory_space<vmem>>, vector<1x128xf32>
    %c0_110 = arith.constant 0 : index
    %c0_111 = arith.constant 0 : index
    %313 = vector.load %arg22[%c0_110, %c0_111] : memref<1x128xf32, #tpu.memory_space<vmem>>, vector<1x128xf32>
    %cst_112 = arith.constant dense<0.000000e+00> : vector<8xf32>
    %314 = vector.multi_reduction <add>, %311, %cst_112 [1] : vector<8x128xf32> to vector<8xf32>
    %315 = vector.shape_cast %314 : vector<8xf32> to vector<8x1xf32>
    %cst_113 = arith.constant 1.280000e+02 : f32
    %316 = vector.broadcast %cst_113 : f32 to vector<8x1xf32>
    %317 = arith.divf %315, %316 : vector<8x1xf32>
    %318 = vector.broadcast %317 : vector<8x1xf32> to vector<8x128xf32>
    %319 = arith.subf %311, %318 : vector<8x128xf32>
    %320 = arith.mulf %319, %319 : vector<8x128xf32>
    %cst_114 = arith.constant dense<0.000000e+00> : vector<8xf32>
    %321 = vector.multi_reduction <add>, %320, %cst_114 [1] : vector<8x128xf32> to vector<8xf32>
    %322 = vector.shape_cast %321 : vector<8xf32> to vector<8x1xf32>
    %cst_115 = arith.constant 1.280000e+02 : f32
    %323 = vector.broadcast %cst_115 : f32 to vector<8x1xf32>
    %324 = arith.divf %322, %323 : vector<8x1xf32>
    %325 = vector.broadcast %317 : vector<8x1xf32> to vector<8x128xf32>
    %326 = arith.subf %311, %325 : vector<8x128xf32>
    %cst_116 = arith.constant 9.99999974E-6 : f32
    %327 = vector.broadcast %cst_116 : f32 to vector<8x1xf32>
    %328 = arith.addf %324, %327 : vector<8x1xf32>
    %329 = math.rsqrt %328 : vector<8x1xf32>
    %330 = vector.broadcast %329 : vector<8x1xf32> to vector<8x128xf32>
    %331 = arith.mulf %326, %330 : vector<8x128xf32>
    %332 = vector.broadcast %312 : vector<1x128xf32> to vector<8x128xf32>
    %333 = arith.mulf %331, %332 : vector<8x128xf32>
    %334 = vector.broadcast %313 : vector<1x128xf32> to vector<8x128xf32>
    %335 = arith.addf %333, %334 : vector<8x128xf32>
    %c0_117 = arith.constant 0 : index
    %c0_118 = arith.constant 0 : index
    %c0_119 = arith.constant 0 : index
    %336 = vector.load %arg23[%c0_117, %c0_118, %c0_119] : memref<1x8x128xf32, #tpu.memory_space<vmem>>, vector<1x8x128xf32>
    %337 = vector.shape_cast %336 : vector<1x8x128xf32> to vector<8x128xf32>
    %338 = vector.shape_cast %335 : vector<8x128xf32> to vector<1x8x128xf32>
    tpu.vector_store %arg23[%c0_117, %c0_118, %c0_119], %338 {strides = array<i32>} : memref<1x8x128xf32, #tpu.memory_space<vmem>>, vector<1x8x128xf32>,
    return
  }
  func.func @transform_0(%arg0: i32) -> (i32, i32, i32) {
    %c0_i32 = arith.constant 0 : i32
    %c0_i32_0 = arith.constant 0 : i32
    %c0_i32_1 = arith.constant 0 : i32
    return %arg0, %c0_i32, %c0_i32_0 : i32, i32, i32
  }
  func.func @transform_1(%arg0: i32) -> (i32, i32, i32) {
    %c0_i32 = arith.constant 0 : i32
    %c0_i32_0 = arith.constant 0 : i32
    %c0_i32_1 = arith.constant 0 : i32
    return %arg0, %c0_i32, %c0_i32_0 : i32, i32, i32
  }
  func.func @transform_2(%arg0: i32) -> (i32, i32) {
    %c0_i32 = arith.constant 0 : i32
    %c0_i32_0 = arith.constant 0 : i32
    %c0_i32_1 = arith.constant 0 : i32
    return %c0_i32, %c0_i32_0 : i32, i32
  }
  func.func @transform_3(%arg0: i32) -> (i32, i32) {
    %c0_i32 = arith.constant 0 : i32
    %c0_i32_0 = arith.constant 0 : i32
    %c0_i32_1 = arith.constant 0 : i32
    return %c0_i32, %c0_i32_0 : i32, i32
  }
  func.func @transform_4(%arg0: i32) -> (i32, i32) {
    %c0_i32 = arith.constant 0 : i32
    %c0_i32_0 = arith.constant 0 : i32
    %c0_i32_1 = arith.constant 0 : i32
    return %c0_i32, %c0_i32_0 : i32, i32
  }
  func.func @transform_5(%arg0: i32) -> (i32, i32) {
    %c0_i32 = arith.constant 0 : i32
    %c0_i32_0 = arith.constant 0 : i32
    %c0_i32_1 = arith.constant 0 : i32
    return %c0_i32, %c0_i32_0 : i32, i32
  }
  func.func @transform_6(%arg0: i32) -> (i32, i32) {
    %c0_i32 = arith.constant 0 : i32
    %c0_i32_0 = arith.constant 0 : i32
    %c0_i32_1 = arith.constant 0 : i32
    return %c0_i32, %c0_i32_0 : i32, i32
  }
  func.func @transform_7(%arg0: i32) -> (i32, i32) {
    %c0_i32 = arith.constant 0 : i32
    %c0_i32_0 = arith.constant 0 : i32
    %c0_i32_1 = arith.constant 0 : i32
    return %c0_i32, %c0_i32_0 : i32, i32
  }
  func.func @transform_8(%arg0: i32) -> (i32, i32) {
    %c0_i32 = arith.constant 0 : i32
    %c0_i32_0 = arith.constant 0 : i32
    %c0_i32_1 = arith.constant 0 : i32
    return %c0_i32, %c0_i32_0 : i32, i32
  }
  func.func @transform_9(%arg0: i32) -> (i32, i32) {
    %c0_i32 = arith.constant 0 : i32
    %c0_i32_0 = arith.constant 0 : i32
    %c0_i32_1 = arith.constant 0 : i32
    return %c0_i32, %c0_i32_0 : i32, i32
  }
  func.func @transform_10(%arg0: i32) -> (i32, i32) {
    %c0_i32 = arith.constant 0 : i32
    %c0_i32_0 = arith.constant 0 : i32
    %c0_i32_1 = arith.constant 0 : i32
    return %c0_i32, %c0_i32_0 : i32, i32
  }
  func.func @transform_11(%arg0: i32) -> (i32, i32) {
    %c0_i32 = arith.constant 0 : i32
    %c0_i32_0 = arith.constant 0 : i32
    %c0_i32_1 = arith.constant 0 : i32
    return %c0_i32, %c0_i32_0 : i32, i32
  }
  func.func @transform_12(%arg0: i32) -> (i32, i32) {
    %c0_i32 = arith.constant 0 : i32
    %c0_i32_0 = arith.constant 0 : i32
    %c0_i32_1 = arith.constant 0 : i32
    return %c0_i32, %c0_i32_0 : i32, i32
  }
  func.func @transform_13(%arg0: i32) -> (i32, i32) {
    %c0_i32 = arith.constant 0 : i32
    %c0_i32_0 = arith.constant 0 : i32
    %c0_i32_1 = arith.constant 0 : i32
    return %c0_i32, %c0_i32_0 : i32, i32
  }
  func.func @transform_14(%arg0: i32) -> (i32, i32) {
    %c0_i32 = arith.constant 0 : i32
    %c0_i32_0 = arith.constant 0 : i32
    %c0_i32_1 = arith.constant 0 : i32
    return %c0_i32, %c0_i32_0 : i32, i32
  }
  func.func @transform_15(%arg0: i32) -> (i32, i32) {
    %c0_i32 = arith.constant 0 : i32
    %c0_i32_0 = arith.constant 0 : i32
    %c0_i32_1 = arith.constant 0 : i32
    return %c0_i32, %c0_i32_0 : i32, i32
  }
  func.func @transform_16(%arg0: i32) -> (i32, i32) {
    %c0_i32 = arith.constant 0 : i32
    %c0_i32_0 = arith.constant 0 : i32
    %c0_i32_1 = arith.constant 0 : i32
    return %c0_i32, %c0_i32_0 : i32, i32
  }
  func.func @transform_17(%arg0: i32) -> (i32, i32) {
    %c0_i32 = arith.constant 0 : i32
    %c0_i32_0 = arith.constant 0 : i32
    %c0_i32_1 = arith.constant 0 : i32
    return %c0_i32, %c0_i32_0 : i32, i32
  }
  func.func @transform_18(%arg0: i32) -> (i32, i32) {
    %c0_i32 = arith.constant 0 : i32
    %c0_i32_0 = arith.constant 0 : i32
    %c0_i32_1 = arith.constant 0 : i32
    return %c0_i32, %c0_i32_0 : i32, i32
  }
  func.func @transform_19(%arg0: i32) -> (i32, i32) {
    %c0_i32 = arith.constant 0 : i32
    %c0_i32_0 = arith.constant 0 : i32
    %c0_i32_1 = arith.constant 0 : i32
    return %c0_i32, %c0_i32_0 : i32, i32
  }
  func.func @transform_20(%arg0: i32) -> (i32, i32) {
    %c0_i32 = arith.constant 0 : i32
    %c0_i32_0 = arith.constant 0 : i32
    %c0_i32_1 = arith.constant 0 : i32
    return %c0_i32, %c0_i32_0 : i32, i32
  }
  func.func @transform_21(%arg0: i32) -> (i32, i32) {
    %c0_i32 = arith.constant 0 : i32
    %c0_i32_0 = arith.constant 0 : i32
    %c0_i32_1 = arith.constant 0 : i32
    return %c0_i32, %c0_i32_0 : i32, i32
  }
  func.func @transform_22(%arg0: i32) -> (i32, i32, i32) {
    %c0_i32 = arith.constant 0 : i32
    %c0_i32_0 = arith.constant 0 : i32
    %c0_i32_1 = arith.constant 0 : i32
    return %arg0, %c0_i32, %c0_i32_0 : i32, i32, i32
  }
}

</mosaic_0001>

<bundles_post_ra>
// kernel: transformer_lm_forward.4
= control target key start
LH: loop header
LB: loop body
LE: loop exit
PB: predicated region body
PF: predicated region fallthrough
CT: control target
= control target key end

     0   :  { %s89_s0 = inlined_call_operand.hbm [shape: f32[4,64,128], index: 0, kind: input, shape index: {}, may-alias: {0,2}]   ;;  %s90_s1 = inlined_call_operand.vmem [shape: f32[2,8,128], index: 1, kind: input, shape index: {}]   ;;  %s91_s2 = inlined_call_operand.hbm [shape: f32[4,64,128], index: 2, kind: output, shape index: {}, may-alias: {0,2}]  }
   0x1   :  { %s9_s11 = scalar_lea.hbm %s91_s2, 64  ;;  %s11_s14 = sshll.u32 %s90_s1, 4  ;;  %s12_s14 = int_to_ptr.vmem [resolvable:$true] %s11_s14 }
   0x2   :  { %s29_s15 = scalar_lea.vmem %s12_s14, 256  ;;  %p34_p1 = scmp.lt.s32.totalorder %s12_s14, %s12_s14 }
   0x3   :  { %p30_p0 = scmp.ne.s32.totalorder %s12_s14, %s29_s15  ;;  %p35_p2 = scmp.lt.s32.totalorder %s29_s15, %s29_s15 }
   0x5   :  { %p36_p3 = por %p35_p2, %p34_p1 }
   0x7   :  { %p37_p4 = pnand %p36_p3, %p30_p0 }
   0x9   :  { %40 = shalt.err (!%p37_p4)  }
   0xa   :  { %s53_s17 = scalar_lea.hbm %s91_s2, 320  ;;  %s43_s20 = scalar_lea.hbm %s91_s2, 4096 }
   0xb   :  { %p42_p5 = scmp.ne.s32.totalorder %s9_s11, %s53_s17  ;;  %p44_p6 = scmp.lt.u32.totalorder %s9_s11, %s91_s2 }
   0xc   :  { %p45_p7 = scmp.lt.u32.totalorder %s43_s20, %s53_s17  ;;  %p47_p9 = scmp.lt.u32.totalorder %s53_s17, %s9_s11 }
   0xe   :  { %p46_p8 = por %p45_p7, %p44_p6 }
  0x10   :  { %p48_p10 = por %p47_p9, %p46_p8 }
  0x12   :  { %p49_p11 = pnand %p48_p10, %p42_p5 }
  0x14   :  { %52 = shalt.err (!%p49_p11)  }
  0x15   :  { %s56_s1 = smov 128   ;;  %s57_s23 = smov 1024  }
  0x16   :  { %s58_s24 = smov 8  }
  0x17   :  { %14 = dma.vmem_to_hbm [thread:$0]  %s12_s14, 256, %s9_s11, [#allocation2], %s56_s1, %s57_s23, %s58_s24 }
  0x18   :  { %54 = dma.done.wait [#allocation2], 256 }
  0x19   :  { %55 = vsyncadd [#allocation2], 4294967040 }
  0x1a   :  { %19 = vsyncmov [#allocation2] }
  0x1d   :  { %s20_s25 = vpop.sfrf %19 }
  0x1e   :  { %p25_p12 = scmp.ne.s32.totalorder %s20_s25, 0 }
  0x20   :  { %24 = shalt.err (%p25_p12)  }

// kernel: transformer_lm_forward.7
= control target key start
LH: loop header
LB: loop body
LE: loop exit
PB: predicated region body
PF: predicated region fallthrough
CT: control target
= control target key end

     0   :  { %8 = vsyncpa [#allocation3], 0  ;;  %s424_s0 = inlined_call_operand.hbm [shape: f32[16,128], index: 0, kind: input, shape index: {}]   ;;  %s425_s1 = inlined_call_operand.hbm [shape: bf16[128,128], index: 1, kind: input, shape index: {}]   ;;  %s426_s2 = inlined_call_operand.hbm [shape: f32[1,128], index: 2, kind: input, shape index: {}]   ;;  %s427_s3 = inlined_call_operand.hbm [shape: f32[16,128], index: 3, kind: output, shape index: {}]  }
   0x1   :  { %9 = vsyncpa [#allocation6], 0 }
   0x2   :  { %10 = vsyncpa [#allocation4], 0  ;;  %s340_s12 = smov [#allocation5]   ;;  %s246_s16 = scalar_lea.hbm %s425_s1, 1024 }
   0x3   :  { %s28_s13 = sshll.u32 %s340_s12, 4  ;;  %p247_p0 = scmp.ne.s32.totalorder %s425_s1, %s246_s16  ;;  %s29_s13 = int_to_ptr.vmem [resolvable:$true] %s28_s13 }
   0x4   :  { %p250_p1 = scmp.lt.u32.totalorder %s246_s16, %s425_s1 }
   0x6   :  { %p252_p2 = pnand %p250_p1, %p247_p0 }
   0x8   :  { %255 = shalt.err (!%p252_p2)
}
   0x9   :  { %s256_s21 = scalar_lea.vmem %s29_s13, 1024  ;;  %p261_p4 = scmp.lt.s32.totalorder %s29_s13, %s29_s13 }
   0xa   :  { %p257_p3 = scmp.ne.s32.totalorder %s29_s13, %s256_s21  ;;  %p262_p5 = scmp.lt.s32.totalorder %s256_s21, %s256_s21 }
   0xc   :  { %p263_p6 = por %p262_p5, %p261_p4 }
   0xe   :  { %p264_p7 = pnand %p263_p6, %p257_p3 }
  0x10   :  { %267 = shalt.err (!%p264_p7)
}
  0x11   :  { %s341_s22 = smov 64   ;;  %s342_s23 = smov 4  }
  0x12   :  { %34 = dma.hbm_to_vmem [thread:$0]  %s425_s1, 1024, %s29_s13, [#allocation6], %s341_s22, %s341_s22, %s342_s23  }
  0x13   :  { %s343_s26 = smov [#allocation2]   ;;  %s268_s30 = scalar_lea.hbm %s424_s0, 256 }
  0x14   :  { %s16_s27 = sshll.u32 %s343_s26, 4  ;;  %p269_p8 = scmp.ne.s32.totalorder %s424_s0, %s268_s30  ;;  %s17_s27 = int_to_ptr.vmem [resolvable:$true] %s16_s27 }
  0x15   :  { %p272_p9 = scmp.lt.u32.totalorder %s268_s30, %s424_s0 }
  0x17   :  { %p274_p10 = pnand %p272_p9, %p269_p8 }
  0x19   :  { %277 = shalt.err (!%p274_p10)
}
  0x1a   :  { %s278_s8 = scalar_lea.vmem %s17_s27, 256  ;;  %p283_p12 = scmp.lt.s32.totalorder %s17_s27, %s17_s27 }
  0x1b   :  { %p279_p11 = scmp.ne.s32.totalorder %s17_s27, %s278_s8  ;;  %p284_p13 = scmp.lt.s32.totalorder %s278_s8, %s278_s8 }
  0x1d   :  { %p285_p0 = por %p284_p13, %p283_p12 }
  0x1f   :  { %p286_p1 = pnand %p285_p0, %p279_p11 }
  0x21   :  { %289 = shalt.err (!%p286_p1)
}
  0x22   :  { %s344_s1 = smov 128   ;;  %s345_s9 = smov 8  }
  0x23   :  { %22 = dma.hbm_to_vmem [thread:$0]  %s424_s0, 256, %s17_s27, [#allocation3], %s344_s1, %s344_s1, %s345_s9  }
  0x24   :  { %s346_s12 = smov [#allocation7]   ;;  %s290_s16 = scalar_lea.hbm %s426_s2, 16 }
  0x25   :  { %s41_s13 = sshll.u32 %s346_s12, 4  ;;  %p291_p2 = scmp.ne.s32.totalorder %s426_s2, %s290_s16  ;;  %s42_s13 = int_to_ptr.vmem [resolvable:$true] %s41_s13 }
  0x26   :  { %p294_p3 = scmp.lt.u32.totalorder %s290_s16, %s426_s2 }
  0x28   :  { %p296_p4 = pnand %p294_p3, %p291_p2 }
  0x2a   :  { %299 = shalt.err (!%p296_p4)
}
  0x2b   :  { %s300_s21 = scalar_lea.vmem %s42_s13, 16  ;;  %s304_s0 = scalar_lea.vmem %s42_s13, 32 }
  0x2c   :  { %p301_p5 = scmp.ne.s32.totalorder %s42_s13, %s300_s21  ;;  %p305_p6 = scmp.lt.s32.totalorder %s42_s13, %s42_s13 }
  0x2d   :  { %p306_p7 = scmp.lt.s32.totalorder %s304_s0, %s300_s21 }
  0x2f   :  { %p307_p8 = por %p306_p7, %p305_p6 }
  0x31   :  { %p308_p9 = pnand %p307_p8, %p301_p5 }
  0x33   :  { %311 = shalt.err (!%p308_p9)
}
  0x34   :  { %44 = dma.hbm_to_vmem [thread:$0]  %s426_s2, 16, %s42_s13, [#allocation6]  }
  0x35   :  { %334 = dma.done.wait [#allocation3], 256  }
  0x36   :  { %335 = vsyncadd [#allocation3], 4294967040 }
  0x37   :  { %336 = dma.done.wait [#allocation6], 1040  }
  0x38   :  { %337 = vsyncadd [#allocation6], 4294966256  ;;  %v347_v0 = vmov 0.0   ;;  %vm348_vm0 = vmmov 0   ;;  %v238_v1 = vld [vmem:[#allocation5] sm:$0xff]   ;;  %v239_v2 = vld [vmem:[#allocation5 + $0x8] sm:$0xff]  }
  0x39   :  { %208 = vmatprep.subr.bf16.mxu0 %v347_v0  ;;  %224 = vmatprep.mubr.msk.bf16.mxu0 %vm348_vm0, %v347_v0  ;;  %v240_v3 = vld [vmem:[#allocation5 + $0x10] sm:$0xff]   ;;  %v241_v4 = vld [vmem:[#allocation5 + $0x18] sm:$0xff]   ;;  %v242_v5 = vld [vmem:[#allocation5 + $0x20] sm:$0xff]   ;;  %s349_s2 = smov [#allocation8]  }
  0x3a   :  { %209 = vmatpush3.bf16.msra.mxu0 %v238_v1  ;;  %v243_v6 = vld [vmem:[#allocation5 + $0x28] sm:$0xff]   ;;  %v244_v7 = vld [vmem:[#allocation5 + $0x30] sm:$0xff]   ;;  %v245_v8 = vld [vmem:[#allocation5 + $0x38] sm:$0xff]   ;;  %s177_s24 = sshll.u32 %s349_s2, 4  ;;  %s178_s24 = int_to_ptr.vmem [resolvable:$true] %s177_s24 }
  0x3b   :  { %210 = vmatprep.subr.bf16.mxu0 %v347_v0  ;;  %v55_v9 = vld [vmem:[#allocation2] sm:$0xff]  ;;  %v56_v10 = vld [vmem:[#allocation2 + $0x8] sm:$0xff]  ;;  %v190_v12 = vld [vmem:[#allocation7] ss:$0 sm:$0xff]  ;;  %s312_s25 = scalar_lea.vmem %s178_s24, 256  ;;  %p317_p11 = scmp.lt.s32.totalorder %s178_s24, %s178_s24 }
  0x3c   :  { %v57_v11 = vpack.c.bf16 %v56_v10, %v55_v9  ;;  %p313_p10 = scmp.ne.s32.totalorder %s178_s24, %s312_s25  ;;  %p318_p12 = scmp.lt.s32.totalorder %s312_s25, %s312_s25 }
  0x3e   :  { %211 = vmatpush3.bf16.msra.mxu0 %v239_v2  ;;  %p319_p13 = por %p318_p12, %p317_p11 }
  0x3f   :  { %212 = vmatprep.subr.bf16.mxu0 %v347_v0 }
  0x40   :  { %p320_p0 = pnand %p319_p13, %p313_p10 }
  0x42   :  { %213 = vmatpush3.bf16.msra.mxu0 %v240_v3 }
  0x43   :  { %214 = vmatprep.subr.bf16.mxu0 %v347_v0 }
  0x46   :  { %215 = vmatpush3.bf16.msra.mxu0 %v241_v4 }
  0x47   :  { %216 = vmatprep.subr.bf16.mxu0 %v347_v0 }
  0x4a   :  { %217 = vmatpush3.bf16.msra.mxu0 %v242_v5 }
  0x4b   :  { %218 = vmatprep.subr.bf16.mxu0 %v347_v0 }
  0x4e   :  { %219 = vmatpush3.bf16.msra.mxu0 %v243_v6 }
  0x4f   :  { %220 = vmatprep.subr.bf16.mxu0 %v347_v0 }
  0x52   :  { %221 = vmatpush3.bf16.msra.mxu0 %v244_v7 }
  0x53   :  { %222 = vmatprep.subr.bf16.mxu0 %v347_v0 }
  0x56   :  { %223 = vmatpush3.bf16.msra.mxu0 %v245_v8 }
  0x59   :  { %225 = vmatmul.mubr.bf16.vlgmr.msra.gmra.mrb[0].mxu0 %v57_v11 }
 0x12c   :  { %v163_v13 = vpop.f32.mrb[0].mxu0 }
 0x12d   :  { %v164_v14 = vadd.f32 %v190_v12, %v163_v13  ;;  %v226_v15 = vpop.f32.mrb[1].mxu0 }
 0x12e   :  { %v166_v16 = vpop.f32.mrb[2].mxu0 }
 0x12f   :  { %170 = vst [vmem:[#allocation8] sm:$0xff] %v164_v14  ;;  %v167_v17 = vadd.f32 %v190_v12, %v166_v16  ;;  %v227_v18 = vpop.f32.mrb[3].mxu0 }
 0x131   :  { %171 = vst [vmem:[#allocation8 + $0x8] sm:$0xff] %v167_v17 }
 0x132   :  { %323 = shalt.err (!%p320_p0)
}
 0x133   :  { %s324_s28 = scalar_lea.hbm %s427_s3, 256 }
 0x134   :  { %p325_p1 = scmp.ne.s32.totalorder %s427_s3, %s324_s28  ;;  %p328_p2 = scmp.lt.u32.totalorder %s324_s28, %s427_s3 }
 0x136   :  { %p330_p3 = pnand %p328_p2, %p325_p1 }
 0x138   :  { %333 = shalt.err (!%p330_p3)
}
 0x139   :  { %183 = dma.vmem_to_hbm [thread:$0]  %s178_s24, 256, %s427_s3, [#allocation4], %s344_s1, %s344_s1, %s345_s9  }
 0x13a   :  { %338 = dma.done.wait [#allocation4], 256  }
 0x13b   :  { %339 = vsyncadd [#allocation4], 4294967040 }
 0x13c   :  { %187 = vsyncpa [#allocation3], 1 }
 0x13d   :  { %188 = vsyncpa [#allocation6], 1 }
 0x13e   :  { %189 = vsyncpa [#allocation4], 1 }

// kernel: transformer_lm_forward.5
= control target key start
LH: loop header
LB: loop body
LE: loop exit
PB: predicated region body
PF: predicated region fallthrough
CT: control target
= control target key end

     0   :  { %s6385_s0 = inlined_call_operand.hbm [shape: f32[2,8,128], index: 0, kind: input, shape index: {}]   ;;  %s6386_s1 = inlined_call_operand.hbm [shape: f32[4,64,128], index: 1, kind: input, shape index: {}]   ;;  %s6387_s2 = inlined_call_operand.hbm [shape: bf16[128,384], index: 2, kind: input, shape index: {}]   ;;  %s6388_s3 = inlined_call_operand.hbm [shape: f32[1,384], index: 3, kind: input, shape index: {}]   ;;  %s6389_s4 = inlined_call_operand.hbm [shape: bf16[128,128], index: 4, kind: input, shape index: {}]   ;;  %s6390_s5 = inlined_call_operand.hbm [shape: f32[1,128], index: 5, kind: input, shape index: {}]   ;;  %s6391_s6 = inlined_call_operand.hbm [shape: f32[1,128], index: 6, kind: input, shape index: {}]   ;;  %s6392_s7 = inlined_call_operand.hbm [shape: f32[1,128], index: 7, kind: input, shape index: {}]   ;;  %s6393_s8 = inlined_call_operand.hbm [shape: bf16[128,128], index: 8, kind: input, shape index: {}]   ;;  %s6394_s9 = inlined_call_operand.hbm [shape: f32[1,128], index: 9, kind: input, shape index: {}]   ;;  %s6395_s10 = inlined_call_operand.hbm [shape: bf16[128,256], index: 10, kind: input, shape index: {}]   ;;  %s6396_s11 = inlined_call_operand.hbm [shape: f32[1,256], index: 11, kind: input, shape index: {}]   ;;  %s6397_s12 = inlined_call_operand.hbm [shape: bf16[128,128], index: 12, kind: input, shape index: {}]   ;;  %s6398_s13 = inlined_call_operand.hbm [shape: f32[1,128], index: 13, kind: input, shape index: {}]   ;;  %s6399_s14 = inlined_call_operand.hbm [shape: f32[1,128], index: 14, kind: input, shape index: {}]   ;;  %s6400_s15 = inlined_call_operand.hbm [shape: f32[1,128], index: 15, kind: input, shape index: {}]   ;;  %s6401_s16 = inlined_call_operand.hbm [shape: bf16[128,256], index: 16, kind: input, shape index: {}]   ;;  %s6402_s17 = inlined_call_operand.hbm [shape: f32[1,256], index: 17, kind: input, shape index: {}]   ;;  %s6403_s18 = inlined_call_operand.hbm [shape: bf16[256,128], index: 18, kind: input, shape index: {}]   ;;  %s6404_s19 = inlined_call_operand.hbm [shape: f32[1,128], index: 19, kind: input, shape index: {}]   ;;  %s6405_s20 = inlined_call_operand.hbm [shape: f32[1,128], index: 20, kind: input, shape index: {}]   ;;  %s6406_s21 = inlined_call_operand.hbm [shape: f32[1,128], index: 21, kind: input, shape index: {}]   ;;  %s6407_s22 = inlined_call_operand.hbm [shape: f32[2,8,128], index: 22, kind: output, shape index: {}]  }
   0x1   :  { %6438 = sst [smem:[#allocation58_spill]] %s6385_s0 }
   0x2   :  { %6439 = sst [smem:[#allocation59_spill]] %s6386_s1 }
   0x3   :  { %6440 = sst [smem:[#allocation60_spill]] %s6387_s2 }
   0x4   :  { %6441 = sst [smem:[#allocation61_spill]] %s6388_s3 }
   0x5   :  { %6442 = sst [smem:[#allocation62_spill]] %s6389_s4 }
   0x6   :  { %6443 = sst [smem:[#allocation63_spill]] %s6390_s5 }
   0x7   :  { %6444 = sst [smem:[#allocation64_spill]] %s6391_s6 }
   0x8   :  { %6445 = sst [smem:[#allocation65_spill]] %s6392_s7 }
   0x9   :  { %6446 = sst [smem:[#allocation66_spill]] %s6393_s8 }
   0xa   :  { %6447 = sst [smem:[#allocation67_spill]] %s6394_s9 }
   0xb   :  { %6448 = sst [smem:[#allocation68_spill]] %s6395_s10 }
   0xc   :  { %6449 = sst [smem:[#allocation69_spill]] %s6396_s11 }
   0xd   :  { %6450 = sst [smem:[#allocation70_spill]] %s6397_s12 }
   0xe   :  { %6451 = sst [smem:[#allocation71_spill]] %s6403_s18 }
   0xf   :  { %6452 = sst [smem:[#allocation72_spill]] %s6405_s20 }
  0x10   :  { %6453 = sst [smem:[#allocation73_spill]] %s6406_s21 }
  0x11   :  { %6454 = sst [smem:[#allocation74_spill]] %s6407_s22 }
  0x12   :  { %27 = vsyncpa [#allocation3], 0 }
  0x13   :  { %29 = vsyncpa [#allocation3 + $0x1], 0 }
  0x14   :  { %30 = vsyncpa [#allocation6], 0 }
  0x15   :  { %32 = vsyncpa [#allocation6 + $0x1], 0 }
  0x16   :  { %33 = vsyncpa [#allocation9], 0 }
  0x17   :  { %34 = vsyncpa [#allocation12], 0 }
  0x18   :  { %35 = vsyncpa [#allocation15], 0 }
  0x19   :  { %36 = vsyncpa [#allocation18], 0 }
  0x1a   :  { %37 = vsyncpa [#allocation21], 0 }
  0x1b   :  { %38 = vsyncpa [#allocation24], 0 }
  0x1c   :  { %39 = vsyncpa [#allocation27], 0 }
  0x1d   :  { %40 = vsyncpa [#allocation30], 0 }
  0x1e   :  { %41 = vsyncpa [#allocation33], 0 }
  0x1f   :  { %42 = vsyncpa [#allocation36], 0 }
  0x20   :  { %43 = vsyncpa [#allocation4], 0 }
  0x21   :  { %45 = vsyncpa [#allocation4 + $0x1], 0  ;;  %s5417_s3 = smov 0   ;;  %s5419_s28 = smov 0  }
  0x22   :  { %s5421_s29 = smov 0   ;;  %s5423_s30 = smov 0  }
  0x23 LB: > { %6455 = sst [smem:[#allocation52_spill]] %s5252_s3  ;;  %s5266_s4 = smov [#allocation7]   ;;  %s5264_s30 = sphi %s5423_s30, %s5888_s30   ;;  %s5260_s29 = sphi %s5421_s29, %s6530_s29   ;;  %s5256_s28 = sphi %s5419_s28, %s6529_s28   ;;  %s5252_s3 = sphi %s5417_s3, %s6526_s3  }
  0x24   : > { %6456 = sst [smem:[#allocation53_spill]] %s5256_s28  ;;  %s566_s0 = sshll.u32 %s5266_s4, 4  ;;  %s5443_s0 = int_to_ptr.vmem [resolvable:$true] %s566_s0 }
  0x25   : > { %6457 = sst [smem:[#allocation54_spill]] %s5260_s29  ;;  %s5438_s23 = sadd.s32 4294967295, %s5264_s30  }
  0x26   : > { %6458 = sst [smem:[#allocation55_spill]] %s5264_s30  ;;  %p3625_p0 = scmp.ge.s32.totalorder %s5264_s30, 1 }
  0x27   : > { %6459 = sst [smem:[#allocation56_spill]] %s5438_s23  ;;  %p6427_p1 = scmp.eq.s32.totalorder %s5438_s23, 0 }
  0x28   : > { %p554_p2 = scmp.lt.s32.totalorder %s5264_s30, 3  ;;  %s5267_s5 = smov [#allocation8]  }
  0x29   : > { %s580_s24 = sshll.u32 %s5267_s5, 4  ;;  %s5268_s25 = smov [#allocation11]   ;;  %s5458_s24 = int_to_ptr.vmem [resolvable:$true] %s580_s24 }
  0x2a   : > { %p5445_p3 = pnand %p3625_p0, %p554_p2  ;;  %s604_s26 = sshll.u32 %s5268_s25, 4  ;;  %s5460_s26 = int_to_ptr.vmem [resolvable:$true] %s604_s26 }
  0x2b   : > { %s6463_s4 = sld [smem:[#allocation60_spill]] }
  0x2c   : > { %s6460_s1 = scalar_select %p5445_p3, 1, 0 }
  0x2d   : > { %p4193_p5 = pneg %p5445_p3 }
  0x2e   : > { %6461 = sst [smem:[#allocation57_spill]] %s6460_s1 }
  0x2f   : > { %p5454_p6 = pnand %p4193_p5, %p6427_p1 }
  0x31   : > { %s4530_s22 = scalar_lea.hbm %s6463_s4, 3072  ;;  %p5470_p8 = pneg %p5454_p6 }
  0x32   : > { %p4531_p7 = scmp.ne.s32.totalorder %s6463_s4, %s4530_s22  ;;  %p4537_p11 = scmp.lt.u32.totalorder %s4530_s22, %s6463_s4 }
  0x34   : > { %p4533_p9 = pnand %p5470_p8, %p4531_p7 }
  0x36   : > { %p4534_p10 = pneg %p4533_p9 }
  0x38   : > { %p4539_p12 = pnand %p4537_p11, %p4534_p10 }
  0x3a   : > { %4542 = shalt.err (!%p4539_p12)
}
  0x3b   : > { %s4543_s3 = scalar_lea.vmem %s5443_s0, 3072  ;;  %p4551_p5 = scmp.lt.s32.totalorder %s5443_s0, %s5443_s0 }
  0x3c   : > { %p4544_p13 = scmp.ne.s32.totalorder %s5443_s0, %s4543_s3  ;;  %p4552_p4 = scmp.lt.s32.totalorder %s4543_s3, %s4543_s3 }
  0x3e   : > { %p4546_p0 = pnand %p4544_p13, %p5470_p8  ;;  %p4553_p7 = por %p4552_p4, %p4551_p5 }
  0x40   : > { %p4547_p2 = pneg %p4546_p0 }
  0x42   : > { %p4554_p9 = pnand %p4553_p7, %p4547_p2 }
  0x44   : > { %4557 = shalt.err (!%p4554_p9)
}
  0x45   : > { %s5269_s1 = smov 192   ;;  %s5270_s22 = smov 12  }
  0x46   : > { %4196 = dma.hbm_to_vmem [thread:$0]  (!%p5454_p6), %s6463_s4, 3072, %s5443_s0, [#allocation6], %s5269_s1, %s5269_s1, %s5270_s22  }
  0x47   : > { %s6465_s28 = sld [smem:[#allocation61_spill]] }
  0x4d   : > { %s6466_s21 = smov %s6465_s28  ;;  %s4558_s29 = scalar_lea.hbm %s6465_s28, 48 }
  0x4e   : > { %p4559_p4 = scmp.ne.s32.totalorder %s6466_s21, %s4558_s29  ;;  %p4565_p12 = scmp.lt.u32.totalorder %s4558_s29, %s6466_s21 }
  0x50   : > { %p4561_p10 = pnand %p4559_p4, %p5470_p8 }
  0x52   : > { %p4562_p11 = pneg %p4561_p10 }
  0x54   : > { %p4567_p13 = pnand %p4565_p12, %p4562_p11 }
  0x56   : > { %4570 = shalt.err (!%p4567_p13)
}
  0x57   : > { %s4571_s0 = scalar_lea.vmem %s5458_s24, 48  ;;  %s4578_s20 = scalar_lea.vmem %s5458_s24, 64 }
  0x58   : > { %p4572_p0 = scmp.ne.s32.totalorder %s5458_s24, %s4571_s0  ;;  %p4579_p7 = scmp.lt.s32.totalorder %s5458_s24, %s5458_s24 }
  0x59   : > { %p4580_p9 = scmp.lt.s32.totalorder %s4578_s20, %s4571_s0 }
  0x5a   : > { %p4574_p2 = pnand %p4572_p0, %p5470_p8 }
  0x5b   : > { %p4581_p4 = por %p4580_p9, %p4579_p7 }
  0x5c   : > { %p4575_p5 = pneg %p4574_p2 }
  0x5e   : > { %p4582_p10 = pnand %p4581_p4, %p4575_p5 }
  0x60   : > { %4585 = shalt.err (!%p4582_p10)
}
  0x61   : > { %4199 = dma.hbm_to_vmem [thread:$0]  (!%p5454_p6), %s6466_s21, 48, %s5458_s24, [#allocation9]  }
  0x62   : > { %s6467_s1 = sld [smem:[#allocation63_spill]] }
  0x68   : > { %s4586_s22 = scalar_lea.hbm %s6467_s1, 16 }
  0x69   : > { %p4587_p11 = scmp.ne.s32.totalorder %s6467_s1, %s4586_s22  ;;  %p4593_p0 = scmp.lt.u32.totalorder %s4586_s22, %s6467_s1 }
  0x6b   : > { %p4589_p12 = pnand %p4587_p11, %p5470_p8 }
  0x6d   : > { %p4590_p13 = pneg %p4589_p12 }
  0x6f   : > { %p4595_p2 = pnand %p4593_p0, %p4590_p13 }
  0x71   : > { %4598 = shalt.err (!%p4595_p2)
}
  0x72   : > { %s4599_s24 = scalar_lea.vmem %s5460_s26, 16  ;;  %s4606_s3 = scalar_lea.vmem %s5460_s26, 32 }
  0x73   : > { %p4600_p5 = scmp.ne.s32.totalorder %s5460_s26, %s4599_s24  ;;  %p4607_p4 = scmp.lt.s32.totalorder %s5460_s26, %s5460_s26 }
  0x74   : > { %p4608_p10 = scmp.lt.s32.totalorder %s4606_s3, %s4599_s24 }
  0x75   : > { %p4602_p7 = pnand %p4600_p5, %p5470_p8 }
  0x76   : > { %p4609_p11 = por %p4608_p10, %p4607_p4 }
  0x77   : > { %p4603_p9 = pneg %p4602_p7 }
  0x79   : > { %p4610_p12 = pnand %p4609_p11, %p4603_p9 }
  0x7b   : > { %4613 = shalt.err (!%p4610_p12)
}
  0x7c   : > { %4205 = dma.hbm_to_vmem [thread:$0]  (!%p5454_p6), %s6467_s1, 16, %s5460_s26, [#allocation12]  }
  0x7d   : > { %s5271_s18 = smov [#allocation14]   ;;  %s5272_s29 = smov [#allocation17]  }
  0x7e   : > { %s626_s28 = sshll.u32 %s5271_s18, 4  ;;  %s650_s30 = sshll.u32 %s5272_s29, 4  ;;  %s627_s28 = int_to_ptr.vmem [resolvable:$true] %s626_s28  ;;  %s651_s30 = int_to_ptr.vmem [resolvable:$true] %s650_s30 }
  0x7f   : > { %s6468_s7 = sld [smem:[#allocation65_spill]] }
  0x85   : > { %s4614_s2 = scalar_lea.hbm %s6468_s7, 16 }
  0x86   : > { %p4615_p13 = scmp.ne.s32.totalorder %s6468_s7, %s4614_s2  ;;  %p4621_p5 = scmp.lt.u32.totalorder %s4614_s2, %s6468_s7 }
  0x88   : > { %p4617_p0 = pnand %p4615_p13, %p5470_p8 }
  0x8a   : > { %p4618_p2 = pneg %p4617_p0 }
  0x8c   : > { %p4623_p7 = pnand %p4621_p5, %p4618_p2 }
  0x8e   : > { %4626 = shalt.err (!%p4623_p7)
}
  0x8f   : > { %s4627_s26 = scalar_lea.vmem %s627_s28, 16  ;;  %s4634_s0 = scalar_lea.vmem %s627_s28, 32 }
  0x90   : > { %p4628_p9 = scmp.ne.s32.totalorder %s627_s28, %s4627_s26  ;;  %p4635_p11 = scmp.lt.s32.totalorder %s627_s28, %s627_s28 }
  0x91   : > { %p4636_p12 = scmp.lt.s32.totalorder %s4634_s0, %s4627_s26 }
  0x92   : > { %p4630_p4 = pnand %p4628_p9, %p5470_p8 }
  0x93   : > { %p4637_p1 = por %p4636_p12, %p4635_p11 }
  0x94   : > { %p4631_p10 = pneg %p4630_p4 }
  0x96   : > { %p4638_p3 = pnand %p4637_p1, %p4631_p10 }
  0x98   : > { %4641 = shalt.err (!%p4638_p3)
}
  0x99   : > { %4211 = dma.hbm_to_vmem [thread:$0]  (!%p5454_p6), %s6468_s7, 16, %s627_s28, [#allocation15]  }
  0x9a   : > { %s6469_s9 = sld [smem:[#allocation67_spill]] }
  0xa0   : > { %s4642_s23 = scalar_lea.hbm %s6469_s9, 16 }
  0xa1   : > { %p4643_p13 = scmp.ne.s32.totalorder %s6469_s9, %s4642_s23  ;;  %p4649_p3 = scmp.lt.u32.totalorder %s4642_s23, %s6469_s9 }
  0xa3   : > { %p4645_p0 = pnand %p4643_p13, %p5470_p8 }
  0xa5   : > { %p4646_p1 = pneg %p4645_p0 }
  0xa7   : > { %p4651_p2 = pnand %p4649_p3, %p4646_p1 }
  0xa9   : > { %4654 = shalt.err (!%p4651_p2)
}
  0xaa   : > { %s4655_s3 = scalar_lea.vmem %s651_s30, 16  ;;  %s4662_s28 = scalar_lea.vmem %s651_s30, 32 }
  0xab   : > { %p4656_p5 = scmp.ne.s32.totalorder %s651_s30, %s4655_s3  ;;  %p4663_p4 = scmp.lt.s32.totalorder %s651_s30, %s651_s30 }
  0xac   : > { %p4664_p10 = scmp.lt.s32.totalorder %s4662_s28, %s4655_s3 }
  0xad   : > { %p4658_p7 = pnand %p4656_p5, %p5470_p8 }
  0xae   : > { %p4665_p11 = por %p4664_p10, %p4663_p4 }
  0xaf   : > { %p4659_p9 = pneg %p4658_p7 }
  0xb1   : > { %p4666_p12 = pnand %p4665_p11, %p4659_p9 }
  0xb3   : > { %4669 = shalt.err (!%p4666_p12)
}
  0xb4   : > { %4217 = dma.hbm_to_vmem [thread:$0]  (!%p5454_p6), %s6469_s9, 16, %s651_s30, [#allocation18]  }
  0xb5   : > { %s5273_s20 = smov [#allocation20]   ;;  %s5274_s29 = smov [#allocation23]  }
  0xb6   : > { %s674_s18 = sshll.u32 %s5273_s20, 4  ;;  %s698_s22 = sshll.u32 %s5274_s29, 4  ;;  %s675_s18 = int_to_ptr.vmem [resolvable:$true] %s674_s18  ;;  %s699_s22 = int_to_ptr.vmem [resolvable:$true] %s698_s22 }
  0xb7   : > { %s6470_s11 = sld [smem:[#allocation69_spill]] }
  0xbd   : > { %s4670_s27 = scalar_lea.hbm %s6470_s11, 32 }
  0xbe   : > { %p4671_p13 = scmp.ne.s32.totalorder %s6470_s11, %s4670_s27  ;;  %p4677_p3 = scmp.lt.u32.totalorder %s4670_s27, %s6470_s11 }
  0xc0   : > { %p4673_p0 = pnand %p4671_p13, %p5470_p8 }
  0xc2   : > { %p4674_p1 = pneg %p4673_p0 }
  0xc4   : > { %p4679_p2 = pnand %p4677_p3, %p4674_p1 }
  0xc6   : > { %4682 = shalt.err (!%p4679_p2)
}
  0xc7   : > { %s4683_s30 = scalar_lea.vmem %s675_s18, 32  ;;  %p4691_p4 = scmp.lt.s32.totalorder %s675_s18, %s675_s18 }
  0xc8   : > { %p4684_p5 = scmp.ne.s32.totalorder %s675_s18, %s4683_s30  ;;  %p4692_p10 = scmp.lt.s32.totalorder %s4683_s30, %s4683_s30 }
  0xca   : > { %p4686_p7 = pnand %p4684_p5, %p5470_p8  ;;  %p4693_p11 = por %p4692_p10, %p4691_p4 }
  0xcc   : > { %p4687_p9 = pneg %p4686_p7 }
  0xce   : > { %p4694_p12 = pnand %p4693_p11, %p4687_p9 }
  0xd0   : > { %4697 = shalt.err (!%p4694_p12)
}
  0xd1   : > { %4223 = dma.hbm_to_vmem [thread:$0]  (!%p5454_p6), %s6470_s11, 32, %s675_s18, [#allocation21]  }
  0xd2   : > { %s4698_s23 = scalar_lea.hbm %s6398_s13, 16 }
  0xd3   : > { %p4699_p13 = scmp.ne.s32.totalorder %s6398_s13, %s4698_s23  ;;  %p4705_p3 = scmp.lt.u32.totalorder %s4698_s23, %s6398_s13 }
  0xd5   : > { %p4701_p0 = pnand %p4699_p13, %p5470_p8 }
  0xd7   : > { %p4702_p1 = pneg %p4701_p0 }
  0xd9   : > { %p4707_p2 = pnand %p4705_p3, %p4702_p1 }
  0xdb   : > { %4710 = shalt.err (!%p4707_p2)
}
  0xdc   : > { %s4711_s3 = scalar_lea.vmem %s699_s22, 16  ;;  %s4718_s18 = scalar_lea.vmem %s699_s22, 32 }
  0xdd   : > { %p4712_p5 = scmp.ne.s32.totalorder %s699_s22, %s4711_s3  ;;  %p4719_p4 = scmp.lt.s32.totalorder %s699_s22, %s699_s22 }
  0xde   : > { %p4720_p10 = scmp.lt.s32.totalorder %s4718_s18, %s4711_s3 }
  0xdf   : > { %p4714_p7 = pnand %p4712_p5, %p5470_p8 }
  0xe0   : > { %p4721_p11 = por %p4720_p10, %p4719_p4 }
  0xe1   : > { %p4715_p9 = pneg %p4714_p7 }
  0xe3   : > { %p4722_p12 = pnand %p4721_p11, %p4715_p9 }
  0xe5   : > { %4725 = shalt.err (!%p4722_p12)
}
  0xe6   : > { %4229 = dma.hbm_to_vmem [thread:$0]  (!%p5454_p6), %s6398_s13, 16, %s699_s22, [#allocation24]  }
  0xe7   : > { %s5275_s26 = smov [#allocation26]   ;;  %s5276_s20 = smov [#allocation29]  }
  0xe8   : > { %s720_s0 = sshll.u32 %s5275_s26, 4  ;;  %s744_s29 = sshll.u32 %s5276_s20, 4  ;;  %s721_s0 = int_to_ptr.vmem [resolvable:$true] %s720_s0  ;;  %s745_s29 = int_to_ptr.vmem [resolvable:$true] %s744_s29 }
  0xe9   : > { %s4726_s27 = scalar_lea.hbm %s6400_s15, 16 }
  0xea   : > { %p4727_p13 = scmp.ne.s32.totalorder %s6400_s15, %s4726_s27  ;;  %p4733_p3 = scmp.lt.u32.totalorder %s4726_s27, %s6400_s15 }
  0xec   : > { %p4729_p0 = pnand %p4727_p13, %p5470_p8 }
  0xee   : > { %p4730_p1 = pneg %p4729_p0 }
  0xf0   : > { %p4735_p2 = pnand %p4733_p3, %p4730_p1 }
  0xf2   : > { %4738 = shalt.err (!%p4735_p2)
}
  0xf3   : > { %s4739_s22 = scalar_lea.vmem %s721_s0, 16  ;;  %s4746_s28 = scalar_lea.vmem %s721_s0, 32 }
  0xf4   : > { %p4740_p5 = scmp.ne.s32.totalorder %s721_s0, %s4739_s22  ;;  %p4747_p4 = scmp.lt.s32.totalorder %s721_s0, %s721_s0 }
  0xf5   : > { %p4748_p10 = scmp.lt.s32.totalorder %s4746_s28, %s4739_s22 }
  0xf6   : > { %p4742_p7 = pnand %p4740_p5, %p5470_p8 }
  0xf7   : > { %p4749_p11 = por %p4748_p10, %p4747_p4 }
  0xf8   : > { %p4743_p9 = pneg %p4742_p7 }
  0xfa   : > { %p4750_p12 = pnand %p4749_p11, %p4743_p9 }
  0xfc   : > { %4753 = shalt.err (!%p4750_p12)
}
  0xfd   : > { %4235 = dma.hbm_to_vmem [thread:$0]  (!%p5454_p6), %s6400_s15, 16, %s721_s0, [#allocation27]  }
  0xfe   : > { %s4754_s2 = scalar_lea.hbm %s6402_s17, 32 }
  0xff   : > { %p4755_p13 = scmp.ne.s32.totalorder %s6402_s17, %s4754_s2  ;;  %p4761_p3 = scmp.lt.u32.totalorder %s4754_s2, %s6402_s17 }
 0x101   : > { %p4757_p0 = pnand %p4755_p13, %p5470_p8 }
 0x103   : > { %p4758_p1 = pneg %p4757_p0 }
 0x105   : > { %p4763_p2 = pnand %p4761_p3, %p4758_p1 }
 0x107   : > { %4766 = shalt.err (!%p4763_p2)
}
 0x108   : > { %s4767_s18 = scalar_lea.vmem %s745_s29, 32  ;;  %p4775_p4 = scmp.lt.s32.totalorder %s745_s29, %s745_s29 }
 0x109   : > { %p4768_p5 = scmp.ne.s32.totalorder %s745_s29, %s4767_s18  ;;  %p4776_p10 = scmp.lt.s32.totalorder %s4767_s18, %s4767_s18 }
 0x10b   : > { %p4770_p7 = pnand %p4768_p5, %p5470_p8  ;;  %p4777_p11 = por %p4776_p10, %p4775_p4 }
 0x10d   : > { %p4771_p9 = pneg %p4770_p7 }
 0x10f   : > { %p4778_p12 = pnand %p4777_p11, %p4771_p9 }
 0x111   : > { %4781 = shalt.err (!%p4778_p12)
}
 0x112   : > { %4241 = dma.hbm_to_vmem [thread:$0]  (!%p5454_p6), %s6402_s17, 32, %s745_s29, [#allocation30]  }
 0x113   : > { %s5277_s28 = smov [#allocation32]   ;;  %s5278_s26 = smov [#allocation10]  }
 0x114   : > { %s768_s30 = sshll.u32 %s5277_s28, 4  ;;  %s590_s20 = sshll.u32 %s5278_s26, 4  ;;  %s769_s30 = int_to_ptr.vmem [resolvable:$true] %s768_s30  ;;  %s591_s20 = int_to_ptr.vmem [resolvable:$true] %s590_s20 }
 0x115   : > { %s4782_s27 = scalar_lea.hbm %s6404_s19, 16 }
 0x116   : > { %p4783_p13 = scmp.ne.s32.totalorder %s6404_s19, %s4782_s27  ;;  %p4789_p3 = scmp.lt.u32.totalorder %s4782_s27, %s6404_s19 }
 0x118   : > { %p4785_p0 = pnand %p4783_p13, %p5470_p8 }
 0x11a   : > { %p4786_p1 = pneg %p4785_p0 }
 0x11c   : > { %p4791_p2 = pnand %p4789_p3, %p4786_p1 }
 0x11e   : > { %4794 = shalt.err (!%p4791_p2)
}
 0x11f   : > { %s4795_s29 = scalar_lea.vmem %s769_s30, 16  ;;  %s4802_s0 = scalar_lea.vmem %s769_s30, 32 }
 0x120   : > { %p4796_p5 = scmp.ne.s32.totalorder %s769_s30, %s4795_s29  ;;  %p4803_p4 = scmp.lt.s32.totalorder %s769_s30, %s769_s30 }
 0x121   : > { %p4804_p10 = scmp.lt.s32.totalorder %s4802_s0, %s4795_s29 }
 0x122   : > { %p4798_p7 = pnand %p4796_p5, %p5470_p8 }
 0x123   : > { %p4805_p11 = por %p4804_p10, %p4803_p4 }
 0x124   : > { %p4799_p9 = pneg %p4798_p7 }
 0x126   : > { %p4806_p12 = pnand %p4805_p11, %p4799_p9 }
 0x128   : > { %4809 = shalt.err (!%p4806_p12)
}
 0x129   : > { %4247 = dma.hbm_to_vmem [thread:$0]  (!%p5454_p6), %s6404_s19, 16, %s769_s30, [#allocation33]  }
 0x12a   : > { %s6471_s2 = sld [smem:[#allocation62_spill]] }
 0x130   : > { %s4810_s27 = scalar_lea.hbm %s6471_s2, 1024 }
 0x131   : > { %p4811_p13 = scmp.ne.s32.totalorder %s6471_s2, %s4810_s27  ;;  %p4817_p3 = scmp.lt.u32.totalorder %s4810_s27, %s6471_s2 }
 0x133   : > { %p4813_p0 = pnand %p4811_p13, %p5470_p8 }
 0x135   : > { %p4814_p1 = pneg %p4813_p0 }
 0x137   : > { %p4819_p2 = pnand %p4817_p3, %p4814_p1 }
 0x139   : > { %4822 = shalt.err (!%p4819_p2)
}
 0x13a   : > { %s4823_s29 = scalar_lea.vmem %s591_s20, 1024  ;;  %p4831_p4 = scmp.lt.s32.totalorder %s591_s20, %s591_s20 }
 0x13b   : > { %p4824_p5 = scmp.ne.s32.totalorder %s591_s20, %s4823_s29  ;;  %p4832_p10 = scmp.lt.s32.totalorder %s4823_s29, %s4823_s29 }
 0x13d   : > { %p4826_p7 = pnand %p4824_p5, %p5470_p8  ;;  %p4833_p11 = por %p4832_p10, %p4831_p4 }
 0x13f   : > { %p4827_p9 = pneg %p4826_p7 }
 0x141   : > { %p4834_p12 = pnand %p4833_p11, %p4827_p9 }
 0x143   : > { %4837 = shalt.err (!%p4834_p12)
}
 0x144   : > { %s5279_s30 = smov 64   ;;  %s5280_s0 = smov 4  }
 0x145   : > { %4202 = dma.hbm_to_vmem [thread:$0]  (!%p5454_p6), %s6471_s2, 1024, %s591_s20, [#allocation9], %s5279_s30, %s5279_s30, %s5280_s0  }
 0x146   : > { %s5281_s26 = smov [#allocation13]   ;;  %s5282_s27 = smov [#allocation16]  }
 0x147   : > { %s615_s23 = sshll.u32 %s5281_s26, 4  ;;  %s636_s25 = sshll.u32 %s5282_s27, 4  ;;  %s616_s23 = int_to_ptr.vmem [resolvable:$true] %s615_s23  ;;  %s637_s25 = int_to_ptr.vmem [resolvable:$true] %s636_s25 }
 0x148   : > { %s6472_s18 = sld [smem:[#allocation64_spill]] }
 0x14e   : > { %s4838_s29 = scalar_lea.hbm %s6472_s18, 16 }
 0x14f   : > { %p4839_p13 = scmp.ne.s32.totalorder %s6472_s18, %s4838_s29  ;;  %p4845_p3 = scmp.lt.u32.totalorder %s4838_s29, %s6472_s18 }
 0x151   : > { %p4841_p0 = pnand %p4839_p13, %p5470_p8 }
 0x153   : > { %p4842_p1 = pneg %p4841_p0 }
 0x155   : > { %p4847_p2 = pnand %p4845_p3, %p4842_p1 }
 0x157   : > { %4850 = shalt.err (!%p4847_p2)
}
 0x158   : > { %s4851_s20 = scalar_lea.vmem %s616_s23, 16  ;;  %s4858_s22 = scalar_lea.vmem %s616_s23, 32 }
 0x159   : > { %p4852_p5 = scmp.ne.s32.totalorder %s616_s23, %s4851_s20  ;;  %p4859_p4 = scmp.lt.s32.totalorder %s616_s23, %s616_s23 }
 0x15a   : > { %p4860_p10 = scmp.lt.s32.totalorder %s4858_s22, %s4851_s20 }
 0x15b   : > { %p4854_p7 = pnand %p4852_p5, %p5470_p8 }
 0x15c   : > { %p4861_p11 = por %p4860_p10, %p4859_p4 }
 0x15d   : > { %p4855_p9 = pneg %p4854_p7 }
 0x15f   : > { %p4862_p12 = pnand %p4861_p11, %p4855_p9 }
 0x161   : > { %4865 = shalt.err (!%p4862_p12)
}
 0x162   : > { %4208 = dma.hbm_to_vmem [thread:$0]  (!%p5454_p6), %s6472_s18, 16, %s616_s23, [#allocation12]  }
 0x163   : > { %s6473_s8 = sld [smem:[#allocation66_spill]] }
 0x169   : > { %s4866_s28 = scalar_lea.hbm %s6473_s8, 1024 }
 0x16a   : > { %p4867_p13 = scmp.ne.s32.totalorder %s6473_s8, %s4866_s28  ;;  %p4873_p3 = scmp.lt.u32.totalorder %s4866_s28, %s6473_s8 }
 0x16c   : > { %p4869_p0 = pnand %p4867_p13, %p5470_p8 }
 0x16e   : > { %p4870_p1 = pneg %p4869_p0 }
 0x170   : > { %p4875_p2 = pnand %p4873_p3, %p4870_p1 }
 0x172   : > { %4878 = shalt.err (!%p4875_p2)
}
 0x173   : > { %s4879_s29 = scalar_lea.vmem %s637_s25, 1024  ;;  %p4887_p4 = scmp.lt.s32.totalorder %s637_s25, %s637_s25 }
 0x174   : > { %p4880_p5 = scmp.ne.s32.totalorder %s637_s25, %s4879_s29  ;;  %p4888_p10 = scmp.lt.s32.totalorder %s4879_s29, %s4879_s29 }
 0x176   : > { %p4882_p7 = pnand %p4880_p5, %p5470_p8  ;;  %p4889_p11 = por %p4888_p10, %p4887_p4 }
 0x178   : > { %p4883_p9 = pneg %p4882_p7 }
 0x17a   : > { %p4890_p12 = pnand %p4889_p11, %p4883_p9 }
 0x17c   : > { %4893 = shalt.err (!%p4890_p12)
}
 0x17d   : > { %4214 = dma.hbm_to_vmem [thread:$0]  (!%p5454_p6), %s6473_s8, 1024, %s637_s25, [#allocation15], %s5279_s30, %s5279_s30, %s5280_s0  }
 0x17e   : > { %s5283_s22 = smov [#allocation19]   ;;  %s6474_s10 = sld [smem:[#allocation68_spill]] }
 0x17f   : > { %s660_s4 = sshll.u32 %s5283_s22, 4  ;;  %s661_s4 = int_to_ptr.vmem [resolvable:$true] %s660_s4 }
 0x184   : > { %s4894_s9 = scalar_lea.hbm %s6474_s10, 2048 }
 0x185   : > { %p4895_p13 = scmp.ne.s32.totalorder %s6474_s10, %s4894_s9  ;;  %p4901_p3 = scmp.lt.u32.totalorder %s4894_s9, %s6474_s10 }
 0x187   : > { %p4897_p0 = pnand %p4895_p13, %p5470_p8 }
 0x189   : > { %p4898_p1 = pneg %p4897_p0 }
 0x18b   : > { %p4903_p2 = pnand %p4901_p3, %p4898_p1 }
 0x18d   : > { %4906 = shalt.err (!%p4903_p2)
}
 0x18e   : > { %s4907_s25 = scalar_lea.vmem %s661_s4, 2048  ;;  %p4915_p4 = scmp.lt.s32.totalorder %s661_s4, %s661_s4 }
 0x18f   : > { %p4908_p5 = scmp.ne.s32.totalorder %s661_s4, %s4907_s25  ;;  %p4916_p10 = scmp.lt.s32.totalorder %s4907_s25, %s4907_s25 }
 0x191   : > { %p4910_p7 = pnand %p4908_p5, %p5470_p8  ;;  %p4917_p11 = por %p4916_p10, %p4915_p4 }
 0x193   : > { %p4911_p9 = pneg %p4910_p7 }
 0x195   : > { %p4918_p12 = pnand %p4917_p11, %p4911_p9 }
 0x197   : > { %4921 = shalt.err (!%p4918_p12)
}
 0x198   : > { %s6431_s3 = smov 128   ;;  %s6432_s29 = smov 8  }
 0x199   : > { %4220 = dma.hbm_to_vmem [thread:$0]  (!%p5454_p6), %s6474_s10, 2048, %s661_s4, [#allocation18], %s6431_s3, %s6431_s3, %s6432_s29  }
 0x19a   : > { %s5286_s22 = smov [#allocation22]   ;;  %s5287_s7 = smov [#allocation25]  }
 0x19b   : > { %s684_s1 = sshll.u32 %s5286_s22, 4  ;;  %s709_s9 = sshll.u32 %s5287_s7, 4  ;;  %s685_s1 = int_to_ptr.vmem [resolvable:$true] %s684_s1  ;;  %s5746_s9 = int_to_ptr.vmem [resolvable:$true] %s709_s9 }
 0x19c   : > { %s6475_s12 = sld [smem:[#allocation70_spill]] }
 0x1a2   : > { %s4922_s27 = scalar_lea.hbm %s6475_s12, 1024 }
 0x1a3   : > { %p4923_p13 = scmp.ne.s32.totalorder %s6475_s12, %s4922_s27  ;;  %p4929_p3 = scmp.lt.u32.totalorder %s4922_s27, %s6475_s12 }
 0x1a5   : > { %p4925_p0 = pnand %p4923_p13, %p5470_p8 }
 0x1a7   : > { %p4926_p1 = pneg %p4925_p0 }
 0x1a9   : > { %p4931_p2 = pnand %p4929_p3, %p4926_p1 }
 0x1ab   : > { %4934 = shalt.err (!%p4931_p2)
}
 0x1ac   : > { %s4935_s20 = scalar_lea.vmem %s685_s1, 1024  ;;  %p4943_p4 = scmp.lt.s32.totalorder %s685_s1, %s685_s1 }
 0x1ad   : > { %p4936_p5 = scmp.ne.s32.totalorder %s685_s1, %s4935_s20  ;;  %p4944_p10 = scmp.lt.s32.totalorder %s4935_s20, %s4935_s20 }
 0x1af   : > { %p4938_p7 = pnand %p4936_p5, %p5470_p8  ;;  %p4945_p11 = por %p4944_p10, %p4943_p4 }
 0x1b1   : > { %p4939_p9 = pneg %p4938_p7 }
 0x1b3   : > { %p4946_p12 = pnand %p4945_p11, %p4939_p9 }
 0x1b5   : > { %4949 = shalt.err (!%p4946_p12)
}
 0x1b6   : > { %4226 = dma.hbm_to_vmem [thread:$0]  (!%p5454_p6), %s6475_s12, 1024, %s685_s1, [#allocation21], %s5279_s30, %s5279_s30, %s5280_s0  }
 0x1b7   : > { %s4950_s27 = scalar_lea.hbm %s6399_s14, 16 }
 0x1b8   : > { %p4951_p13 = scmp.ne.s32.totalorder %s6399_s14, %s4950_s27  ;;  %p4957_p3 = scmp.lt.u32.totalorder %s4950_s27, %s6399_s14 }
 0x1ba   : > { %p4953_p0 = pnand %p4951_p13, %p5470_p8 }
 0x1bc   : > { %p4954_p1 = pneg %p4953_p0 }
 0x1be   : > { %p4959_p2 = pnand %p4957_p3, %p4954_p1 }
 0x1c0   : > { %4962 = shalt.err (!%p4959_p2)
}
 0x1c1   : > { %s4963_s1 = scalar_lea.vmem %s5746_s9, 16  ;;  %s4970_s20 = scalar_lea.vmem %s5746_s9, 32 }
 0x1c2   : > { %p4964_p5 = scmp.ne.s32.totalorder %s5746_s9, %s4963_s1  ;;  %p4971_p4 = scmp.lt.s32.totalorder %s5746_s9, %s5746_s9 }
 0x1c3   : > { %p4972_p10 = scmp.lt.s32.totalorder %s4970_s20, %s4963_s1 }
 0x1c4   : > { %p4966_p7 = pnand %p4964_p5, %p5470_p8 }
 0x1c5   : > { %p4973_p11 = por %p4972_p10, %p4971_p4 }
 0x1c6   : > { %p4967_p9 = pneg %p4966_p7 }
 0x1c8   : > { %p4974_p12 = pnand %p4973_p11, %p4967_p9 }
 0x1ca   : > { %4977 = shalt.err (!%p4974_p12)
}
 0x1cb   : > { %4232 = dma.hbm_to_vmem [thread:$0]  (!%p5454_p6), %s6399_s14, 16, %s5746_s9, [#allocation24]  }
 0x1cc   : > { %s5288_s28 = smov [#allocation28]   ;;  %s5289_s27 = smov [#allocation31]  }
 0x1cd   : > { %s730_s26 = sshll.u32 %s5288_s28, 4  ;;  %s754_s24 = sshll.u32 %s5289_s27, 4  ;;  %s731_s26 = int_to_ptr.vmem [resolvable:$true] %s730_s26  ;;  %s5793_s24 = int_to_ptr.vmem [resolvable:$true] %s754_s24 }
 0x1ce   : > { %s4978_s4 = scalar_lea.hbm %s6401_s16, 2048 }
 0x1cf   : > { %p4979_p13 = scmp.ne.s32.totalorder %s6401_s16, %s4978_s4  ;;  %p4985_p3 = scmp.lt.u32.totalorder %s4978_s4, %s6401_s16 }
 0x1d1   : > { %p4981_p0 = pnand %p4979_p13, %p5470_p8 }
 0x1d3   : > { %p4982_p1 = pneg %p4981_p0 }
 0x1d5   : > { %p4987_p2 = pnand %p4985_p3, %p4982_p1 }
 0x1d7   : > { %4990 = shalt.err (!%p4987_p2)
}
 0x1d8   : > { %s4991_s7 = scalar_lea.vmem %s731_s26, 2048  ;;  %p4999_p4 = scmp.lt.s32.totalorder %s731_s26, %s731_s26 }
 0x1d9   : > { %p4992_p5 = scmp.ne.s32.totalorder %s731_s26, %s4991_s7  ;;  %p5000_p10 = scmp.lt.s32.totalorder %s4991_s7, %s4991_s7 }
 0x1db   : > { %p4994_p7 = pnand %p4992_p5, %p5470_p8  ;;  %p5001_p11 = por %p5000_p10, %p4999_p4 }
 0x1dd   : > { %p4995_p9 = pneg %p4994_p7 }
 0x1df   : > { %p5002_p12 = pnand %p5001_p11, %p4995_p9 }
 0x1e1   : > { %5005 = shalt.err (!%p5002_p12)
}
 0x1e2   : > { %4238 = dma.hbm_to_vmem [thread:$0]  (!%p5454_p6), %s6401_s16, 2048, %s731_s26, [#allocation27], %s6431_s3, %s6431_s3, %s6432_s29  }
 0x1e3   : > { %s6476_s4 = sld [smem:[#allocation71_spill]] }
 0x1e9   : > { %s5006_s1 = scalar_lea.hbm %s6476_s4, 2048 }
 0x1ea   : > { %p5007_p13 = scmp.ne.s32.totalorder %s6476_s4, %s5006_s1  ;;  %p5013_p3 = scmp.lt.u32.totalorder %s5006_s1, %s6476_s4 }
 0x1ec   : > { %p5009_p0 = pnand %p5007_p13, %p5470_p8 }
 0x1ee   : > { %p5010_p1 = pneg %p5009_p0 }
 0x1f0   : > { %p5015_p2 = pnand %p5013_p3, %p5010_p1 }
 0x1f2   : > { %5018 = shalt.err (!%p5015_p2)
}
 0x1f3   : > { %s5019_s26 = scalar_lea.vmem %s5793_s24, 2048  ;;  %p5027_p4 = scmp.lt.s32.totalorder %s5793_s24, %s5793_s24 }
 0x1f4   : > { %p5020_p5 = scmp.ne.s32.totalorder %s5793_s24, %s5019_s26  ;;  %p5028_p10 = scmp.lt.s32.totalorder %s5019_s26, %s5019_s26 }
 0x1f6   : > { %p5022_p7 = pnand %p5020_p5, %p5470_p8  ;;  %p5029_p11 = por %p5028_p10, %p5027_p4 }
 0x1f8   : > { %p5023_p9 = pneg %p5022_p7 }
 0x1fa   : > { %p5030_p12 = pnand %p5029_p11, %p5023_p9 }
 0x1fc   : > { %5033 = shalt.err (!%p5030_p12)
}
 0x1fd   : > { %4244 = dma.hbm_to_vmem [thread:$0]  (!%p5454_p6), %s6476_s4, 2048, %s5793_s24, [#allocation30], %s5279_s30, %s5279_s30, %s5280_s0  }
 0x1fe   : > { %s5290_s25 = smov [#allocation34]   ;;  %s5291_s1 = smov [#allocation35]  }
 0x1ff   : > { %s779_s23 = sshll.u32 %s5290_s25, 4  ;;  %s790_s20 = sshll.u32 %s5291_s1, 4  ;;  %s780_s23 = int_to_ptr.vmem [resolvable:$true] %s779_s23  ;;  %s5842_s20 = int_to_ptr.vmem [resolvable:$true] %s790_s20 }
 0x200   : > { %s6477_s7 = sld [smem:[#allocation72_spill]] }
 0x206   : > { %s5034_s26 = scalar_lea.hbm %s6477_s7, 16 }
 0x207   : > { %p5035_p13 = scmp.ne.s32.totalorder %s6477_s7, %s5034_s26  ;;  %p5041_p3 = scmp.lt.u32.totalorder %s5034_s26, %s6477_s7 }
 0x209   : > { %p5037_p0 = pnand %p5035_p13, %p5470_p8 }
 0x20b   : > { %p5038_p1 = pneg %p5037_p0 }
 0x20d   : > { %p5043_p2 = pnand %p5041_p3, %p5038_p1 }
 0x20f   : > { %5046 = shalt.err (!%p5043_p2)
}
 0x210   : > { %s5047_s0 = scalar_lea.vmem %s780_s23, 16  ;;  %s5054_s24 = scalar_lea.vmem %s780_s23, 32 }
 0x211   : > { %p5048_p5 = scmp.ne.s32.totalorder %s780_s23, %s5047_s0  ;;  %p5055_p4 = scmp.lt.s32.totalorder %s780_s23, %s780_s23 }
 0x212   : > { %p5056_p10 = scmp.lt.s32.totalorder %s5054_s24, %s5047_s0 }
 0x213   : > { %p5050_p7 = pnand %p5048_p5, %p5470_p8 }
 0x214   : > { %p5057_p11 = por %p5056_p10, %p5055_p4 }
 0x215   : > { %p5051_p9 = pneg %p5050_p7 }
 0x217   : > { %p5058_p12 = pnand %p5057_p11, %p5051_p9 }
 0x219   : > { %5061 = shalt.err (!%p5058_p12)
}
 0x21a   : > { %4250 = dma.hbm_to_vmem [thread:$0]  (!%p5454_p6), %s6477_s7, 16, %s780_s23, [#allocation33]  }
 0x21b   : > { %s6478_s1 = sld [smem:[#allocation73_spill]] }
 0x221   : > { %s5062_s22 = scalar_lea.hbm %s6478_s1, 16 }
 0x222   : > { %p5063_p13 = scmp.ne.s32.totalorder %s6478_s1, %s5062_s22  ;;  %p5069_p3 = scmp.lt.u32.totalorder %s5062_s22, %s6478_s1 }
 0x224   : > { %p5065_p0 = pnand %p5063_p13, %p5470_p8 }
 0x226   : > { %p5066_p1 = pneg %p5065_p0 }
 0x228   : > { %p5071_p2 = pnand %p5069_p3, %p5066_p1 }
 0x22a   : > { %5074 = shalt.err (!%p5071_p2)
}
 0x22b   : > { %s5075_s23 = scalar_lea.vmem %s5842_s20, 16  ;;  %s5082_s0 = scalar_lea.vmem %s5842_s20, 32 }
 0x22c   : > { %p5076_p5 = scmp.ne.s32.totalorder %s5842_s20, %s5075_s23  ;;  %p5083_p4 = scmp.lt.s32.totalorder %s5842_s20, %s5842_s20 }
 0x22d   : > { %p5084_p10 = scmp.lt.s32.totalorder %s5082_s0, %s5075_s23 }
 0x22e   : > { %p5078_p7 = pnand %p5076_p5, %p5470_p8 }
 0x22f   : > { %p5085_p11 = por %p5084_p10, %p5083_p4 }
 0x230   : > { %p5079_p9 = pneg %p5078_p7 }
 0x232   : > { %p5086_p12 = pnand %p5085_p11, %p5079_p9 }
 0x234   : > { %5089 = shalt.err (!%p5086_p12)
}
 0x235   : > { %s6479_s29 = sld [smem:[#allocation55_spill]]  ;;  %s6480_s27 = sld [smem:[#allocation54_spill]] }
 0x236   : > { %s6481_s5 = sld [smem:[#allocation53_spill]]  ;;  %s6482_s25 = sld [smem:[#allocation52_spill]] }
 0x237   : > { %s6483_s22 = sld [smem:[#allocation56_spill]] }
 0x238   : > { %4253 = dma.hbm_to_vmem [thread:$0]  (!%p5454_p6), %s6478_s1, 16, %s5842_s20, [#allocation36]  }
 0x23b   : > { %s3624_s6 = sadd.s32 4294967294, %s6479_s29   ;;  %s5888_s30 = sadd.s32 1, %s6479_s29  }
 0x23c   : > { %s55_s9 = ssub.s32 %s6479_s29, %s5888_s30  ;;  %s58_s26 = sadd.s32 1, %s6480_s27 }
 0x23d   : > { %p56_p8 = scmp.eq.s32.totalorder %s55_s9, 0  ;;  %p65_p13 = scmp.ne.s32.totalorder %s6480_s27, %s6481_s5 }
 0x23e   : > { %p66_p0 = scmp.eq.s32.totalorder %s6479_s29, 0  ;;  %p71_p1 = scmp.ne.s32.totalorder %s6481_s5, %s6482_s25 }
 0x23f   : > { %s5899_s28 = scalar_select %p56_p8, %s6480_s27, %s58_s26  }
 0x240   : > { %p5901_p3 = por %p66_p0, %p65_p13  ;;  %p6485_p2 = scmp.eq.s32.totalorder %s6483_s22, 0 }
 0x241   : > { %p541_p5 = scmp.eq.s32.totalorder %s6483_s22, 1  ;;  %p547_p7 = scmp.eq.s32.totalorder %s3624_s6, 1 }
 0x242   : > { %p5907_p6 = por %p6485_p2, %p71_p1  ;;  %p4285_p9 = scmp.lt.s32.totalorder %s6479_s29, 2 }
 0x243   : > { %s5914_s0 = sand.u32 1, %s6480_s27   ;;  %p5916_p4 = por %p541_p5, %p65_p13 }
 0x244   : > { %p5920_p10 = por %p547_p7, %p71_p1  ;;  %s3647_s5 = sshll.u32 %s5914_s0, 3 }
 0x245   : > { %s6487_s24 = scalar_select %p5916_p4, 1, 0 }
 0x246   : > { %s6488_s3 = scalar_select %p5920_p10, 1, 0 }
 0x247   : > { %s3648_s25 = sshll.u32 %s6479_s29, 7  ;;  %s6489_s22 = sld [smem:[#allocation58_spill]] }
 0x248   : > { %s805_s27 = scalar_lea.vmem [#allocation2], %s3647_s5  ;;  %p5935_p11 = pnand %p4285_p9, %p5901_p3 }
 0x249   : > { %s812_s1 = sshll.u32 %s805_s27, 4  ;;  %s3649_s4 = sshll.u32 %s5914_s0, 4  ;;  %s5931_s1 = int_to_ptr.vmem [resolvable:$true] %s812_s1 }
 0x24a   : > { %s802_s9 = scalar_lea.sflag [#allocation3], %s5914_s0  ;;  %p5092_p8 = pneg %p5935_p11 }
 0x24d   : > { %s5929_s6 = scalar_lea.hbm %s6489_s22, %s3648_s25  ;;  %s5095_s23 = scalar_lea.hbm %s6489_s22, 256 }
 0x24e   : > { %s5090_s25 = scalar_lea.hbm %s5929_s6, 128  ;;  %p5096_p1 = scmp.lt.u32.totalorder %s5929_s6, %s6489_s22 }
 0x24f   : > { %p5091_p12 = scmp.ne.s32.totalorder %s5929_s6, %s5090_s25  ;;  %p5097_p3 = scmp.lt.u32.totalorder %s5095_s23, %s5090_s25 }
 0x250   : > { %p5099_p5 = scmp.lt.u32.totalorder %s5090_s25, %s5929_s6 }
 0x251   : > { %p5093_p13 = pnand %p5092_p8, %p5091_p12  ;;  %p5098_p2 = por %p5097_p3, %p5096_p1 }
 0x253   : > { %p5094_p0 = pneg %p5093_p13  ;;  %p5100_p7 = por %p5099_p5, %p5098_p2 }
 0x255   : > { %p5101_p9 = pnand %p5100_p7, %p5094_p0 }
 0x257   : > { %5104 = shalt.err (!%p5101_p9)
}
 0x258   : > { %s5105_s7 = scalar_lea.vmem %s5931_s1, 128  ;;  %s5292_s5 = smov [#allocation2]  }
 0x259   : > { %p5106_p12 = scmp.ne.s32.totalorder %s5931_s1, %s5105_s7  ;;  %s5110_s26 = sshll.u32 %s5292_s5, 4  ;;  %s5111_s26 = int_to_ptr.vmem [resolvable:$false] %s5110_s26 }
 0x25a   : > { %s5112_s8 = scalar_lea.vmem %s5111_s26, 256  ;;  %p5113_p4 = scmp.lt.s32.totalorder %s5931_s1, %s5111_s26 }
 0x25b   : > { %p5108_p13 = pnand %p5106_p12, %p5092_p8  ;;  %p5114_p1 = scmp.lt.s32.totalorder %s5112_s8, %s5105_s7 }
 0x25d   : > { %p5109_p10 = pneg %p5108_p13  ;;  %p5115_p3 = por %p5114_p1, %p5113_p4 }
 0x25f   : > { %p5116_p2 = pnand %p5115_p3, %p5109_p10 }
 0x261   : > { %5119 = shalt.err (!%p5116_p2)
}
 0x262   : > { %4257 = dma.hbm_to_vmem [thread:$0]  (!%p5935_p11), %s5929_s6, 128, %s5931_s1, %s802_s9  }
 0x263   : > { %s823_s25 = scalar_lea.vmem [#allocation5], %s3649_s4  ;;  %s3810_s27 = sshll.u32 %s6479_s29, 10 }
 0x264   : > { %s830_s23 = sshll.u32 %s823_s25, 4  ;;  %s6491_s26 = sld [smem:[#allocation59_spill]]  ;;  %s5969_s23 = int_to_ptr.vmem [resolvable:$true] %s830_s23 }
 0x265   : > { %s6492_s10 = sand.u32 1, %s6479_s29  }
 0x266   : > { %s5979_s11 = scalar_lea.sflag [#allocation6], %s6492_s10 }
 0x26a   : > { %s5975_s8 = scalar_lea.hbm %s6491_s26, %s3810_s27  ;;  %s5125_s0 = scalar_lea.hbm %s6491_s26, 4096 }
 0x26b   : > { %s5120_s12 = scalar_lea.hbm %s5975_s8, 256  ;;  %p5126_p5 = scmp.lt.u32.totalorder %s5975_s8, %s6491_s26 }
 0x26c   : > { %p5121_p4 = scmp.ne.s32.totalorder %s5975_s8, %s5120_s12  ;;  %p5127_p7 = scmp.lt.u32.totalorder %s5125_s0, %s5120_s12 }
 0x26d   : > { %p5129_p12 = scmp.lt.u32.totalorder %s5120_s12, %s5975_s8 }
 0x26e   : > { %p5123_p10 = pnand %p5121_p4, %p5092_p8  ;;  %p5128_p9 = por %p5127_p7, %p5126_p5 }
 0x270   : > { %p5124_p0 = pneg %p5123_p10  ;;  %p5130_p13 = por %p5129_p12, %p5128_p9 }
 0x272   : > { %p5131_p1 = pnand %p5130_p13, %p5124_p0 }
 0x274   : > { %5134 = shalt.err (!%p5131_p1)
}
 0x275   : > { %s5135_s10 = scalar_lea.vmem %s5969_s23, 256  ;;  %s5293_s29 = smov [#allocation5]  }
 0x276   : > { %p5136_p3 = scmp.ne.s32.totalorder %s5969_s23, %s5135_s10  ;;  %s5140_s25 = sshll.u32 %s5293_s29, 4  ;;  %s5141_s25 = int_to_ptr.vmem [resolvable:$false] %s5140_s25 }
 0x277   : > { %s5142_s27 = scalar_lea.vmem %s5141_s25, 512  ;;  %p5143_p10 = scmp.lt.s32.totalorder %s5969_s23, %s5141_s25 }
 0x278   : > { %p5138_p2 = pnand %p5136_p3, %p5092_p8  ;;  %p5144_p5 = scmp.lt.s32.totalorder %s5142_s27, %s5135_s10 }
 0x27a   : > { %p5139_p4 = pneg %p5138_p2  ;;  %p5145_p7 = por %p5144_p5, %p5143_p10 }
 0x27c   : > { %p5146_p9 = pnand %p5145_p7, %p5139_p4 }
 0x27e   : > { %5149 = shalt.err (!%p5146_p9)
}
 0x27f   : > { %s6493_s12 = smov 8   ;;  %s6494_s5 = smov 128  }
 0x280   : > { %4260 = dma.hbm_to_vmem [thread:$0]  (!%p5935_p11), %s5975_s8, 256, %s5969_s23, %s5979_s11, %s6494_s5, %s6494_s5, %s6493_s12  }
 0x281   : > { %s6495_s7 = sld [smem:[#allocation57_spill]] }
 0x287   : > { %p6496_p8 = scmp.ne.s32.totalorder %s6495_s7, 0 }
 0x288   : > { %s6497_s4 = sld [smem:[#allocation53_spill]] (!%p6496_p8) }
 0x289   : > { %842 = sbr.rel (%p6496_p8) target bundleno = 7295 (0x1c7f), region = 108 }
 0x28e   : > { %s6011_s1 = sand.u32 (!%p6496_p8), 1, %s6497_s4  }
 0x28f   : > { %s3653_s0 = sshll.u32 (!%p6496_p8), %s6011_s1, 3  ;;  %s845_s6 = scalar_lea.sflag (!%p6496_p8), [#allocation3], %s6011_s1 }
 0x290   : > { %s6017_s2 = scalar_lea.vmem [#allocation2], %s3653_s0 }
 0x291   : > { %5195 = dma.done.wait (%p5907_p6), %s845_s6, 128  }
 0x292   : > { %5197 = vsyncadd (%p5907_p6), %s845_s6, 4294967168  ;;  %s6498_s11 = sld [smem:[#allocation56_spill]]  ;;  %s3654_s8 = sshll.u32 %s6011_s1, 4 }
 0x293   : > { %s6025_s10 = scalar_lea.vmem [#allocation5], %s3654_s8 }
 0x298   : > { %s853_s23 = sand.u32 1, %s6498_s11  }
 0x299   : > { %s854_s9 = scalar_lea.sflag [#allocation6], %s853_s23 }
 0x29a   : > { %5199 = dma.done.wait (%p5907_p6), %s854_s9, 256  }
 0x29b   : > { %5201 = vsyncadd (%p5907_p6), %s854_s9, 4294967040  ;;  %p6499_p11 = scmp.eq.s32.totalorder %s6498_s11, 0 }
 0x29d   : > { %5203 = dma.done.wait (%p6499_p11), [#allocation6], 3072   ;;  %p6500_p0 = pmov %p6499_p11 }
 0x29f   : > { %5205 = vsyncadd (%p6500_p0), [#allocation6], 4294964224  ;;  %p6501_p12 = pmov %p6500_p0 }
 0x2a0   : > { %p6502_p13 = pmov %p6500_p0 }
 0x2a1   : > { %5207 = dma.done.wait (%p6501_p12), [#allocation9], 1072  }
 0x2a2   : > { %5209 = vsyncadd (%p6502_p13), [#allocation9], 4294966224  ;;  %p6503_p1 = pmov %p6500_p0 }
 0x2a3   : > { %p6504_p3 = pmov %p6500_p0 }
 0x2a4   : > { %5211 = dma.done.wait (%p6503_p1), [#allocation12], 32  }
 0x2a5   : > { %5213 = vsyncadd (%p6504_p3), [#allocation12], 4294967264  ;;  %p6505_p6 = pmov %p6500_p0 }
 0x2a6   : > { %p6506_p2 = pmov %p6500_p0 }
 0x2a7   : > { %5215 = dma.done.wait (%p6505_p6), [#allocation15], 1040  }
 0x2a8   : > { %5217 = vsyncadd (%p6506_p2), [#allocation15], 4294966256  ;;  %p6507_p4 = pmov %p6500_p0 }
 0x2a9   : > { %p6508_p10 = pmov %p6500_p0 }
 0x2aa   : > { %5219 = dma.done.wait (%p6507_p4), [#allocation18], 2064  }
 0x2ab   : > { %5221 = vsyncadd (%p6508_p10), [#allocation18], 4294965232  ;;  %p6509_p5 = pmov %p6500_p0 }
 0x2ac   : > { %p6510_p7 = pmov %p6500_p0 }
 0x2ad   : > { %5223 = dma.done.wait (%p6509_p5), [#allocation21], 1056  }
 0x2ae   : > { %5225 = vsyncadd (%p6510_p7), [#allocation21], 4294966240  ;;  %p6511_p9 = pmov %p6500_p0 }
 0x2af   : > { %p6512_p8 = pmov %p6500_p0 }
 0x2b0   : > { %5227 = dma.done.wait (%p6511_p9), [#allocation24], 32  }
 0x2b1   : > { %5229 = vsyncadd (%p6512_p8), [#allocation24], 4294967264  ;;  %p6513_p11 = pmov %p6500_p0 }
 0x2b3   : > { %5231 = dma.done.wait (%p6513_p11), [#allocation27], 2064  }
 0x2b4   : > { %5233 = vsyncadd (%p6500_p0), [#allocation27], 4294965232  ;;  %p6514_p12 = pmov %p6500_p0 }
 0x2b5   : > { %p6515_p13 = pmov %p6500_p0 }
 0x2b6   : > { %5235 = dma.done.wait (%p6514_p12), [#allocation30], 2080  }
 0x2b7   : > { %5237 = vsyncadd (%p6515_p13), [#allocation30], 4294965216  ;;  %p6516_p1 = pmov %p6500_p0 }
 0x2b8   : > { %p6517_p3 = pmov %p6500_p0 }
 0x2b9   : > { %5239 = dma.done.wait (%p6516_p1), [#allocation33], 32  }
 0x2ba   : > { %5241 = vsyncadd (%p6517_p3), [#allocation33], 4294967264  ;;  %p6518_p6 = pmov %p6500_p0 }
 0x2bb   : > { %p6519_p2 = pmov %p6500_p0 }
 0x2bc   : > { %5243 = dma.done.wait (%p6518_p6), [#allocation36], 16  }
 0x2bd   : > { %5245 = vsyncadd (%p6519_p2), [#allocation36], 4294967280  ;;  %v5294_v0 = vmov 0   ;;  %v4372_v1 = vld [vmem:[#allocation7 + $0x4] ss:$12 sps:$4 sm:$0xff]   ;;  %v5295_v19 = vmov 0.0   ;;  %v1040_v20 = vlaneseq }
 0x2be   : > { %1215 = vmatprep.mubr.bf16.mxu0 %v5294_v0  ;;  %v4374_v2 = vld [vmem:[#allocation7] ss:$12 sps:$4 sm:$0xff]   ;;  %1183 = vmatprep.subr.bf16.mxu0 %v4372_v1  ;;  %v4375_v3 = vld [vmem:[#allocation7 + $0x1c] ss:$12 sps:$4 sm:$0xff]   ;;  %v4377_v4 = vld [vmem:[#allocation7 + $0x18] ss:$12 sps:$4 sm:$0xff]  }
 0x2bf   : > { %1184 = vmatpush1.bf16.msra.mxu0 %v4374_v2  ;;  %v4378_v5 = vld [vmem:[#allocation7 + $0x34] ss:$12 sps:$4 sm:$0xff]   ;;  %v4380_v6 = vld [vmem:[#allocation7 + $0x30] ss:$12 sps:$4 sm:$0xff]   ;;  %v4381_v7 = vld [vmem:[#allocation7 + $0x4c] ss:$12 sps:$4 sm:$0xff]   ;;  %3907 = vmatprep.subr.bf16.mxu1 %v5295_v19 }
 0x2c0   : > { %1185 = vmatprep.subr.bf16.mxu0 %v4375_v3  ;;  %v4383_v8 = vld [vmem:[#allocation7 + $0x48] ss:$12 sps:$4 sm:$0xff]   ;;  %v4384_v9 = vld [vmem:[#allocation7 + $0x64] ss:$12 sps:$4 sm:$0xff]   ;;  %v4386_v10 = vld [vmem:[#allocation7 + $0x60] ss:$12 sps:$4 sm:$0xff]  }
 0x2c1   : > { %v4387_v11 = vld [vmem:[#allocation7 + $0x7c] ss:$12 sps:$4 sm:$0xff]   ;;  %v4389_v12 = vld [vmem:[#allocation7 + $0x78] ss:$12 sps:$4 sm:$0xff]   ;;  %v4390_v13 = vld [vmem:[#allocation7 + $0x94] ss:$12 sps:$4 sm:$0xff]  }
 0x2c2   : > { %v4392_v14 = vld [vmem:[#allocation7 + $0x90] ss:$12 sps:$4 sm:$0xff]   ;;  %v4393_v15 = vld [vmem:[#allocation7 + $0xac] ss:$12 sps:$4 sm:$0xff]   ;;  %v4395_v16 = vld [vmem:[#allocation7 + $0xa8] ss:$12 sps:$4 sm:$0xff]  }
 0x2c3   : > { %1186 = vmatpush1.bf16.msra.mxu0 %v4377_v4  ;;  %v6077_v17 = vld [vmem:[%s6017_s2] sm:$0xff]  ;;  %vm5296_vm0 = vmmov 0   ;;  %v6091_v21 = vshrl.u32 %v1040_v20, 7  ;;  %v6096_v23 = vld [vmem:[#allocation8] sm:$0x7]  ;;  %vm1284_vm1 = vcmask 261120  }
 0x2c4   : > { %1187 = vmatprep.subr.bf16.mxu0 %v4378_v5  ;;  %v6081_v18 = vpack.c.bf16 %v6077_v17, %v6077_v17  ;;  %3923 = vmatprep.mubr.msk.bf16.mxu1 %vm5296_vm0, %v5295_v19  ;;  %s5297_s20 = smov 96   ;;  %v4396_v37 = vld [vmem:[#allocation7 + $0x8] ss:$12 sps:$4 sm:$0xff]   ;;  %v4397_v38 = vld [vmem:[#allocation7 + $0x20] ss:$12 sps:$4 sm:$0xff]   ;;  %vm1331_vm2 = vcmask 64512  }
 0x2c5   : > { %v6094_v22 = vsub.s32 0, %v6091_v21  ;;  %v6099_v24 = vsub.s32 1, %v6091_v21  ;;  %3908 = vmatpush3.bf16.msra.mxu1 %v4396_v37  ;;  %v4398_v39 = vld [vmem:[#allocation7 + $0x38] ss:$12 sps:$4 sm:$0xff]   ;;  %v4399_v40 = vld [vmem:[#allocation7 + $0x50] ss:$12 sps:$4 sm:$0xff]  }
 0x2c6   : > { %3909 = vmatprep.subr.bf16.mxu1 %v5295_v19  ;;  %v4400_v41 = vld [vmem:[#allocation7 + $0x68] ss:$12 sps:$4 sm:$0xff]   ;;  %v4401_v42 = vld [vmem:[#allocation7 + $0x80] ss:$12 sps:$4 sm:$0xff]   ;;  %v4402_v45 = vld [vmem:[#allocation7 + $0x98] ss:$12 sps:$4 sm:$0xff]  }
 0x2c7   : > { %1188 = vmatpush1.bf16.msra.mxu0 %v4380_v6  ;;  %v1043_v25 = vrot.slane %v6096_v23, %v6094_v22  ;;  %v1047_v26 = vrot.slane %v6096_v23, %v6099_v24  ;;  %v4403_v46 = vld [vmem:[#allocation7 + $0xb0] ss:$12 sps:$4 sm:$0xff]   ;;  %v1050_v4 = vsub.s32 2, %v6091_v21  ;;  %s5298_s29 = smov 64   ;;  %vm1347_vm3 = vcmask 1043456   ;;  %v4406_v21 = vld [vmem:[#allocation10 + $0x10] sm:$0xff]  }
 0x2c8   : > { %1189 = vmatprep.subr.bf16.mxu0 %v4381_v7  ;;  %s5299_s25 = smov 32   ;;  %vm2323_vm5 = vcmask 130048   ;;  %s3807_s27 = sshll.u32 %s6498_s11, 7 }
 0x2c9   : > { %3910 = vmatpush3.bf16.msra.mxu1 %v4397_v38  ;;  %v1051_v5 = vrot.slane %v6096_v23, %v1050_v4  ;;  %v4407_v23 = vld [vmem:[#allocation10 + $0x18] sm:$0xff]   ;;  %s1002_s12 = scalar_lea.vmem [#allocation37], %s3653_s0  ;;  %s6520_s6 = sld [smem:[#allocation74_spill]] }
 0x2ca   : > { %3911 = vmatprep.subr.bf16.mxu1 %v5295_v19  ;;  %s3341_s5 = sshll.u32 %s1002_s12, 4  ;;  %s3328_s23 = scalar_lea.sflag [#allocation4], %s6011_s1  ;;  %s6343_s5 = int_to_ptr.vmem [resolvable:$true] %s3341_s5 }
 0x2cb   : > { %1190 = vmatpush1.bf16.msra.mxu0 %v4383_v8  ;;  %s5150_s8 = scalar_lea.vmem %s6343_s5, 128  ;;  %p6521_p10 = scmp.ne.s32.totalorder %s6487_s24, 0 }
 0x2cc   : > { %1191 = vmatprep.subr.bf16.mxu0 %v4384_v9  ;;  %p5151_p4 = scmp.ne.s32.totalorder %s6343_s5, %s5150_s8  ;;  %s5301_s0 = smov [#allocation37]  }
 0x2cd   : > { %3912 = vmatpush3.bf16.msra.mxu1 %v4398_v39  ;;  %s5154_s11 = sshll.u32 %s5301_s0, 4  ;;  %s5155_s11 = int_to_ptr.vmem [resolvable:$false] %s5154_s11 }
 0x2ce   : > { %3913 = vmatprep.subr.bf16.mxu1 %v5295_v19  ;;  %p5152_p5 = pnand %p5151_p4, %p6521_p10  ;;  %s5156_s9 = scalar_lea.vmem %s5155_s11, 256 }
 0x2cf   : > { %1192 = vmatpush1.bf16.msra.mxu0 %v4386_v10  ;;  %s6341_s2 = scalar_lea.hbm %s6520_s6, %s3807_s27  ;;  %p5157_p9 = scmp.lt.s32.totalorder %s6343_s5, %s5155_s11 }
 0x2d0   : > { %1193 = vmatprep.subr.bf16.mxu0 %v4387_v11  ;;  %p5153_p7 = pneg %p5152_p5  ;;  %p5158_p8 = scmp.lt.s32.totalorder %s5156_s9, %s5150_s8 }
 0x2d1   : > { %3914 = vmatpush3.bf16.msra.mxu1 %v4399_v40 }
 0x2d2   : > { %3915 = vmatprep.subr.bf16.mxu1 %v5295_v19  ;;  %p5159_p11 = por %p5158_p8, %p5157_p9 }
 0x2d3   : > { %1194 = vmatpush1.bf16.msra.mxu0 %v4389_v12 }
 0x2d4   : > { %1195 = vmatprep.subr.bf16.mxu0 %v4390_v13  ;;  %p5160_p0 = pnand %p5159_p11, %p5153_p7 }
 0x2d5   : > { %3916 = vmatpush3.bf16.msra.mxu1 %v4400_v41 }
 0x2d6   : > { %3917 = vmatprep.subr.bf16.mxu1 %v5295_v19 }
 0x2d7   : > { %1196 = vmatpush1.bf16.msra.mxu0 %v4392_v14 }
 0x2d8   : > { %1197 = vmatprep.subr.bf16.mxu0 %v4393_v15 }
 0x2d9   : > { %3918 = vmatpush3.bf16.msra.mxu1 %v4401_v42 }
 0x2da   : > { %3919 = vmatprep.subr.bf16.mxu1 %v5295_v19 }
 0x2db   : > { %1198 = vmatpush1.bf16.msra.mxu0 %v4395_v16 }
 0x2dc   : > { %3927 = vmatprep.subr.bf16.mxu0 %v5295_v19 }
 0x2dd   : > { %3920 = vmatpush3.bf16.msra.mxu1 %v4402_v45 }
 0x2de   : > { %1216 = vmatmul.mubr.bf16.vlgmr.msra.gmra.mrb[0].mxu0 %v6081_v18  ;;  %3921 = vmatprep.subr.bf16.mxu1 %v5295_v19 }
 0x2df   : > { %3929 = vmatprep.mubr.msk.bf16.mxu0 %vm5296_vm0, %v5295_v19 }
 0x2e1   : > { %3922 = vmatpush3.bf16.msra.mxu1 %v4403_v46 }
 0x2e2   : > { %3933 = vmatprep.subr.bf16.mxu1 %v5295_v19 }
 0x2e4   : > { %3924 = vmatmul.mubr.bf16.vlgmr.msra.gmra.mrb[0].mxu1 %v6081_v18 }
 0x2e5   : > { %3935 = vmatprep.mubr.msk.bf16.mxu1 %vm5296_vm0, %v5295_v19 }
 0x3b1   : > { %v1217_v27 = vpop.f32.mrb[0].mxu0 }
 0x3b2   : > { %v1218_v28 = vadd.f32 %v1217_v27, %v1043_v25  ;;  %v1219_v29 = vpop.f32.mrb[1].mxu0 }
 0x3b3   : > { %v1220_v30 = vadd.f32 %v1219_v29, %v1047_v26  ;;  %v1221_v31 = vpop.f32.mrb[2].mxu0 }
 0x3b4   : > { %v1222_v32 = vpop.f32.mrb[3].mxu0  ;;  %v1280_v33 = vmul.f32 0.17677669, %v1218_v28 }
 0x3b5   : > { %v6105_v34 = vpack.c.bf16 %v1220_v30, %v1220_v30  ;;  %v4404_v30 = vld [vmem:[#allocation10] sm:$0xff]   ;;  %v4405_v32 = vld [vmem:[#allocation10 + $0x8] sm:$0xff]  }
 0x3b6   : > { %v6111_v36 = vpack.c.bf16 %v1280_v33, %v1280_v33 }
 0x3b7   : > { %1396 = vrot.lane.b32.xlu0 %v6105_v34, %s5297_s20  ;;  %v1289_v35 = vsel %vm1284_vm1, %v6105_v34, 0  ;;  %v1258_v61 = vpop.f32.mrb[0].mxu1 }
 0x3b8   : > { %3928 = vmatpush3.bf16.xpose.msra.mxu0 %v1289_v35  ;;  %v3925_v62 = vpop.f32.mrb[1].mxu1  ;;  %v1259_v6 = vadd.f32 %v1258_v61, %v1051_v5 }
 0x3b9   : > { %3939 = vmatprep.subr.bf16.mxu0 %v5295_v19  ;;  %v1261_v63 = vpop.f32.mrb[2].mxu1 }
 0x3ba   : > { %v3926_v1 = vpop.f32.mrb[3].mxu1  ;;  %v6141_v7 = vpack.c.bf16 %v1259_v6, %v1259_v6  ;;  %v4408_v6 = vld [vmem:[#allocation10 + $0x20] sm:$0xff]  }
 0x3bb   : > { %1393 = vrot.lane.b32.xlu0 %v6111_v36, %s5297_s20 }
 0x3bc   : > { %v1349_v8 = vsel %vm1347_vm3, %v6141_v7, 0 }
 0x3bd   : > { %3934 = vmatpush3.bf16.msra.mxu1 %v1349_v8 }
 0x3be   : > { %3945 = vmatprep.subr.bf16.mxu1 %v5295_v19 }
 0x3bf   : > { %3930 = vmatmul.mubr.msk.bf16.vlgmr.msra.gmra.mrb[4].mxu0 %vm1284_vm1, %v6111_v36 }
 0x3c0   : > { %3941 = vmatprep.mubr.msk.bf16.mxu0 %vm5296_vm0, %v5295_v19 }
 0x429   : > { %v1397_v43 = vpop.permute.xlu0 %1396 }
 0x42a   : > { %v1402_v44 = vsel %vm1284_vm1, %v1397_v43, 0 }
 0x42b   : > { %3940 = vmatpush3.bf16.xpose.msra.mxu0 %v1402_v44 }
 0x42c   : > { %3951 = vmatprep.subr.bf16.mxu0 %v5295_v19 }
 0x42d   : > { %v1394_v47 = vpop.permute.xlu0 %1393 }
 0x432   : > { %3942 = vmatmul.mubr.msk.bf16.vlgmr.msra.gmra.mrb[8].mxu0 %vm1284_vm1, %v1394_v47 }
 0x433   : > { %3955 = vmatprep.mubr.msk.bf16.mxu0 %vm5296_vm0, %v5295_v19  ;;  %3952 = vmatpush3.bf16.msra.mxu0 %v4406_v21 }
 0x434   : > { %3953 = vmatprep.subr.bf16.mxu0 %v5295_v19 }
 0x437   : > { %3954 = vmatpush3.bf16.msra.mxu0 %v4407_v23 }
 0x438   : > { %3967 = vmatprep.subr.bf16.mxu0 %v5295_v19 }
 0x492   : > { %v1325_v48 = vpop.f32.mrb[4].mxu0 }
 0x493   : > { %v3931_v49 = vpop.f32.mrb[5].mxu0  ;;  %v1332_v50 = vsel %vm1331_vm2, %v1325_v48, -inf }
 0x494   : > { %1333 = vmax.xlane.f32.xlu1 %v1332_v50  ;;  %v1328_v51 = vpop.f32.mrb[6].mxu0 }
 0x495   : > { %v3932_v52 = vpop.f32.mrb[7].mxu0 }
 0x505   : > { %v1438_v53 = vpop.f32.mrb[8].mxu0 }
 0x506   : > { %v3943_v54 = vpop.f32.mrb[9].mxu0  ;;  %v1444_v55 = vsel %vm1331_vm2, %v1438_v53, -inf }
 0x507   : > { %1445 = vmax.xlane.f32.xlu1 %v1444_v55  ;;  %v1441_v56 = vpop.f32.mrb[10].mxu0 }
 0x508   : > { %v3944_v57 = vpop.f32.mrb[11].mxu0 }
 0x521   : > { %v1334_v58 = vpop.xlane.xlu1 %1333 }
 0x522   : > { %v1335_v59 = vsub.f32 %v1325_v48, %v1334_v58 }
 0x524   : > { %v1336_v60 = vmul.f32 1.442695, %v1335_v59 }
 0x526   : > { %4492 = vpow2.f32 %v1336_v60 }
 0x530   : > { %v4493_v2 = vpop.eup %4492 }
 0x531   : > { %v1338_v3 = vsel %vm1331_vm2, %v4493_v2, 0.0 }
 0x532   : > { %1339 = vadd.xlane.f32.xlu0 %v1338_v3 }
 0x548   : > { %1678 = vrot.lane.b32.xlu0 %v6141_v7, %s5298_s29 }
 0x594   : > { %v1446_v9 = vpop.xlane.xlu1 %1445 }
 0x595   : > { %v1447_v10 = vsub.f32 %v1438_v53, %v1446_v9 }
 0x597   : > { %v1448_v11 = vmul.f32 1.442695, %v1447_v10 }
 0x599   : > { %4494 = vpow2.f32 %v1448_v11 }
 0x5a3   : > { %v4495_v12 = vpop.eup %4494 }
 0x5a4   : > { %v1450_v13 = vsel %vm1331_vm2, %v4495_v12, 0.0 }
 0x5a5   : > { %1451 = vadd.xlane.f32.xlu1 %v1450_v13 }
 0x5b6   : > { %1457 = vrot.lane.b32.xlu1 %v6141_v7, %s5297_s20 }
 0x5ba   : > { %1618 = vrot.lane.b32.xlu1 %v6105_v34, %s5298_s29 }
 0x5be   : > { %1616 = vrot.lane.b32.xlu1 %v6111_v36, %s5298_s29 }
 0x5bf   : > { %v1340_v14 = vpop.xlane.xlu0 %1339 }
 0x5c0   : > { %4496 = vrcp.f32 %v1340_v14 }
 0x5c3   : > { %v1679_v33 = vpop.permute.xlu0 %1678 }
 0x5c4   : > { %v1684_v40 = vsel %vm1347_vm3, %v1679_v33, 0 }
 0x5ca   : > { %v4497_v15 = vpop.eup %4496 }
 0x5cb   : > { %v1342_v16 = vmul.f32 %v4497_v15, %v4493_v2 }
 0x5cd   : > { %v1343_v18 = vpack.c.bf16 %v1342_v16, %v1342_v16 }
 0x5cf   : > { %3936 = vmatmul.mubr.msk.bf16.vlgmr.msra.gmra.mrb[4].mxu1 %vm1331_vm2, %v1343_v18 }
 0x5d0   : > { %3947 = vmatprep.mubr.msk.bf16.mxu1 %vm5296_vm0, %v5295_v19 }
 0x632   : > { %v1452_v25 = vpop.xlane.xlu1 %1451 }
 0x633   : > { %4498 = vrcp.f32 %v1452_v25 }
 0x636   : > { %v1458_v26 = vpop.permute.xlu1 %1457 }
 0x637   : > { %v1463_v27 = vsel %vm1347_vm3, %v1458_v26, 0 }
 0x638   : > { %3946 = vmatpush3.bf16.msra.mxu1 %v1463_v27 }
 0x639   : > { %3959 = vmatprep.subr.bf16.mxu1 %v5295_v19 }
 0x63a   : > { %v1619_v42 = vpop.permute.xlu1 %1618 }
 0x63b   : > { %v1624_v47 = vsel %vm1284_vm1, %v1619_v42, 0 }
 0x63d   : > { %v4499_v28 = vpop.eup %4498 }
 0x63e   : > { %v1454_v29 = vmul.f32 %v4499_v28, %v4495_v12  ;;  %v1617_v49 = vpop.permute.xlu1 %1616 }
 0x640   : > { %v1455_v31 = vpack.c.bf16 %v1454_v29, %v1454_v29 }
 0x642   : > { %3948 = vmatmul.mubr.msk.bf16.vlgmr.msra.gmra.mrb[8].mxu1 %vm1331_vm2, %v1455_v31 }
 0x643   : > { %3960 = vmatpush3.bf16.msra.mxu1 %v4404_v30  ;;  %3963 = vmatprep.mubr.msk.bf16.mxu1 %vm5296_vm0, %v5295_v19 }
 0x644   : > { %3961 = vmatprep.subr.bf16.mxu1 %v5295_v19 }
 0x647   : > { %3962 = vmatpush3.bf16.msra.mxu1 %v4405_v32 }
 0x648   : > { %3973 = vmatprep.subr.bf16.mxu1 %v5295_v19 }
 0x6a2   : > { %v1385_v35 = vpop.f32.mrb[4].mxu1 }
 0x6a3   : > { %v1391_v37 = vpack.c.bf16 %v1385_v35, %v1385_v35  ;;  %v3937_v38 = vpop.f32.mrb[5].mxu1  ;;  %v4410_v35 = vld [vmem:[#allocation10 + $0x30] sm:$0xff]  }
 0x6a4   : > { %v1388_v39 = vpop.f32.mrb[6].mxu1 }
 0x6a5   : > { %v3938_v41 = vpop.f32.mrb[7].mxu1  ;;  %3964 = vmatmul.mubr.msk.bf16.vlgmr.msra.gmra.mrb[12].mxu1 %vm1284_vm1, %v1391_v37 }
 0x6a6   : > { %3974 = vmatpush3.bf16.msra.mxu1 %v1684_v40  ;;  %3975 = vmatprep.mubr.msk.bf16.mxu1 %vm5296_vm0, %v5295_v19 }
 0x6a7   : > { %3987 = vmatprep.subr.bf16.mxu1 %v5295_v19 }
 0x715   : > { %v1499_v43 = vpop.f32.mrb[8].mxu1 }
 0x716   : > { %v1505_v44 = vpack.c.bf16 %v1499_v43, %v1499_v43  ;;  %v3949_v45 = vpop.f32.mrb[9].mxu1 }
 0x717   : > { %v1502_v46 = vpop.f32.mrb[10].mxu1 }
 0x718   : > { %v3950_v48 = vpop.f32.mrb[11].mxu1  ;;  %3956 = vmatmul.mubr.msk.bf16.vlgmr.msra.gmra.mrb[12].mxu0 %vm1284_vm1, %v1505_v44 }
 0x719   : > { %3968 = vmatpush3.bf16.xpose.msra.mxu0 %v1624_v47  ;;  %3969 = vmatprep.mubr.msk.bf16.mxu0 %vm5296_vm0, %v5295_v19  ;;  %v4411_v47 = vld [vmem:[#allocation10 + $0x38] sm:$0xff]  }
 0x71a   : > { %3979 = vmatprep.subr.bf16.mxu0 %v5295_v19 }
 0x720   : > { %3970 = vmatmul.mubr.msk.bf16.vlgmr.msra.gmra.mrb[16].mxu0 %vm1284_vm1, %v1617_v49 }
 0x721   : > { %3983 = vmatprep.mubr.msk.bf16.mxu0 %vm5296_vm0, %v5295_v19  ;;  %3980 = vmatpush3.bf16.msra.mxu0 %v4408_v6  ;;  %v4424_v6 = vld [vmem:[#allocation19 + $0x34] ss:$8 sps:$4 sm:$0xff]  }
 0x722   : > { %3981 = vmatprep.subr.bf16.mxu0 %v5295_v19 }
 0x778   : > { %v1610_v50 = vpop.f32.mrb[12].mxu1 }
 0x779   : > { %v3965_v51 = vpop.f32.mrb[13].mxu1 }
 0x77a   : > { %v1613_v52 = vpop.f32.mrb[14].mxu1 }
 0x77b   : > { %v3966_v53 = vpop.f32.mrb[15].mxu1 }
 0x7eb   : > { %v1555_v54 = vpop.f32.mrb[12].mxu0 }
 0x7ec   : > { %v6180_v55 = vadd.f32 %v1610_v50, %v1555_v54  ;;  %v3957_v56 = vpop.f32.mrb[13].mxu0  ;;  %v3720_v54 = vld [vmem:[#allocation11] ss:$0 sm:$0xff] }
 0x7ed   : > { %v1558_v57 = vpop.f32.mrb[14].mxu0 }
 0x7ee   : > { %v3958_v58 = vpop.f32.mrb[15].mxu0 }
 0x7f3   : > { %v1660_v59 = vpop.f32.mrb[16].mxu0 }
 0x7f4   : > { %v3971_v60 = vpop.f32.mrb[17].mxu0  ;;  %v1666_v61 = vsel %vm1331_vm2, %v1660_v59, -inf }
 0x7f5   : > { %1667 = vmax.xlane.f32.xlu1 %v1666_v61  ;;  %v1663_v62 = vpop.f32.mrb[18].mxu0  ;;  %v4412_v61 = vld [vmem:[#allocation19] ss:$8 sps:$4 sm:$0xff]  }
 0x7f6   : > { %v3972_v63 = vpop.f32.mrb[19].mxu0  ;;  %v4414_v62 = vld [vmem:[#allocation19 + $0x4] ss:$8 sps:$4 sm:$0xff]  }
 0x7f7   : > { %v4417_v63 = vld [vmem:[#allocation19 + $0x14] ss:$8 sps:$4 sm:$0xff]  }
 0x882   : > { %v1668_v1 = vpop.xlane.xlu1 %1667 }
 0x883   : > { %v1669_v2 = vsub.f32 %v1660_v59, %v1668_v1  ;;  %v4421_v1 = vld [vmem:[#allocation16] sm:$0xff]  }
 0x885   : > { %v1670_v3 = vmul.f32 1.442695, %v1669_v2  ;;  %v4415_v2 = vld [vmem:[#allocation19 + $0x10] ss:$8 sps:$4 sm:$0xff]  }
 0x887   : > { %4500 = vpow2.f32 %v1670_v3  ;;  %v4420_v3 = vld [vmem:[#allocation19 + $0x24] ss:$8 sps:$4 sm:$0xff]  }
 0x891   : > { %v4501_v4 = vpop.eup %4500 }
 0x892   : > { %v1672_v5 = vsel %vm1331_vm2, %v4501_v4, 0.0 }
 0x893   : > { %1673 = vadd.xlane.f32.xlu0 %v1672_v5  ;;  %v4418_v5 = vld [vmem:[#allocation19 + $0x20] ss:$8 sps:$4 sm:$0xff]  }
 0x8a9   : > { %1785 = vrot.lane.b32.xlu0 %v6105_v34, %s5299_s25 }
 0x8ad   : > { %1783 = vrot.lane.b32.xlu0 %v6111_v36, %s5299_s25  ;;  %v4409_v36 = vld [vmem:[#allocation10 + $0x28] sm:$0xff]  }
 0x8ae   : > { %3982 = vmatpush3.bf16.msra.mxu0 %v4409_v36  ;;  %v4432_v36 = vld [vmem:[#allocation19 + $0x54] ss:$8 sps:$4 sm:$0xff]  }
 0x8af   : > { %3993 = vmatprep.subr.bf16.mxu0 %v5295_v19 }
 0x920   : > { %v1674_v8 = vpop.xlane.xlu0 %1673 }
 0x921   : > { %4502 = vrcp.f32 %v1674_v8  ;;  %v4428_v8 = vld [vmem:[#allocation19 + $0x44] ss:$8 sps:$4 sm:$0xff]  }
 0x924   : > { %v1786_v11 = vpop.permute.xlu0 %1785 }
 0x925   : > { %v1791_v13 = vsel %vm1284_vm1, %v1786_v11, 0 }
 0x928   : > { %v1784_v34 = vpop.permute.xlu0 %1783 }
 0x92b   : > { %v4503_v9 = vpop.eup %4502 }
 0x92c   : > { %v1676_v10 = vmul.f32 %v4503_v9, %v4501_v4  ;;  %v4425_v4 = vld [vmem:[#allocation16 + $0x8] sm:$0xff]  }
 0x92d   : > { %v4426_v9 = vld [vmem:[#allocation19 + $0x40] ss:$8 sps:$4 sm:$0xff]  }
 0x92e   : > { %v1677_v12 = vpack.c.bf16 %v1676_v10, %v1676_v10 }
 0x930   : > { %3976 = vmatmul.mubr.msk.bf16.vlgmr.msra.gmra.mrb[16].mxu1 %vm1331_vm2, %v1677_v12 }
 0x931   : > { %3988 = vmatpush3.bf16.xpose.msra.mxu1 %v1791_v13  ;;  %3989 = vmatprep.mubr.msk.bf16.mxu1 %vm5296_vm0, %v5295_v19 }
 0x932   : > { %3999 = vmatprep.subr.bf16.mxu1 %v5295_v19 }
 0x938   : > { %3990 = vmatmul.mubr.msk.bf16.vlgmr.msra.gmra.mrb[20].mxu1 %vm1284_vm1, %v1784_v34  ;;  %v4429_v34 = vld [vmem:[#allocation16 + $0x10] sm:$0xff]  }
 0x939   : > { %4003 = vmatprep.mubr.msk.bf16.mxu1 %vm5296_vm0, %v5295_v19  ;;  %4000 = vmatpush3.bf16.msra.mxu1 %v4410_v35 }
 0x93a   : > { %4001 = vmatprep.subr.bf16.mxu1 %v5295_v19 }
 0x93d   : > { %4002 = vmatpush3.bf16.msra.mxu1 %v4411_v47 }
 0x93e   : > { %2210 = vmatprep.subr.bf16.mxu1 %v4414_v62 }
 0xa03   : > { %v1720_v14 = vpop.f32.mrb[16].mxu1 }
 0xa04   : > { %v1726_v15 = vpack.c.bf16 %v1720_v14, %v1720_v14  ;;  %v3977_v16 = vpop.f32.mrb[17].mxu1  ;;  %v4430_v14 = vld [vmem:[#allocation19 + $0x50] ss:$8 sps:$4 sm:$0xff]  }
 0xa05   : > { %v1723_v18 = vpop.f32.mrb[18].mxu1  ;;  %v4436_v16 = vld [vmem:[#allocation19 + $0x64] ss:$8 sps:$4 sm:$0xff]  }
 0xa06   : > { %v3978_v21 = vpop.f32.mrb[19].mxu1  ;;  %3984 = vmatmul.mubr.msk.bf16.vlgmr.msra.gmra.mrb[20].mxu0 %vm1284_vm1, %v1726_v15  ;;  %v4433_v15 = vld [vmem:[#allocation16 + $0x18] sm:$0xff]   ;;  %v4434_v18 = vld [vmem:[#allocation19 + $0x60] ss:$8 sps:$4 sm:$0xff]  }
 0xa07   : > { %3995 = vmatprep.mubr.msk.bf16.mxu0 %vm5296_vm0, %v5295_v19  ;;  %v4437_v21 = vld [vmem:[#allocation16 + $0x20] sm:$0xff]  }
 0xa0b   : > { %v1827_v23 = vpop.f32.mrb[20].mxu1 }
 0xa0c   : > { %v3991_v25 = vpop.f32.mrb[21].mxu1  ;;  %v1833_v26 = vsel %vm1331_vm2, %v1827_v23, -inf }
 0xa0d   : > { %1834 = vmax.xlane.f32.xlu0 %v1833_v26  ;;  %v1830_v27 = vpop.f32.mrb[22].mxu1  ;;  %v4438_v25 = vld [vmem:[#allocation19 + $0x70] ss:$8 sps:$4 sm:$0xff]  }
 0xa0e   : > { %v3992_v28 = vpop.f32.mrb[23].mxu1  ;;  %v1987_v26 = vld [vmem:[%s6025_s10] sm:$0xff]  ;;  %v1988_v27 = vld [vmem:[%s6025_s10 + $0x8] sm:$0xff] }
 0xa0f   : > { %v4441_v28 = vld [vmem:[#allocation16 + $0x28] sm:$0xff]  }
 0xa9a   : > { %v1835_v29 = vpop.xlane.xlu0 %1834 }
 0xa9b   : > { %v1836_v30 = vsub.f32 %v1827_v23, %v1835_v29  ;;  %v4440_v23 = vld [vmem:[#allocation19 + $0x74] ss:$8 sps:$4 sm:$0xff]   ;;  %v2101_v29 = vpack.c.bf16 %v1988_v27, %v1987_v26 }
 0xa9d   : > { %v1837_v31 = vmul.f32 1.442695, %v1836_v30  ;;  %v4442_v30 = vld [vmem:[#allocation16 + $0x30] sm:$0xff]  }
 0xa9f   : > { %4504 = vpow2.f32 %v1837_v31  ;;  %v4443_v31 = vld [vmem:[#allocation16 + $0x38] sm:$0xff]  }
 0xaa9   : > { %v4505_v32 = vpop.eup %4504 }
 0xaaa   : > { %v1839_v33 = vsel %vm1331_vm2, %v4505_v32, 0.0 }
 0xaab   : > { %1840 = vadd.xlane.f32.xlu1 %v1839_v33 }
 0xabc   : > { %1845 = vrot.lane.b32.xlu1 %v6141_v7, %s5299_s25 }
 0xad9   : > { %v1776_v37 = vpop.f32.mrb[20].mxu0 }
 0xada   : > { %v1782_v38 = vadd.f32 %v1776_v37, %v6180_v55  ;;  %v3985_v39 = vpop.f32.mrb[21].mxu0 }
 0xadb   : > { %v1779_v40 = vpop.f32.mrb[22].mxu0 }
 0xadc   : > { %v3986_v41 = vpop.f32.mrb[23].mxu0  ;;  %v3722_v40 = vld [vmem:[#allocation14] ss:$0 sm:$0xff] }
 0xb38   : > { %v1841_v42 = vpop.xlane.xlu1 %1840 }
 0xb39   : > { %4506 = vrcp.f32 %v1841_v42 }
 0xb3c   : > { %v1846_v43 = vpop.permute.xlu1 %1845 }
 0xb3d   : > { %v1851_v44 = vsel %vm1347_vm3, %v1846_v43, 0 }
 0xb3e   : > { %3994 = vmatpush3.bf16.msra.mxu0 %v1851_v44  ;;  %v2118_v44 = vld [vmem:[#allocation20] sm:$0x3] }
 0xb3f   : > { %4007 = vmatprep.subr.bf16.mxu0 %v5295_v19 }
 0xb43   : > { %v4507_v45 = vpop.eup %4506 }
 0xb44   : > { %v1843_v7 = vmul.f32 %v4507_v45, %v4505_v32  ;;  %v2123_v45 = vrot.slane %v2118_v44, %v6094_v22 }
 0xb46   : > { %v1844_v46 = vpack.c.bf16 %v1843_v7, %v1843_v7  ;;  %v2127_v7 = vrot.slane %v2118_v44, %v6099_v24 }
 0xb48   : > { %3996 = vmatmul.mubr.msk.bf16.vlgmr.msra.gmra.mrb[24].mxu0 %vm1331_vm2, %v1844_v46 }
 0xb49   : > { %4023 = vmatprep.mubr.msk.bf16.mxu0 %vm5296_vm0, %v5295_v19  ;;  %4008 = vmatpush3.bf16.msra.mxu0 %v4421_v1 }
 0xb4a   : > { %4009 = vmatprep.subr.bf16.mxu0 %v5295_v19 }
 0xb4d   : > { %4010 = vmatpush3.bf16.msra.mxu0 %v4425_v4 }
 0xb4e   : > { %4011 = vmatprep.subr.bf16.mxu0 %v5295_v19 }
 0xb51   : > { %4012 = vmatpush3.bf16.msra.mxu0 %v4429_v34 }
 0xb52   : > { %4013 = vmatprep.subr.bf16.mxu0 %v5295_v19 }
 0xb55   : > { %4014 = vmatpush3.bf16.msra.mxu0 %v4433_v15 }
 0xb56   : > { %4015 = vmatprep.subr.bf16.mxu0 %v5295_v19 }
 0xb59   : > { %4016 = vmatpush3.bf16.msra.mxu0 %v4437_v21 }
 0xb5a   : > { %4017 = vmatprep.subr.bf16.mxu0 %v5295_v19 }
 0xb5d   : > { %4018 = vmatpush3.bf16.msra.mxu0 %v4441_v28 }
 0xb5e   : > { %4019 = vmatprep.subr.bf16.mxu0 %v5295_v19 }
 0xb61   : > { %4020 = vmatpush3.bf16.msra.mxu0 %v4442_v30 }
 0xb62   : > { %4021 = vmatprep.subr.bf16.mxu0 %v5295_v19 }
 0xb65   : > { %4022 = vmatpush3.bf16.msra.mxu0 %v4443_v31 }
 0xb66   : > { %4027 = vmatprep.subr.bf16.mxu0 %v5295_v19 }
 0xc1b   : > { %v1887_v48 = vpop.f32.mrb[24].mxu0 }
 0xc1c   : > { %v1893_v49 = vpack.c.bf16 %v1887_v48, %v1887_v48  ;;  %v3997_v50 = vpop.f32.mrb[25].mxu0 }
 0xc1d   : > { %v1890_v51 = vpop.f32.mrb[26].mxu0 }
 0xc1e   : > { %v3998_v52 = vpop.f32.mrb[27].mxu0  ;;  %4004 = vmatmul.mubr.msk.bf16.vlgmr.msra.gmra.mrb[24].mxu1 %vm1284_vm1, %v1893_v49 }
 0xc1f   : > { %2242 = vmatprep.mubr.bf16.mxu1 %v5294_v0  ;;  %2211 = vmatpush1.bf16.msra.mxu1 %v4412_v61 }
 0xc20   : > { %2212 = vmatprep.subr.bf16.mxu1 %v4417_v63 }
 0xc23   : > { %2213 = vmatpush1.bf16.msra.mxu1 %v4415_v2 }
 0xc24   : > { %2214 = vmatprep.subr.bf16.mxu1 %v4420_v3 }
 0xc27   : > { %2215 = vmatpush1.bf16.msra.mxu1 %v4418_v5  ;;  %v2270_v5 = vand.u32 127, %v1040_v20 }
 0xc28   : > { %2216 = vmatprep.subr.bf16.mxu1 %v4424_v6  ;;  %v5300_v6 = vmov -1e+30  }
 0xc29   : > { %vm2271_vm4 = vcmp.lt.s32.totalorder %v2270_v5, 12 }
 0xcf1   : > { %v1943_v53 = vpop.f32.mrb[24].mxu1 }
 0xcf2   : > { %v1949_v55 = vadd.f32 %v1943_v53, %v1782_v38  ;;  %v4005_v56 = vpop.f32.mrb[25].mxu1  ;;  %v3721_v38 = vld [vmem:[#allocation13] ss:$0 sm:$0xff] }
 0xcf3   : > { %v1946_v57 = vpop.f32.mrb[26].mxu1 }
 0xcf4   : > { %v1957_v58 = vadd.f32 %v3720_v54, %v1949_v55  ;;  %v4006_v59 = vpop.f32.mrb[27].mxu1  ;;  %v3723_v57 = vld [vmem:[#allocation17] ss:$0 sm:$0xff] }
 0xcf6   : > { %v1958_v60 = vadd.f32 %v1957_v58, %v6077_v17  ;;  %v4422_v17 = vld [vmem:[#allocation19 + $0x30] ss:$8 sps:$4 sm:$0xff]  }
 0xcf7   : > { %2217 = vmatpush1.bf16.msra.mxu1 %v4422_v17  ;;  %v6261_v17 = vsel %vm2271_vm4, 0.0, %v5300_v6 }
 0xcf8   : > { %1961 = vadd.xlane.f32.xlu1 %v1958_v60  ;;  %2218 = vmatprep.subr.bf16.mxu1 %v4428_v8 }
 0xcfb   : > { %2219 = vmatpush1.bf16.msra.mxu1 %v4426_v9 }
 0xcfc   : > { %2220 = vmatprep.subr.bf16.mxu1 %v4432_v36 }
 0xcff   : > { %2221 = vmatpush1.bf16.msra.mxu1 %v4430_v14 }
 0xd00   : > { %2222 = vmatprep.subr.bf16.mxu1 %v4436_v16 }
 0xd03   : > { %2223 = vmatpush1.bf16.msra.mxu1 %v4434_v18 }
 0xd04   : > { %2224 = vmatprep.subr.bf16.mxu1 %v4440_v23 }
 0xd07   : > { %2225 = vmatpush1.bf16.msra.mxu1 %v4438_v25 }
 0xd08   : > { %4033 = vmatprep.subr.bf16.mxu1 %v5295_v19 }
 0xd0a   : > { %2243 = vmatmul.mubr.bf16.vlgmr.msra.gmra.mrb[28].mxu1 %v2101_v29 }
 0xd0b   : > { %4035 = vmatprep.mubr.msk.bf16.mxu1 %vm5296_vm0, %v5295_v19 }
 0xd85   : > { %v1962_v10 = vpop.xlane.xlu1 %1961 }
 0xd86   : > { %v1964_v11 = vmul.f32 0.0078125, %v1962_v10 }
 0xd88   : > { %v1965_v12 = vsub.f32 %v1958_v60, %v1964_v11 }
 0xd8a   : > { %v1966_v13 = vmul.f32 %v1965_v12, %v1965_v12 }
 0xd8c   : > { %1967 = vadd.xlane.f32.xlu0 %v1966_v13 }
 0xddd   : > { %v2244_v46 = vpop.f32.mrb[28].mxu1 }
 0xdde   : > { %v2245_v47 = vadd.f32 %v2244_v46, %v2123_v45  ;;  %v2246_v48 = vpop.f32.mrb[29].mxu1  ;;  %v4445_v46 = vld [vmem:[#allocation22 + $0x8] sm:$0xff]  }
 0xddf   : > { %v2247_v49 = vadd.f32 %v2246_v48, %v2127_v7  ;;  %v2248_v50 = vpop.f32.mrb[30].mxu1 }
 0xde0   : > { %v2249_v51 = vadd.f32 %v2248_v50, %v2123_v45  ;;  %v2250_v52 = vpop.f32.mrb[31].mxu1  ;;  %v4444_v45 = vld [vmem:[#allocation22] sm:$0xff]  }
 0xde1   : > { %v2251_v53 = vadd.f32 %v2250_v52, %v2127_v7 }
 0xde2   : > { %v6236_v54 = vpack.c.bf16 %v2249_v51, %v2245_v47 }
 0xde3   : > { %v6238_v55 = vpack.c.bf16 %v2251_v53, %v2247_v49 }
 0xde4   : > { %2384 = vrot.lane.b32.xlu0 %v6236_v54, %s5297_s20  ;;  %v2281_v56 = vsel %vm1284_vm1, %v6236_v54, 0 }
 0xde5   : > { %4034 = vmatpush3.bf16.msra.mxu1 %v6238_v55 }
 0xde6   : > { %4045 = vmatprep.subr.bf16.mxu1 %v5295_v19 }
 0xe19   : > { %v1968_v32 = vpop.xlane.xlu0 %1967 }
 0xe1a   : > { %v1969_v33 = vmul.f32 0.0078125, %v1968_v32 }
 0xe1c   : > { %v1970_v35 = vadd.f32 1e-05, %v1969_v33 }
 0xe1e   : > { %4508 = vrsqrt.f32 %v1970_v35 }
 0xe28   : > { %v4509_v37 = vpop.eup %4508 }
 0xe29   : > { %v1972_v39 = vmul.f32 %v4509_v37, %v1965_v12 }
 0xe2b   : > { %v1979_v41 = vmul.f32 %v3721_v38, %v1972_v39  ;;  %v4446_v38 = vld [vmem:[#allocation22 + $0x10] sm:$0xff]   ;;  %v4447_v39 = vld [vmem:[#allocation22 + $0x18] sm:$0xff]  }
 0xe2d   : > { %v6228_v42 = vadd.f32 %v3722_v40, %v1979_v41 }
 0xe2f   : > { %v1989_v43 = vpack.c.bf16 %v6228_v42, %v6228_v42 }
 0xe31   : > { %4024 = vmatmul.mubr.bf16.vlgmr.msra.gmra.mrb[28].mxu0 %v1989_v43 }
 0xe32   : > { %4029 = vmatprep.mubr.msk.bf16.mxu0 %vm5296_vm0, %v5295_v19  ;;  %4028 = vmatpush3.bf16.xpose.msra.mxu0 %v2281_v56 }
 0xe33   : > { %4039 = vmatprep.subr.bf16.mxu0 %v5295_v19 }
 0xe56   : > { %v2385_v62 = vpop.permute.xlu0 %2384 }
 0xe57   : > { %v2390_v3 = vsel %vm1284_vm1, %v2385_v62, 0 }
 0xf04   : > { %v2095_v58 = vpop.f32.mrb[28].mxu0 }
 0xf05   : > { %v2096_v59 = vadd.f32 %v3723_v57, %v2095_v58  ;;  %v4025_v60 = vpop.f32.mrb[29].mxu0 }
 0xf06   : > { %v2098_v61 = vpop.f32.mrb[30].mxu0 }
 0xf07   : > { %v2273_v63 = vmul.f32 0.17677669, %v2096_v59  ;;  %v4026_v1 = vpop.f32.mrb[31].mxu0 }
 0xf09   : > { %v6247_v2 = vpack.c.bf16 %v2273_v63, %v2273_v63 }
 0xf0b   : > { %2381 = vrot.lane.b32.xlu0 %v6247_v2, %s5297_s20  ;;  %4030 = vmatmul.mubr.msk.bf16.vlgmr.msra.gmra.mrb[32].mxu0 %vm1284_vm1, %v6247_v2 }
 0xf0c   : > { %4040 = vmatpush3.bf16.xpose.msra.mxu0 %v2390_v3  ;;  %4041 = vmatprep.mubr.msk.bf16.mxu0 %vm5296_vm0, %v5295_v19 }
 0xf0d   : > { %4051 = vmatprep.subr.bf16.mxu0 %v5295_v19 }
 0xf7d   : > { %v2382_v4 = vpop.permute.xlu0 %2381 }
 0xf7e   : > { %4042 = vmatmul.mubr.msk.bf16.vlgmr.msra.gmra.mrb[36].mxu0 %vm1284_vm1, %v2382_v4 }
 0xf7f   : > { %4055 = vmatprep.mubr.msk.bf16.mxu0 %vm5296_vm0, %v5295_v19  ;;  %4052 = vmatpush3.bf16.msra.mxu0 %v4446_v38 }
 0xf80   : > { %4053 = vmatprep.subr.bf16.mxu0 %v5295_v19 }
 0xf83   : > { %4054 = vmatpush3.bf16.msra.mxu0 %v4447_v39 }
 0xf84   : > { %4067 = vmatprep.subr.bf16.mxu0 %v5295_v19 }
 0xfde   : > { %v2317_v8 = vpop.f32.mrb[32].mxu0 }
 0xfdf   : > { %v2318_v9 = vadd.f32 %v2317_v8, %v6261_v17  ;;  %v4031_v10 = vpop.f32.mrb[33].mxu0 }
 0xfe0   : > { %v2320_v11 = vpop.f32.mrb[34].mxu0 }
 0xfe1   : > { %v4032_v12 = vpop.f32.mrb[35].mxu0  ;;  %v2324_v13 = vsel %vm2323_vm5, %v2318_v9, -inf }
 0xfe2   : > { %2325 = vmax.xlane.f32.xlu1 %v2324_v13 }
0x1051   : > { %v2426_v34 = vpop.f32.mrb[36].mxu0 }
0x1052   : > { %v2427_v36 = vadd.f32 %v2426_v34, %v6261_v17  ;;  %v4043_v14 = vpop.f32.mrb[37].mxu0 }
0x1053   : > { %v2429_v15 = vpop.f32.mrb[38].mxu0 }
0x1054   : > { %v4044_v20 = vpop.f32.mrb[39].mxu0  ;;  %v2432_v16 = vsel %vm2323_vm5, %v2427_v36, -inf }
0x1055   : > { %2433 = vmax.xlane.f32.xlu0 %v2432_v16 }
0x106f   : > { %v2326_v18 = vpop.xlane.xlu1 %2325 }
0x1070   : > { %v2327_v21 = vsub.f32 %v2318_v9, %v2326_v18 }
0x1072   : > { %v2328_v23 = vmul.f32 1.442695, %v2327_v21 }
0x1074   : > { %4510 = vpow2.f32 %v2328_v23  ;;  %v4448_v23 = vld [vmem:[#allocation22 + $0x20] sm:$0xff]  }
0x107e   : > { %v4511_v25 = vpop.eup %4510 }
0x107f   : > { %v2330_v26 = vsel %vm2323_vm5, %v4511_v25, 0.0 }
0x1080   : > { %2331 = vadd.xlane.f32.xlu1 %v2330_v26 }
0x10e2   : > { %v2434_v27 = vpop.xlane.xlu0 %2433 }
0x10e3   : > { %v2435_v28 = vsub.f32 %v2427_v36, %v2434_v27 }
0x10e5   : > { %v2436_v29 = vmul.f32 1.442695, %v2435_v28 }
0x10e7   : > { %4512 = vpow2.f32 %v2436_v29 }
0x10f1   : > { %v4513_v30 = vpop.eup %4512 }
0x10f2   : > { %v2438_v31 = vsel %vm2323_vm5, %v4513_v30, 0.0 }
0x10f3   : > { %2439 = vadd.xlane.f32.xlu1 %v2438_v31 }
0x1104   : > { %2445 = vrot.lane.b32.xlu1 %v6238_v55, %s5297_s20 }
0x1108   : > { %2604 = vrot.lane.b32.xlu1 %v6236_v54, %s5298_s29 }
0x110c   : > { %2602 = vrot.lane.b32.xlu1 %v6247_v2, %s5298_s29 }
0x110d   : > { %v2332_v32 = vpop.xlane.xlu1 %2331 }
0x110e   : > { %4514 = vrcp.f32 %v2332_v32 }
0x1118   : > { %v4515_v33 = vpop.eup %4514 }
0x1119   : > { %v2334_v35 = vmul.f32 %v4515_v33, %v4511_v25 }
0x111b   : > { %v2335_v37 = vpack.c.bf16 %v2334_v35, %v2334_v35 }
0x111d   : > { %4036 = vmatmul.mubr.msk.bf16.vlgmr.msra.gmra.mrb[32].mxu1 %vm2323_vm5, %v2335_v37 }
0x111e   : > { %4047 = vmatprep.mubr.msk.bf16.mxu1 %vm5296_vm0, %v5295_v19 }
0x1180   : > { %v2440_v40 = vpop.xlane.xlu1 %2439 }
0x1181   : > { %4516 = vrcp.f32 %v2440_v40 }
0x1184   : > { %v2446_v41 = vpop.permute.xlu1 %2445 }
0x1185   : > { %4046 = vmatpush3.bf16.msra.mxu1 %v2446_v41 }
0x1186   : > { %4059 = vmatprep.subr.bf16.mxu1 %v5295_v19 }
0x1188   : > { %v2605_v52 = vpop.permute.xlu1 %2604 }
0x1189   : > { %v2610_v59 = vsel %vm1284_vm1, %v2605_v52, 0 }
0x118b   : > { %v4517_v43 = vpop.eup %4516 }
0x118c   : > { %v2442_v44 = vmul.f32 %v4517_v43, %v4513_v30  ;;  %v2603_v61 = vpop.permute.xlu1 %2602  ;;  %v4449_v30 = vld [vmem:[#allocation22 + $0x28] sm:$0xff]  }
0x118e   : > { %v2443_v7 = vpack.c.bf16 %v2442_v44, %v2442_v44 }
0x1190   : > { %4048 = vmatmul.mubr.msk.bf16.vlgmr.msra.gmra.mrb[36].mxu1 %vm2323_vm5, %v2443_v7 }
0x1191   : > { %4060 = vmatpush3.bf16.msra.mxu1 %v4444_v45  ;;  %4063 = vmatprep.mubr.msk.bf16.mxu1 %vm5296_vm0, %v5295_v19 }
0x1192   : > { %4061 = vmatprep.subr.bf16.mxu1 %v5295_v19 }
0x1195   : > { %4062 = vmatpush3.bf16.msra.mxu1 %v4445_v46 }
0x1196   : > { %4073 = vmatprep.subr.bf16.mxu1 %v5295_v19 }
0x11f0   : > { %v2373_v47 = vpop.f32.mrb[32].mxu1 }
0x11f1   : > { %v2379_v48 = vpack.c.bf16 %v2373_v47, %v2373_v47  ;;  %v4037_v49 = vpop.f32.mrb[33].mxu1 }
0x11f2   : > { %v2376_v50 = vpop.f32.mrb[34].mxu1  ;;  %v4450_v49 = vld [vmem:[#allocation22 + $0x30] sm:$0xff]  }
0x11f3   : > { %v4038_v51 = vpop.f32.mrb[35].mxu1  ;;  %4064 = vmatmul.mubr.msk.bf16.vlgmr.msra.gmra.mrb[40].mxu1 %vm1284_vm1, %v2379_v48 }
0x11f4   : > { %4075 = vmatprep.mubr.msk.bf16.mxu1 %vm5296_vm0, %v5295_v19 }
0x1263   : > { %v2485_v53 = vpop.f32.mrb[36].mxu1 }
0x1264   : > { %v2491_v56 = vpack.c.bf16 %v2485_v53, %v2485_v53  ;;  %v4049_v57 = vpop.f32.mrb[37].mxu1 }
0x1265   : > { %v2488_v58 = vpop.f32.mrb[38].mxu1 }
0x1266   : > { %v4050_v60 = vpop.f32.mrb[39].mxu1  ;;  %4056 = vmatmul.mubr.msk.bf16.vlgmr.msra.gmra.mrb[40].mxu0 %vm1284_vm1, %v2491_v56 }
0x1267   : > { %4068 = vmatpush3.bf16.xpose.msra.mxu0 %v2610_v59  ;;  %4069 = vmatprep.mubr.msk.bf16.mxu0 %vm5296_vm0, %v5295_v19 }
0x1268   : > { %4079 = vmatprep.subr.bf16.mxu0 %v5295_v19 }
0x126e   : > { %4070 = vmatmul.mubr.msk.bf16.vlgmr.msra.gmra.mrb[44].mxu0 %vm1284_vm1, %v2603_v61 }
0x126f   : > { %4083 = vmatprep.mubr.msk.bf16.mxu0 %vm5296_vm0, %v5295_v19  ;;  %4080 = vmatpush3.bf16.msra.mxu0 %v4448_v23  ;;  %v4466_v23 = vld [vmem:[#allocation28 + $0x44] ss:$8 sps:$4 sm:$0xff]  }
0x1270   : > { %4081 = vmatprep.subr.bf16.mxu0 %v5295_v19 }
0x1273   : > { %4082 = vmatpush3.bf16.msra.mxu0 %v4449_v30  ;;  %v4476_v30 = vld [vmem:[#allocation31 + $0x40] sm:$0xff]  }
0x1274   : > { %4093 = vmatprep.subr.bf16.mxu0 %v5295_v19 }
0x12c6   : > { %v2596_v62 = vpop.f32.mrb[40].mxu1 }
0x12c7   : > { %v4065_v63 = vpop.f32.mrb[41].mxu1 }
0x12c8   : > { %v2599_v1 = vpop.f32.mrb[42].mxu1 }
0x12c9   : > { %v4066_v3 = vpop.f32.mrb[43].mxu1 }
0x1339   : > { %v2541_v4 = vpop.f32.mrb[40].mxu0 }
0x133a   : > { %v6297_v5 = vadd.f32 %v2596_v62, %v2541_v4  ;;  %v4057_v6 = vpop.f32.mrb[41].mxu0  ;;  %v3768_v4 = vld [vmem:[#allocation23] ss:$0 sm:$0xff] }
0x133b   : > { %v2544_v8 = vpop.f32.mrb[42].mxu0 }
0x133c   : > { %v4058_v9 = vpop.f32.mrb[43].mxu0 }
0x1341   : > { %v2646_v10 = vpop.f32.mrb[44].mxu0 }
0x1342   : > { %v2647_v11 = vadd.f32 %v2646_v10, %v6261_v17  ;;  %v4071_v12 = vpop.f32.mrb[45].mxu0 }
0x1343   : > { %v2649_v13 = vpop.f32.mrb[46].mxu0  ;;  %v4454_v12 = vld [vmem:[#allocation28 + $0x4] ss:$8 sps:$4 sm:$0xff]  }
0x1344   : > { %v4072_v34 = vpop.f32.mrb[47].mxu0  ;;  %v2652_v36 = vsel %vm2323_vm5, %v2647_v11, -inf  ;;  %v4457_v13 = vld [vmem:[#allocation28 + $0x14] ss:$8 sps:$4 sm:$0xff]  }
0x1345   : > { %2653 = vmax.xlane.f32.xlu0 %v2652_v36  ;;  %v4455_v34 = vld [vmem:[#allocation28 + $0x10] ss:$8 sps:$4 sm:$0xff]   ;;  %v4460_v36 = vld [vmem:[#allocation28 + $0x24] ss:$8 sps:$4 sm:$0xff]  }
0x135b   : > { %2664 = vrot.lane.b32.xlu0 %v6238_v55, %s5298_s29 }
0x135f   : > { %2769 = vrot.lane.b32.xlu0 %v6236_v54, %s5299_s25 }
0x1363   : > { %2767 = vrot.lane.b32.xlu0 %v6247_v2, %s5299_s25 }
0x13d2   : > { %v2654_v14 = vpop.xlane.xlu0 %2653 }
0x13d3   : > { %v2655_v15 = vsub.f32 %v2647_v11, %v2654_v14  ;;  %v4458_v14 = vld [vmem:[#allocation28 + $0x20] ss:$8 sps:$4 sm:$0xff]  }
0x13d5   : > { %v2656_v20 = vmul.f32 1.442695, %v2655_v15 }
0x13d6   : > { %v2665_v16 = vpop.permute.xlu0 %2664 }
0x13d7   : > { %4518 = vpow2.f32 %v2656_v20  ;;  %4074 = vmatpush3.bf16.msra.mxu1 %v2665_v16 }
0x13d8   : > { %4087 = vmatprep.subr.bf16.mxu1 %v5295_v19 }
0x13da   : > { %v2770_v26 = vpop.permute.xlu0 %2769 }
0x13db   : > { %v2775_v28 = vsel %vm1284_vm1, %v2770_v26, 0  ;;  %v4472_v26 = vld [vmem:[#allocation28 + $0x64] ss:$8 sps:$4 sm:$0xff]  }
0x13de   : > { %v2768_v29 = vpop.permute.xlu0 %2767 }
0x13e1   : > { %v4519_v18 = vpop.eup %4518 }
0x13e2   : > { %v2658_v21 = vsel %vm2323_vm5, %v4519_v18, 0.0 }
0x13e3   : > { %2659 = vadd.xlane.f32.xlu1 %v2658_v21  ;;  %v4463_v21 = vld [vmem:[#allocation28 + $0x34] ss:$8 sps:$4 sm:$0xff]  }
0x1470   : > { %v2660_v54 = vpop.xlane.xlu1 %2659 }
0x1471   : > { %4520 = vrcp.f32 %v2660_v54  ;;  %v4464_v54 = vld [vmem:[#allocation28 + $0x40] ss:$8 sps:$4 sm:$0xff]  }
0x147b   : > { %v4521_v25 = vpop.eup %4520 }
0x147c   : > { %v2662_v2 = vmul.f32 %v4521_v25, %v4519_v18  ;;  %v4469_v25 = vld [vmem:[#allocation28 + $0x54] ss:$8 sps:$4 sm:$0xff]  }
0x147e   : > { %v2663_v27 = vpack.c.bf16 %v2662_v2, %v2662_v2  ;;  %v4467_v2 = vld [vmem:[#allocation28 + $0x50] ss:$8 sps:$4 sm:$0xff]  }
0x1480   : > { %4076 = vmatmul.mubr.msk.bf16.vlgmr.msra.gmra.mrb[44].mxu1 %vm2323_vm5, %v2663_v27  ;;  %v4470_v27 = vld [vmem:[#allocation28 + $0x60] ss:$8 sps:$4 sm:$0xff]  }
0x1481   : > { %4088 = vmatpush3.bf16.xpose.msra.mxu1 %v2775_v28  ;;  %4089 = vmatprep.mubr.msk.bf16.mxu1 %vm5296_vm0, %v5295_v19  ;;  %v4475_v28 = vld [vmem:[#allocation28 + $0x74] ss:$8 sps:$4 sm:$0xff]  }
0x1482   : > { %4099 = vmatprep.subr.bf16.mxu1 %v5295_v19 }
0x1488   : > { %4090 = vmatmul.mubr.msk.bf16.vlgmr.msra.gmra.mrb[48].mxu1 %vm1284_vm1, %v2768_v29  ;;  %v4473_v29 = vld [vmem:[#allocation28 + $0x70] ss:$8 sps:$4 sm:$0xff]  }
0x1489   : > { %4103 = vmatprep.mubr.msk.bf16.mxu1 %vm5296_vm0, %v5295_v19  ;;  %4100 = vmatpush3.bf16.msra.mxu1 %v4450_v49 }
0x148a   : > { %4101 = vmatprep.subr.bf16.mxu1 %v5295_v19 }
0x1553   : > { %v2704_v31 = vpop.f32.mrb[44].mxu1 }
0x1554   : > { %v2710_v32 = vpack.c.bf16 %v2704_v31, %v2704_v31  ;;  %v4077_v33 = vpop.f32.mrb[45].mxu1  ;;  %v4477_v31 = vld [vmem:[#allocation31] sm:$0xff]  }
0x1555   : > { %v2707_v35 = vpop.f32.mrb[46].mxu1  ;;  %v4479_v33 = vld [vmem:[#allocation31 + $0x8] sm:$0xff]  }
0x1556   : > { %v4078_v37 = vpop.f32.mrb[47].mxu1  ;;  %4084 = vmatmul.mubr.msk.bf16.vlgmr.msra.gmra.mrb[48].mxu0 %vm1284_vm1, %v2710_v32  ;;  %v4478_v32 = vld [vmem:[#allocation31 + $0x48] sm:$0xff]   ;;  %v4480_v35 = vld [vmem:[#allocation31 + $0x50] sm:$0xff]  }
0x1557   : > { %4095 = vmatprep.mubr.msk.bf16.mxu0 %vm5296_vm0, %v5295_v19  ;;  %v4481_v37 = vld [vmem:[#allocation31 + $0x10] sm:$0xff]  }
0x155b   : > { %v2811_v38 = vpop.f32.mrb[48].mxu1 }
0x155c   : > { %v2812_v39 = vadd.f32 %v2811_v38, %v6261_v17  ;;  %v4091_v40 = vpop.f32.mrb[49].mxu1  ;;  %v4482_v38 = vld [vmem:[#allocation31 + $0x58] sm:$0xff]  }
0x155d   : > { %v2814_v41 = vpop.f32.mrb[50].mxu1  ;;  %v4484_v40 = vld [vmem:[#allocation31 + $0x60] sm:$0xff]  }
0x155e   : > { %v4092_v43 = vpop.f32.mrb[51].mxu1  ;;  %v2817_v44 = vsel %vm2323_vm5, %v2812_v39, -inf  ;;  %v4485_v41 = vld [vmem:[#allocation31 + $0x20] sm:$0xff]  }
0x155f   : > { %2818 = vmax.xlane.f32.xlu0 %v2817_v44  ;;  %v4486_v43 = vld [vmem:[#allocation31 + $0x68] sm:$0xff]  }
0x1560   : > { %v4487_v44 = vld [vmem:[#allocation31 + $0x28] sm:$0xff]  }
0x15ec   : > { %v2819_v45 = vpop.xlane.xlu0 %2818 }
0x15ed   : > { %v2820_v7 = vsub.f32 %v2812_v39, %v2819_v45  ;;  %v4483_v39 = vld [vmem:[#allocation31 + $0x18] sm:$0xff]  }
0x15ef   : > { %v2821_v46 = vmul.f32 1.442695, %v2820_v7 }
0x15f1   : > { %4522 = vpow2.f32 %v2821_v46 }
0x15fb   : > { %v4523_v47 = vpop.eup %4522 }
0x15fc   : > { %v2823_v48 = vsel %vm2323_vm5, %v4523_v47, 0.0 }
0x15fd   : > { %2824 = vadd.xlane.f32.xlu1 %v2823_v48  ;;  %v3769_v48 = vld [vmem:[#allocation25] ss:$0 sm:$0xff] }
0x160e   : > { %2829 = vrot.lane.b32.xlu1 %v6238_v55, %s5299_s25  ;;  %v4451_v55 = vld [vmem:[#allocation22 + $0x38] sm:$0xff]  }
0x160f   : > { %4102 = vmatpush3.bf16.msra.mxu1 %v4451_v55 }
0x1610   : > { %3885 = vmatprep.subr.bf16.mxu1 %v4476_v30 }
0x1629   : > { %v2760_v17 = vpop.f32.mrb[48].mxu0 }
0x162a   : > { %v2766_v50 = vadd.f32 %v2760_v17, %v6297_v5  ;;  %v4085_v51 = vpop.f32.mrb[49].mxu0  ;;  %v3770_v17 = vld [vmem:[#allocation26] ss:$0 sm:$0xff] }
0x162b   : > { %v2763_v52 = vpop.f32.mrb[50].mxu0 }
0x162c   : > { %v4086_v53 = vpop.f32.mrb[51].mxu0 }
0x162d   : > { %v4488_v53 = vld [vmem:[#allocation31 + $0x70] sm:$0xff]  }
0x168a   : > { %v2825_v56 = vpop.xlane.xlu1 %2824 }
0x168b   : > { %4524 = vrcp.f32 %v2825_v56  ;;  %v4489_v56 = vld [vmem:[#allocation31 + $0x30] sm:$0xff]  }
0x168e   : > { %v2830_v57 = vpop.permute.xlu1 %2829 }
0x168f   : > { %4094 = vmatpush3.bf16.msra.mxu0 %v2830_v57  ;;  %v4490_v57 = vld [vmem:[#allocation31 + $0x78] sm:$0xff]  }
0x1690   : > { %3077 = vmatprep.subr.bf16.mxu0 %v4454_v12 }
0x1695   : > { %v4525_v58 = vpop.eup %4524 }
0x1696   : > { %v2827_v59 = vmul.f32 %v4525_v58, %v4523_v47  ;;  %v4491_v58 = vld [vmem:[#allocation31 + $0x38] sm:$0xff]  }
0x1698   : > { %v2828_v60 = vpack.c.bf16 %v2827_v59, %v2827_v59  ;;  %v2985_v59 = vld [vmem:[#allocation29] sm:$0x3] }
0x1699   : > { %v2994_v55 = vrot.slane %v2985_v59, %v6099_v24 }
0x169a   : > { %4096 = vmatmul.mubr.msk.bf16.vlgmr.msra.gmra.mrb[52].mxu0 %vm2323_vm5, %v2828_v60  ;;  %v2990_v60 = vrot.slane %v2985_v59, %v6094_v22  ;;  %v3803_v22 = vld [vmem:[#allocation32] ss:$0 sm:$0xff] }
0x169b   : > { %3109 = vmatprep.mubr.bf16.mxu0 %v5294_v0  ;;  %v4452_v0 = vld [vmem:[#allocation28] ss:$8 sps:$4 sm:$0xff]  }
0x169c   : > { %3078 = vmatpush1.bf16.msra.mxu0 %v4452_v0 }
0x169d   : > { %3079 = vmatprep.subr.bf16.mxu0 %v4457_v13 }
0x16a0   : > { %3080 = vmatpush1.bf16.msra.mxu0 %v4455_v34 }
0x16a1   : > { %3081 = vmatprep.subr.bf16.mxu0 %v4460_v36 }
0x16a4   : > { %3082 = vmatpush1.bf16.msra.mxu0 %v4458_v14 }
0x16a5   : > { %3083 = vmatprep.subr.bf16.mxu0 %v4463_v21 }
0x176d   : > { %v2869_v19 = vpop.f32.mrb[52].mxu0 }
0x176e   : > { %v2875_v61 = vpack.c.bf16 %v2869_v19, %v2869_v19  ;;  %v4097_v62 = vpop.f32.mrb[53].mxu0 }
0x176f   : > { %v2872_v63 = vpop.f32.mrb[54].mxu0 }
0x1770   : > { %v4098_v1 = vpop.f32.mrb[55].mxu0  ;;  %4104 = vmatmul.mubr.msk.bf16.vlgmr.msra.gmra.mrb[52].mxu1 %vm1284_vm1, %v2875_v61 }
0x1771   : > { %3886 = vmatpush3.bf16.msra.mxu1 %v4477_v31 }
0x1772   : > { %3887 = vmatprep.subr.bf16.mxu1 %v4478_v32 }
0x1775   : > { %3888 = vmatpush3.bf16.msra.mxu1 %v4479_v33 }
0x1776   : > { %3889 = vmatprep.subr.bf16.mxu1 %v4480_v35 }
0x1779   : > { %3890 = vmatpush3.bf16.msra.mxu1 %v4481_v37 }
0x177a   : > { %3891 = vmatprep.subr.bf16.mxu1 %v4482_v38 }
0x177d   : > { %3892 = vmatpush3.bf16.msra.mxu1 %v4483_v39 }
0x177e   : > { %3893 = vmatprep.subr.bf16.mxu1 %v4484_v40 }
0x1781   : > { %3894 = vmatpush3.bf16.msra.mxu1 %v4485_v41 }
0x1782   : > { %3895 = vmatprep.subr.bf16.mxu1 %v4486_v43 }
0x1785   : > { %3896 = vmatpush3.bf16.msra.mxu1 %v4487_v44 }
0x1786   : > { %3897 = vmatprep.subr.bf16.mxu1 %v4488_v53 }
0x1789   : > { %3898 = vmatpush3.bf16.msra.mxu1 %v4489_v56 }
0x178a   : > { %3899 = vmatprep.subr.bf16.mxu1 %v4490_v57 }
0x178d   : > { %3900 = vmatpush3.bf16.msra.mxu1 %v4491_v58 }
0x1843   : > { %v2925_v3 = vpop.f32.mrb[52].mxu1 }
0x1844   : > { %v2931_v5 = vadd.f32 %v2925_v3, %v2766_v50  ;;  %v4105_v6 = vpop.f32.mrb[53].mxu1 }
0x1845   : > { %v2928_v8 = vpop.f32.mrb[54].mxu1 }
0x1846   : > { %v2939_v9 = vadd.f32 %v3768_v4, %v2931_v5  ;;  %v4106_v10 = vpop.f32.mrb[55].mxu1 }
0x1848   : > { %v2940_v11 = vadd.f32 %v2939_v9, %v6228_v42  ;;  %v4461_v42 = vld [vmem:[#allocation28 + $0x30] ss:$8 sps:$4 sm:$0xff]  }
0x1849   : > { %3084 = vmatpush1.bf16.msra.mxu0 %v4461_v42  ;;  %v3804_v42 = vld [vmem:[#allocation34] ss:$0 sm:$0xff] }
0x184a   : > { %2943 = vadd.xlane.f32.xlu1 %v2940_v11  ;;  %3085 = vmatprep.subr.bf16.mxu0 %v4466_v23 }
0x184d   : > { %3086 = vmatpush1.bf16.msra.mxu0 %v4464_v54  ;;  %v3805_v54 = vld [vmem:[#allocation35] ss:$0 sm:$0xff] }
0x184e   : > { %3087 = vmatprep.subr.bf16.mxu0 %v4469_v25 }
0x1851   : > { %3088 = vmatpush1.bf16.msra.mxu0 %v4467_v2 }
0x1852   : > { %3089 = vmatprep.subr.bf16.mxu0 %v4472_v26 }
0x1855   : > { %3090 = vmatpush1.bf16.msra.mxu0 %v4470_v27 }
0x1856   : > { %3091 = vmatprep.subr.bf16.mxu0 %v4475_v28 }
0x1859   : > { %3092 = vmatpush1.bf16.msra.mxu0 %v4473_v29 }
0x18d7   : > { %v2944_v15 = vpop.xlane.xlu1 %2943 }
0x18d8   : > { %v2945_v20 = vmul.f32 0.0078125, %v2944_v15 }
0x18da   : > { %v2946_v16 = vsub.f32 %v2940_v11, %v2945_v20 }
0x18dc   : > { %v2947_v18 = vmul.f32 %v2946_v16, %v2946_v16 }
0x18de   : > { %2948 = vadd.xlane.f32.xlu0 %v2947_v18 }
0x196b   : > { %v2949_v45 = vpop.xlane.xlu0 %2948 }
0x196c   : > { %v2950_v7 = vmul.f32 0.0078125, %v2949_v45 }
0x196e   : > { %v2951_v46 = vadd.f32 1e-05, %v2950_v7 }
0x1970   : > { %4526 = vrsqrt.f32 %v2951_v46 }
0x197a   : > { %v4527_v47 = vpop.eup %4526 }
0x197b   : > { %v2953_v49 = vmul.f32 %v4527_v47, %v2946_v16 }
0x197d   : > { %v2960_v50 = vmul.f32 %v3769_v48, %v2953_v49 }
0x197f   : > { %v2967_v51 = vadd.f32 %v3770_v17, %v2960_v50 }
0x1981   : > { %v2968_v52 = vpack.c.bf16 %v2967_v51, %v2967_v51 }
0x1983   : > { %3110 = vmatmul.mubr.bf16.vlgmr.msra.gmra.mrb[56].mxu0 %v2968_v52 }
0x1a56   : > { %v3111_v19 = vpop.f32.mrb[56].mxu0 }
0x1a57   : > { %v3112_v61 = vadd.f32 %v3111_v19, %v2990_v60  ;;  %v3113_v62 = vpop.f32.mrb[57].mxu0 }
0x1a58   : > { %v3114_v63 = vadd.f32 %v3113_v62, %v2994_v55  ;;  %v3115_v1 = vpop.f32.mrb[58].mxu0 }
0x1a59   : > { %v3118_v3 = vmax.f32 %v3112_v61, 0.0  ;;  %v3116_v4 = vpop.f32.mrb[59].mxu0 }
0x1a5a   : > { %v3119_v5 = vmax.f32 %v3114_v63, 0.0 }
0x1a5b   : > { %v3120_v8 = vpack.c.bf16 %v3118_v3, %v3118_v3 }
0x1a5c   : > { %v3121_v6 = vpack.c.bf16 %v3119_v5, %v3119_v5 }
0x1a5e   : > { %3282 = vmatprep.mubr.bf16.mxu1 %v3121_v6 }
0x1a5f   : > { %3283 = vmatmul.mubr.bf16.vlgmr.msra.gmra.mrb[56].mxu1 %v3120_v8 }
0x1b32   : > { %v3901_v9 = vpop.f32.mrb[56].mxu1 }
0x1b33   : > { %v3902_v10 = vpop.f32.mrb[57].mxu1 }
0x1b34   : > { %v3903_v11 = vadd.f32 %v3902_v10, %v3901_v9  ;;  %v3904_v0 = vpop.f32.mrb[58].mxu1 }
0x1b35   : > { %v3905_v12 = vpop.f32.mrb[59].mxu1 }
0x1b36   : > { %v3290_v13 = vadd.f32 %v3903_v11, %v2967_v51 }
0x1b38   : > { %v3298_v24 = vadd.f32 %v3803_v22, %v3290_v13 }
0x1b3a   : > { %3301 = vadd.xlane.f32.xlu0 %v3298_v24 }
0x1bc7   : > { %v3302_v34 = vpop.xlane.xlu0 %3301 }
0x1bc8   : > { %v3303_v36 = vmul.f32 0.0078125, %v3302_v34 }
0x1bca   : > { %v3304_v14 = vsub.f32 %v3298_v24, %v3303_v36 }
0x1bcc   : > { %v3305_v15 = vmul.f32 %v3304_v14, %v3304_v14 }
0x1bce   : > { %3306 = vadd.xlane.f32.xlu0 %v3305_v15 }
0x1c5b   : > { %v3307_v20 = vpop.xlane.xlu0 %3306 }
0x1c5c   : > { %v3308_v16 = vmul.f32 0.0078125, %v3307_v20 }
0x1c5e   : > { %v3309_v18 = vadd.f32 1e-05, %v3308_v16 }
0x1c60   : > { %4528 = vrsqrt.f32 %v3309_v18 }
0x1c6a   : > { %v4529_v21 = vpop.eup %4528 }
0x1c6b   : > { %v3311_v23 = vmul.f32 %v4529_v21, %v3304_v14 }
0x1c6d   : > { %v3318_v25 = vmul.f32 %v3804_v42, %v3311_v23 }
0x1c6f   : > { %v3325_v2 = vadd.f32 %v3805_v54, %v3318_v25 }
0x1c71   : > { %3326 = vst [vmem:[%s1002_s12] sm:$0xff] %v3325_v2 }
0x1c72   : > { %5163 = shalt.err (!%p5160_p0)
}
0x1c73   : > { %s5164_s1 = scalar_lea.hbm %s6341_s2, 128  ;;  %s5168_s29 = scalar_lea.hbm %s6520_s6, 256 }
0x1c74   : > { %p5165_p12 = scmp.ne.s32.totalorder %s6341_s2, %s5164_s1  ;;  %p5169_p3 = scmp.lt.u32.totalorder %s6341_s2, %s6520_s6 }
0x1c75   : > { %p5170_p6 = scmp.lt.u32.totalorder %s5168_s29, %s5164_s1  ;;  %p5172_p4 = scmp.lt.u32.totalorder %s5164_s1, %s6341_s2 }
0x1c76   : > { %p5166_p13 = pnand %p5165_p12, %p6521_p10 }
0x1c77   : > { %p5171_p2 = por %p5170_p6, %p5169_p3 }
0x1c78   : > { %p5167_p1 = pneg %p5166_p13 }
0x1c79   : > { %p5173_p5 = por %p5172_p4, %p5171_p2 }
0x1c7b   : > { %p5174_p7 = pnand %p5173_p5, %p5167_p1 }
0x1c7d   : > { %5177 = shalt.err (!%p5174_p7)
}
0x1c7e   : > { %4191 = dma.vmem_to_hbm [thread:$0]  (%p6521_p10), %s6343_s5, 128, %s6341_s2, %s3328_s23  }
0x1c7f PF: > { %s6522_s12 = sld [smem:[#allocation52_spill]]  ;;  %s6523_s7 = sld [smem:[#allocation55_spill]] }
0x1c80   : > { %p6524_p9 = scmp.ne.s32.totalorder %s6488_s3, 0 }
0x1c85   : > { %s3353_s4 = sand.u32 1, %s6522_s12   ;;  %p6525_p8 = scmp.ge.s32.totalorder %s6523_s7, 2 }
0x1c86   : > { %s3354_s8 = scalar_lea.sflag [#allocation4], %s3353_s4 }
0x1c87   : > { %p4262_p11 = pnand %p6525_p8, %p6524_p9 }
0x1c89   : > { %5247 = dma.done.wait (!%p4262_p11), %s3354_s8, 128  }
0x1c8a   : > { %5249 = vsyncadd (!%p4262_p11), %s3354_s8, 4294967168  ;;  %s6526_s3 = sld [smem:[#allocation53_spill]]  ;;  %s6527_s0 = sld [smem:[#allocation54_spill]] }
0x1c8b   : > { %s6528_s11 = smov %s5899_s28  ;;  %p48_p0 = scmp.ge.s32.totalorder %s5888_s30, 4  }
0x1c8c   : > { %s6530_s29 = smov %s6528_s11 }
0x1c8d   :  { %50 = sbr.rel (!%p48_p0) target bundleno = 35 (0x23), region = 246 }
0x1c90   : > { %s6529_s28 = smov %s6527_s0 }
0x1c94   :  { %3359 = vsyncpa [#allocation3], 1 }
0x1c95   :  { %3361 = vsyncpa [#allocation3 + $0x1], 1 }
0x1c96   :  { %3362 = vsyncpa [#allocation6], 1 }
0x1c97   :  { %3364 = vsyncpa [#allocation6 + $0x1], 1 }
0x1c98   :  { %3365 = vsyncpa [#allocation9], 1 }
0x1c99   :  { %3366 = vsyncpa [#allocation12], 1 }
0x1c9a   :  { %3367 = vsyncpa [#allocation15], 1 }
0x1c9b   :  { %3368 = vsyncpa [#allocation18], 1 }
0x1c9c   :  { %3369 = vsyncpa [#allocation21], 1 }
0x1c9d   :  { %3370 = vsyncpa [#allocation24], 1 }
0x1c9e   :  { %3371 = vsyncpa [#allocation27], 1 }
0x1c9f   :  { %3372 = vsyncpa [#allocation30], 1 }
0x1ca0   :  { %3373 = vsyncpa [#allocation33], 1 }
0x1ca1   :  { %3374 = vsyncpa [#allocation36], 1 }
0x1ca2   :  { %3375 = vsyncpa [#allocation4], 1 }
0x1ca3   :  { %3377 = vsyncpa [#allocation4 + $0x1], 1 }

</bundles_post_ra>
